<compile_context>
chip_gen: v7x
topology: tpu7x:2x2x1
jax: 0.10.0
libtpu: 0.0.40
codegen_flags: <defaults>
</compile_context>

<pallas_src>
import functools

import jax
import jax.numpy as jnp
from jax.experimental import pallas as pl
from jax.experimental.pallas import tpu as pltpu


def _round_up(x, m):
    return (x + m - 1) // m * m


def _pick_tile(padded, cap):
    """Largest multiple of 128 <= cap that divides `padded` (padded is a mult of 128)."""
    t = cap
    while t > 128 and padded % t != 0:
        t -= 128
    return t


# ----------------------------- Pallas kernel --------------------------------
def _matmul_bias_act_kernel(x_ref, w_ref, b_ref, o_ref, acc_ref, *,
                            apply_lrelu, neg_slope):
    """One (TM,TN) output tile; K-reduction accumulated in f32 VMEM scratch."""
    @pl.when(pl.program_id(2) == 0)
    def _init():
        acc_ref[...] = jnp.zeros_like(acc_ref)

    acc_ref[...] += jnp.dot(x_ref[...], w_ref[...],
                            preferred_element_type=jnp.float32)

    @pl.when(pl.program_id(2) == pl.num_programs(2) - 1)
    def _finalize():
        y = acc_ref[...] + b_ref[...]          # (TM,TN) + (1,TN)
        if apply_lrelu:
            y = jnp.where(y >= 0.0, y, y * neg_slope)
        o_ref[...] = y.astype(o_ref.dtype)


def pallas_matmul_bias_act(patches_bf16, layer):
    """out = act(patches @ W + b) with a tiled, pipelined Pallas matmul.

    patches_bf16: (M, K) bf16 im2col matrix.
    layer: dict holding pre-padded bf16 weights (Kp, Np), f32 bias (1, Np) and tiling meta.
    """
    M, K = patches_bf16.shape
    Kp, Np, TK, TN = layer["Kp"], layer["Np"], layer["TK"], layer["TN"]
    N = layer["N"]

    # Row tiling: keep TM <= 256 (VMEM-friendly on v7x's 64 MiB too), multiple of 16.
    M16 = _round_up(max(M, 16), 16)
    if M16 <= 256:
        TM, Mp = M16, M16
    else:
        TM, Mp = 256, _round_up(M, 256)

    xp = patches_bf16
    if Mp != M or Kp != K:
        xp = jnp.pad(xp, ((0, Mp - M), (0, Kp - K)))

    grid = (Mp // TM, Np // TN, Kp // TK)
    kernel = functools.partial(_matmul_bias_act_kernel,
                               apply_lrelu=layer["lrelu"], neg_slope=0.2)

    out = pl.pallas_call(
        kernel,
        out_shape=jax.ShapeDtypeStruct((Mp, Np), jnp.float32),
        grid=grid,
        in_specs=[
            pl.BlockSpec((TM, TK), lambda i, j, k: (i, k)),   # patches tile
            pl.BlockSpec((TK, TN), lambda i, j, k: (k, j)),   # weight tile
            pl.BlockSpec((1, TN), lambda i, j, k: (0, j)),    # bias tile
        ],
        out_specs=pl.BlockSpec((TM, TN), lambda i, j, k: (i, j)),
        scratch_shapes=[pltpu.VMEM((TM, TN), jnp.float32)],
        compiler_params=pltpu.CompilerParams(
            dimension_semantics=("parallel", "parallel", "arbitrary"),
            vmem_limit_bytes=32 * 1024 * 1024,
        ),
    )(xp, layer["wp"], layer["bp"])
    return out[:M, :N]


# ------------------------------ JAX glue -------------------------------------
def im2col(x_nhwc, kh, kw, stride, pad):
    """Extract conv patches in bf16 (halves HBM traffic of the im2col matrix)."""
    B, H, W, C = x_nhwc.shape
    x = x_nhwc.astype(jnp.bfloat16)
    xp = jnp.pad(x, ((0, 0), (pad, pad), (pad, pad), (0, 0)))
    Hp, Wp = H + 2 * pad, W + 2 * pad
    out_h = (Hp - kh) // stride + 1
    out_w = (Wp - kw) // stride + 1
    cols = []
    for ki in range(kh):
        for kj in range(kw):
            cols.append(
                xp[:, ki:ki + stride * out_h:stride, kj:kj + stride * out_w:stride, :]
            )
    patches = jnp.concatenate(cols, axis=-1)  # (B, oh, ow, kh*kw*C), order (kh, kw, c)
    return patches.reshape(B * out_h * out_w, kh * kw * C), out_h, out_w


def conv_layer(x_nhwc, layer):
    """Conv2d + optional bias + optional LeakyReLU via the Pallas matmul kernel."""
    B = x_nhwc.shape[0]
    patches, oh, ow = im2col(x_nhwc, layer["kh"], layer["kw"],
                             layer["stride"], layer["pad"])
    out = pallas_matmul_bias_act(patches, layer)      # (M, cout) f32
    return out.reshape(B, oh, ow, layer["cout"])


def bilinear_upsample_x2(x_nhwc):
    """F.interpolate(scale_factor=2, mode='bilinear', align_corners=False)."""
    B, H, W, C = x_nhwc.shape
    out_h, out_w = 2 * H, 2 * W

    def coords(out_size, in_size):
        i = jnp.arange(out_size, dtype=jnp.float32)
        src = (i + 0.5) * 0.5 - 0.5
        src = jnp.maximum(src, 0.0)                   # PyTorch clamps negative src to 0
        i0 = jnp.floor(src).astype(jnp.int32)
        i0 = jnp.minimum(i0, in_size - 1)
        i1 = jnp.minimum(i0 + 1, in_size - 1)
        w1 = src - i0.astype(jnp.float32)
        w0 = 1.0 - w1
        return i0, i1, w0, w1

    h0, h1, wh0, wh1 = coords(out_h, H)
    c0, c1, wc0, wc1 = coords(out_w, W)
    top = (x_nhwc[:, h0, :, :] * wh0[None, :, None, None]
           + x_nhwc[:, h1, :, :] * wh1[None, :, None, None])
    out = (top[:, :, c0, :] * wc0[None, None, :, None]
           + top[:, :, c1, :] * wc1[None, None, :, None])
    return out


def spectral_normalize(w_ochw, u):
    """torch.nn.utils.spectral_norm semantics: 1 power iteration, eps=1e-12."""
    O = w_ochw.shape[0]
    w_mat = w_ochw.reshape(O, -1)
    v = w_mat.T @ u
    v = v / (jnp.linalg.norm(v) + 1e-12)
    u_new = w_mat @ v
    u_new = u_new / (jnp.linalg.norm(u_new) + 1e-12)
    sigma = u_new @ (w_mat @ v)
    return w_ochw / sigma


# --------------------------- Model construction ------------------------------
def _prep_conv_layer(w_ochw, bias, stride, pad, lrelu):
    """Hoisted per-layer prep: transpose/reshape, pad to tile multiples, bf16 cast."""
    O, C, KH, KW = w_ochw.shape
    # (O, C, KH, KW) -> (KH, KW, C, O) -> (KH*KW*C, O): matches im2col (kh, kw, c) order.
    w_mat = jnp.transpose(w_ochw, (2, 3, 1, 0)).reshape(KH * KW * C, O)
    K, N = w_mat.shape
    Kp = _round_up(K, 128)
    Np = _round_up(N, 128)
    TK = _pick_tile(Kp, 512)
    TN = _pick_tile(Np, 256)
    wp = jnp.pad(w_mat, ((0, Kp - K), (0, Np - N))).astype(jnp.bfloat16)
    b = bias if bias is not None else jnp.zeros((N,), jnp.float32)
    bp = jnp.pad(b.astype(jnp.float32), (0, Np - N)).reshape(1, Np)
    return dict(wp=wp, bp=bp, K=K, N=N, Kp=Kp, Np=Np, TK=TK, TN=TN,
                kh=KH, kw=KW, cin=C, cout=O, stride=stride, pad=pad, lrelu=lrelu)


def make_params(key, num_in_ch=3, num_feat=64):
    """Deterministic init + spectral norm (1 power iter), all layer prep done once."""
    # (name, cin, cout, k, stride, pad, has_bias, use_sn, lrelu)
    defs = [
        ("conv0", num_in_ch,    num_feat,     3, 1, 1, True,  False, True),
        ("conv1", num_feat,     num_feat * 2, 4, 2, 1, False, True,  True),
        ("conv2", num_feat * 2, num_feat * 4, 4, 2, 1, False, True,  True),
        ("conv3", num_feat * 4, num_feat * 8, 4, 2, 1, False, True,  True),
        ("conv4", num_feat * 8, num_feat * 4, 3, 1, 1, False, True,  True),
        ("conv5", num_feat * 4, num_feat * 2, 3, 1, 1, False, True,  True),
        ("conv6", num_feat * 2, num_feat,     3, 1, 1, False, True,  True),
        ("conv7", num_feat,     num_feat,     3, 1, 1, False, True,  True),
        ("conv8", num_feat,     num_feat,     3, 1, 1, False, True,  True),
        ("conv9", num_feat,     1,            3, 1, 1, True,  False, False),
    ]
    params = {}
    for name, cin, cout, k, stride, pad, has_bias, use_sn, lrelu in defs:
        key, kwk, kbk, kuk = jax.random.split(key, 4)
        fan_in = cin * k * k
        bound = 1.0 / (fan_in ** 0.5)
        w = jax.random.uniform(kwk, (cout, cin, k, k), jnp.float32, -bound, bound)
        b = (jax.random.uniform(kbk, (cout,), jnp.float32, -bound, bound)
             if has_bias else None)
        if use_sn:
            u = jax.random.normal(kuk, (cout,), jnp.float32)
            u = u / (jnp.linalg.norm(u) + 1e-12)
            w = spectral_normalize(w, u)
        params[name] = _prep_conv_layer(w, b, stride, pad, lrelu)
    return params


# ------------------------------- Forward --------------------------------------
def unet_discriminator_sn_forward(x_nchw, params, skip_connection=True):
    x = jnp.transpose(x_nchw, (0, 2, 3, 1)).astype(jnp.float32)  # NCHW -> NHWC

    x0 = conv_layer(x, params["conv0"])     # 3x3 s1 + LReLU
    x1 = conv_layer(x0, params["conv1"])    # 4x4 s2 + LReLU
    x2 = conv_layer(x1, params["conv2"])    # 4x4 s2 + LReLU
    x3 = conv_layer(x2, params["conv3"])    # 4x4 s2 + LReLU

    x3 = bilinear_upsample_x2(x3)
    x4 = conv_layer(x3, params["conv4"])    # 3x3 s1 + LReLU
    if skip_connection:
        x4 = x4 + x2

    x4 = bilinear_upsample_x2(x4)
    x5 = conv_layer(x4, params["conv5"])    # 3x3 s1 + LReLU
    if skip_connection:
        x5 = x5 + x1

    x5 = bilinear_upsample_x2(x5)
    x6 = conv_layer(x5, params["conv6"])    # 3x3 s1 + LReLU
    if skip_connection:
        x6 = x6 + x0

    out = conv_layer(x6, params["conv7"])   # 3x3 s1 + LReLU
    out = conv_layer(out, params["conv8"])  # 3x3 s1 + LReLU
    out = conv_layer(out, params["conv9"])  # 3x3 s1, bias, no activation

    return jnp.transpose(out, (0, 3, 1, 2))  # NHWC -> NCHW


# ---------------------------------- Main --------------------------------------
if __name__ == "__main__":
    key = jax.random.PRNGKey(0)
    k_params, k_x = jax.random.split(key)

    num_in_ch, num_feat = 3, 32            # small but structurally faithful
    params = make_params(k_params, num_in_ch=num_in_ch, num_feat=num_feat)

    x = jax.random.normal(k_x, (2, num_in_ch, 16, 16), jnp.float32)  # NCHW like PyTorch

    fwd = jax.jit(lambda xx: unet_discriminator_sn_forward(xx, params))
    out = jax.block_until_ready(fwd(x))

    assert out.shape == (2, 1, 16, 16), out.shape
    assert bool(jnp.all(jnp.isfinite(out)))
    print("KERNEL_OK")
</pallas_src>

<mosaic_0001>
module attributes {stable_mosaic.version = 11 : i64} {
  func.func @_matmul_bias_act_kernel(%arg0: i32, %arg1: i32, %arg2: i32, %arg3: memref<256x128xbf16, #tpu.memory_space<vmem>>, %arg4: memref<128x128xbf16, #tpu.memory_space<vmem>>, %arg5: memref<1x128xf32, #tpu.memory_space<vmem>>, %arg6: memref<256x128xf32, #tpu.memory_space<vmem>>, %arg7: memref<256x128xf32, #tpu.memory_space<vmem>>) attributes {dimension_semantics = [#tpu.dimension_semantics<parallel>, #tpu.dimension_semantics<parallel>, #tpu.dimension_semantics<arbitrary>], iteration_bounds = array<i64: 2, 1, 1>, scalar_prefetch = 0 : i64, scratch_operands = 1 : i64, tpu.core_type = #tpu.core_type<tc>, window_params = [{transform_indices = @transform_0, window_bounds = array<i64: 256, 128>}, {transform_indices = @transform_1, window_bounds = array<i64: 128, 128>}, {transform_indices = @transform_2, window_bounds = array<i64: 1, 128>}, {transform_indices = @transform_3, window_bounds = array<i64: 256, 128>}]} {
    %c0_i32 = arith.constant 0 : i32
    %0 = arith.cmpi eq, %arg2, %c0_i32 : i32
    %1 = arith.extui %0 : i1 to i32
    %c0_i32_0 = arith.constant 0 : i32
    %2 = arith.cmpi ne, %1, %c0_i32_0 : i32
    scf.if %2 {
      %cst_10 = arith.constant 0.000000e+00 : f32
      %12 = vector.broadcast %cst_10 : f32 to vector<256x128xf32>
      %c0_11 = arith.constant 0 : index
      %c0_12 = arith.constant 0 : index
      %13 = vector.load %arg7[%c0_11, %c0_12] : memref<256x128xf32, #tpu.memory_space<vmem>>, vector<256x128xf32>
      tpu.vector_store %arg7[%c0_11, %c0_12], %12 {strides = array<i32>} : memref<256x128xf32, #tpu.memory_space<vmem>>, vector<256x128xf32>,
    } else {
    }
    %c0 = arith.constant 0 : index
    %c0_1 = arith.constant 0 : index
    %3 = vector.load %arg7[%c0, %c0_1] : memref<256x128xf32, #tpu.memory_space<vmem>>, vector<256x128xf32>
    %c0_2 = arith.constant 0 : index
    %c0_3 = arith.constant 0 : index
    %4 = vector.load %arg3[%c0_2, %c0_3] : memref<256x128xbf16, #tpu.memory_space<vmem>>, vector<256x128xbf16>
    %c0_4 = arith.constant 0 : index
    %c0_5 = arith.constant 0 : index
    %5 = vector.load %arg4[%c0_4, %c0_5] : memref<128x128xbf16, #tpu.memory_space<vmem>>, vector<128x128xbf16>
    %cst = arith.constant dense<0.000000e+00> : vector<256x128xf32>
    %6 = tpu.matmul %4, %5, %cst {dimension_numbers = #tpu.dot_dimension_numbers<[1], [0], [0], [1], [0, 0, 1, 1], [], []>} : vector<256x128xbf16>, vector<128x128xbf16>, vector<256x128xf32> -> vector<256x128xf32>
    %7 = arith.addf %3, %6 : vector<256x128xf32>
    %c0_6 = arith.constant 0 : index
    %c0_7 = arith.constant 0 : index
    %8 = vector.load %arg7[%c0_6, %c0_7] : memref<256x128xf32, #tpu.memory_space<vmem>>, vector<256x128xf32>
    tpu.vector_store %arg7[%c0_6, %c0_7], %7 {strides = array<i32>} : memref<256x128xf32, #tpu.memory_space<vmem>>, vector<256x128xf32>,
    %c0_i32_8 = arith.constant 0 : i32
    %9 = arith.cmpi eq, %arg2, %c0_i32_8 : i32
    %10 = arith.extui %9 : i1 to i32
    %c0_i32_9 = arith.constant 0 : i32
    %11 = arith.cmpi ne, %10, %c0_i32_9 : i32
    scf.if %11 {
      %c0_10 = arith.constant 0 : index
      %c0_11 = arith.constant 0 : index
      %12 = vector.load %arg7[%c0_10, %c0_11] : memref<256x128xf32, #tpu.memory_space<vmem>>, vector<256x128xf32>
      %c0_12 = arith.constant 0 : index
      %c0_13 = arith.constant 0 : index
      %13 = vector.load %arg5[%c0_12, %c0_13] : memref<1x128xf32, #tpu.memory_space<vmem>>, vector<1x128xf32>
      %14 = vector.broadcast %13 : vector<1x128xf32> to vector<256x128xf32>
      %15 = arith.addf %12, %14 : vector<256x128xf32>
      %cst_14 = arith.constant 0.000000e+00 : f32
      %16 = vector.broadcast %cst_14 : f32 to vector<256x128xf32>
      %17 = arith.cmpf oge, %15, %16 : vector<256x128xf32>
      %cst_15 = arith.constant 2.000000e-01 : f32
      %18 = vector.broadcast %cst_15 : f32 to vector<256x128xf32>
      %19 = arith.mulf %15, %18 : vector<256x128xf32>
      %20 = arith.select %17, %15, %19 : vector<256x128xi1>, vector<256x128xf32>
      %c0_16 = arith.constant 0 : index
      %c0_17 = arith.constant 0 : index
      %21 = vector.load %arg6[%c0_16, %c0_17] : memref<256x128xf32, #tpu.memory_space<vmem>>, vector<256x128xf32>
      tpu.vector_store %arg6[%c0_16, %c0_17], %20 {strides = array<i32>} : memref<256x128xf32, #tpu.memory_space<vmem>>, vector<256x128xf32>,
    } else {
    }
    return
  }
  func.func @transform_0(%arg0: i32, %arg1: i32, %arg2: i32) -> (i32, i32) {
    %c0_i32 = arith.constant 0 : i32
    return %arg0, %arg2 : i32, i32
  }
  func.func @transform_1(%arg0: i32, %arg1: i32, %arg2: i32) -> (i32, i32) {
    %c0_i32 = arith.constant 0 : i32
    return %arg2, %arg1 : i32, i32
  }
  func.func @transform_2(%arg0: i32, %arg1: i32, %arg2: i32) -> (i32, i32) {
    %c0_i32 = arith.constant 0 : i32
    %c0_i32_0 = arith.constant 0 : i32
    return %c0_i32, %arg1 : i32, i32
  }
  func.func @transform_3(%arg0: i32, %arg1: i32, %arg2: i32) -> (i32, i32) {
    %c0_i32 = arith.constant 0 : i32
    return %arg0, %arg1 : i32, i32
  }
}

module attributes {stable_mosaic.version = 11 : i64} {
  func.func @_matmul_bias_act_kernel(%arg0: i32, %arg1: i32, %arg2: i32, %arg3: memref<128x512xbf16, #tpu.memory_space<vmem>>, %arg4: memref<512x128xbf16, #tpu.memory_space<vmem>>, %arg5: memref<1x128xf32, #tpu.memory_space<vmem>>, %arg6: memref<128x128xf32, #tpu.memory_space<vmem>>, %arg7: memref<128x128xf32, #tpu.memory_space<vmem>>) attributes {dimension_semantics = [#tpu.dimension_semantics<parallel>, #tpu.dimension_semantics<parallel>, #tpu.dimension_semantics<arbitrary>], iteration_bounds = array<i64: 1, 1, 1>, scalar_prefetch = 0 : i64, scratch_operands = 1 : i64, tpu.core_type = #tpu.core_type<tc>, window_params = [{transform_indices = @transform_0, window_bounds = array<i64: 128, 512>}, {transform_indices = @transform_1, window_bounds = array<i64: 512, 128>}, {transform_indices = @transform_2, window_bounds = array<i64: 1, 128>}, {transform_indices = @transform_3, window_bounds = array<i64: 128, 128>}]} {
    %c0_i32 = arith.constant 0 : i32
    %0 = arith.cmpi eq, %arg2, %c0_i32 : i32
    %1 = arith.extui %0 : i1 to i32
    %c0_i32_0 = arith.constant 0 : i32
    %2 = arith.cmpi ne, %1, %c0_i32_0 : i32
    scf.if %2 {
      %cst_10 = arith.constant 0.000000e+00 : f32
      %12 = vector.broadcast %cst_10 : f32 to vector<128x128xf32>
      %c0_11 = arith.constant 0 : index
      %c0_12 = arith.constant 0 : index
      %13 = vector.load %arg7[%c0_11, %c0_12] : memref<128x128xf32, #tpu.memory_space<vmem>>, vector<128x128xf32>
      tpu.vector_store %arg7[%c0_11, %c0_12], %12 {strides = array<i32>} : memref<128x128xf32, #tpu.memory_space<vmem>>, vector<128x128xf32>,
    } else {
    }
    %c0 = arith.constant 0 : index
    %c0_1 = arith.constant 0 : index
    %3 = vector.load %arg7[%c0, %c0_1] : memref<128x128xf32, #tpu.memory_space<vmem>>, vector<128x128xf32>
    %c0_2 = arith.constant 0 : index
    %c0_3 = arith.constant 0 : index
    %4 = vector.load %arg3[%c0_2, %c0_3] : memref<128x512xbf16, #tpu.memory_space<vmem>>, vector<128x512xbf16>
    %c0_4 = arith.constant 0 : index
    %c0_5 = arith.constant 0 : index
    %5 = vector.load %arg4[%c0_4, %c0_5] : memref<512x128xbf16, #tpu.memory_space<vmem>>, vector<512x128xbf16>
    %cst = arith.constant dense<0.000000e+00> : vector<128x128xf32>
    %6 = tpu.matmul %4, %5, %cst {dimension_numbers = #tpu.dot_dimension_numbers<[1], [0], [0], [1], [0, 0, 1, 1], [], []>} : vector<128x512xbf16>, vector<512x128xbf16>, vector<128x128xf32> -> vector<128x128xf32>
    %7 = arith.addf %3, %6 : vector<128x128xf32>
    %c0_6 = arith.constant 0 : index
    %c0_7 = arith.constant 0 : index
    %8 = vector.load %arg7[%c0_6, %c0_7] : memref<128x128xf32, #tpu.memory_space<vmem>>, vector<128x128xf32>
    tpu.vector_store %arg7[%c0_6, %c0_7], %7 {strides = array<i32>} : memref<128x128xf32, #tpu.memory_space<vmem>>, vector<128x128xf32>,
    %c0_i32_8 = arith.constant 0 : i32
    %9 = arith.cmpi eq, %arg2, %c0_i32_8 : i32
    %10 = arith.extui %9 : i1 to i32
    %c0_i32_9 = arith.constant 0 : i32
    %11 = arith.cmpi ne, %10, %c0_i32_9 : i32
    scf.if %11 {
      %c0_10 = arith.constant 0 : index
      %c0_11 = arith.constant 0 : index
      %12 = vector.load %arg7[%c0_10, %c0_11] : memref<128x128xf32, #tpu.memory_space<vmem>>, vector<128x128xf32>
      %c0_12 = arith.constant 0 : index
      %c0_13 = arith.constant 0 : index
      %13 = vector.load %arg5[%c0_12, %c0_13] : memref<1x128xf32, #tpu.memory_space<vmem>>, vector<1x128xf32>
      %14 = vector.broadcast %13 : vector<1x128xf32> to vector<128x128xf32>
      %15 = arith.addf %12, %14 : vector<128x128xf32>
      %cst_14 = arith.constant 0.000000e+00 : f32
      %16 = vector.broadcast %cst_14 : f32 to vector<128x128xf32>
      %17 = arith.cmpf oge, %15, %16 : vector<128x128xf32>
      %cst_15 = arith.constant 2.000000e-01 : f32
      %18 = vector.broadcast %cst_15 : f32 to vector<128x128xf32>
      %19 = arith.mulf %15, %18 : vector<128x128xf32>
      %20 = arith.select %17, %15, %19 : vector<128x128xi1>, vector<128x128xf32>
      %c0_16 = arith.constant 0 : index
      %c0_17 = arith.constant 0 : index
      %21 = vector.load %arg6[%c0_16, %c0_17] : memref<128x128xf32, #tpu.memory_space<vmem>>, vector<128x128xf32>
      tpu.vector_store %arg6[%c0_16, %c0_17], %20 {strides = array<i32>} : memref<128x128xf32, #tpu.memory_space<vmem>>, vector<128x128xf32>,
    } else {
    }
    return
  }
  func.func @transform_0(%arg0: i32, %arg1: i32, %arg2: i32) -> (i32, i32) {
    %c0_i32 = arith.constant 0 : i32
    return %arg0, %arg2 : i32, i32
  }
  func.func @transform_1(%arg0: i32, %arg1: i32, %arg2: i32) -> (i32, i32) {
    %c0_i32 = arith.constant 0 : i32
    return %arg2, %arg1 : i32, i32
  }
  func.func @transform_2(%arg0: i32, %arg1: i32, %arg2: i32) -> (i32, i32) {
    %c0_i32 = arith.constant 0 : i32
    %c0_i32_0 = arith.constant 0 : i32
    return %c0_i32, %arg1 : i32, i32
  }
  func.func @transform_3(%arg0: i32, %arg1: i32, %arg2: i32) -> (i32, i32) {
    %c0_i32 = arith.constant 0 : i32
    return %arg0, %arg1 : i32, i32
  }
}

module attributes {stable_mosaic.version = 11 : i64} {
  func.func @_matmul_bias_act_kernel(%arg0: i32, %arg1: i32, %arg2: i32, %arg3: memref<32x512xbf16, #tpu.memory_space<vmem>>, %arg4: memref<512x128xbf16, #tpu.memory_space<vmem>>, %arg5: memref<1x128xf32, #tpu.memory_space<vmem>>, %arg6: memref<32x128xf32, #tpu.memory_space<vmem>>, %arg7: memref<32x128xf32, #tpu.memory_space<vmem>>) attributes {dimension_semantics = [#tpu.dimension_semantics<parallel>, #tpu.dimension_semantics<parallel>, #tpu.dimension_semantics<arbitrary>], iteration_bounds = array<i64: 1, 1, 2>, scalar_prefetch = 0 : i64, scratch_operands = 1 : i64, tpu.core_type = #tpu.core_type<tc>, window_params = [{transform_indices = @transform_0, window_bounds = array<i64: 32, 512>}, {transform_indices = @transform_1, window_bounds = array<i64: 512, 128>}, {transform_indices = @transform_2, window_bounds = array<i64: 1, 128>}, {transform_indices = @transform_3, window_bounds = array<i64: 32, 128>}]} {
    %c0_i32 = arith.constant 0 : i32
    %0 = arith.cmpi eq, %arg2, %c0_i32 : i32
    %1 = arith.extui %0 : i1 to i32
    %c0_i32_0 = arith.constant 0 : i32
    %2 = arith.cmpi ne, %1, %c0_i32_0 : i32
    scf.if %2 {
      %cst_9 = arith.constant 0.000000e+00 : f32
      %12 = vector.broadcast %cst_9 : f32 to vector<32x128xf32>
      %c0_10 = arith.constant 0 : index
      %c0_11 = arith.constant 0 : index
      %13 = vector.load %arg7[%c0_10, %c0_11] : memref<32x128xf32, #tpu.memory_space<vmem>>, vector<32x128xf32>
      tpu.vector_store %arg7[%c0_10, %c0_11], %12 {strides = array<i32>} : memref<32x128xf32, #tpu.memory_space<vmem>>, vector<32x128xf32>,
    } else {
    }
    %c0 = arith.constant 0 : index
    %c0_1 = arith.constant 0 : index
    %3 = vector.load %arg7[%c0, %c0_1] : memref<32x128xf32, #tpu.memory_space<vmem>>, vector<32x128xf32>
    %c0_2 = arith.constant 0 : index
    %c0_3 = arith.constant 0 : index
    %4 = vector.load %arg3[%c0_2, %c0_3] : memref<32x512xbf16, #tpu.memory_space<vmem>>, vector<32x512xbf16>
    %c0_4 = arith.constant 0 : index
    %c0_5 = arith.constant 0 : index
    %5 = vector.load %arg4[%c0_4, %c0_5] : memref<512x128xbf16, #tpu.memory_space<vmem>>, vector<512x128xbf16>
    %cst = arith.constant dense<0.000000e+00> : vector<32x128xf32>
    %6 = tpu.matmul %4, %5, %cst {dimension_numbers = #tpu.dot_dimension_numbers<[1], [0], [0], [1], [0, 0, 1, 1], [], []>} : vector<32x512xbf16>, vector<512x128xbf16>, vector<32x128xf32> -> vector<32x128xf32>
    %7 = arith.addf %3, %6 : vector<32x128xf32>
    %c0_6 = arith.constant 0 : index
    %c0_7 = arith.constant 0 : index
    %8 = vector.load %arg7[%c0_6, %c0_7] : memref<32x128xf32, #tpu.memory_space<vmem>>, vector<32x128xf32>
    tpu.vector_store %arg7[%c0_6, %c0_7], %7 {strides = array<i32>} : memref<32x128xf32, #tpu.memory_space<vmem>>, vector<32x128xf32>,
    %c1_i32 = arith.constant 1 : i32
    %9 = arith.cmpi eq, %arg2, %c1_i32 : i32
    %10 = arith.extui %9 : i1 to i32
    %c0_i32_8 = arith.constant 0 : i32
    %11 = arith.cmpi ne, %10, %c0_i32_8 : i32
    scf.if %11 {
      %c0_9 = arith.constant 0 : index
      %c0_10 = arith.constant 0 : index
      %12 = vector.load %arg7[%c0_9, %c0_10] : memref<32x128xf32, #tpu.memory_space<vmem>>, vector<32x128xf32>
      %c0_11 = arith.constant 0 : index
      %c0_12 = arith.constant 0 : index
      %13 = vector.load %arg5[%c0_11, %c0_12] : memref<1x128xf32, #tpu.memory_space<vmem>>, vector<1x128xf32>
      %14 = vector.broadcast %13 : vector<1x128xf32> to vector<32x128xf32>
      %15 = arith.addf %12, %14 : vector<32x128xf32>
      %cst_13 = arith.constant 0.000000e+00 : f32
      %16 = vector.broadcast %cst_13 : f32 to vector<32x128xf32>
      %17 = arith.cmpf oge, %15, %16 : vector<32x128xf32>
      %cst_14 = arith.constant 2.000000e-01 : f32
      %18 = vector.broadcast %cst_14 : f32 to vector<32x128xf32>
      %19 = arith.mulf %15, %18 : vector<32x128xf32>
      %20 = arith.select %17, %15, %19 : vector<32x128xi1>, vector<32x128xf32>
      %c0_15 = arith.constant 0 : index
      %c0_16 = arith.constant 0 : index
      %21 = vector.load %arg6[%c0_15, %c0_16] : memref<32x128xf32, #tpu.memory_space<vmem>>, vector<32x128xf32>
      tpu.vector_store %arg6[%c0_15, %c0_16], %20 {strides = array<i32>} : memref<32x128xf32, #tpu.memory_space<vmem>>, vector<32x128xf32>,
    } else {
    }
    return
  }
  func.func @transform_0(%arg0: i32, %arg1: i32, %arg2: i32) -> (i32, i32) {
    %c0_i32 = arith.constant 0 : i32
    return %arg0, %arg2 : i32, i32
  }
  func.func @transform_1(%arg0: i32, %arg1: i32, %arg2: i32) -> (i32, i32) {
    %c0_i32 = arith.constant 0 : i32
    return %arg2, %arg1 : i32, i32
  }
  func.func @transform_2(%arg0: i32, %arg1: i32, %arg2: i32) -> (i32, i32) {
    %c0_i32 = arith.constant 0 : i32
    %c0_i32_0 = arith.constant 0 : i32
    return %c0_i32, %arg1 : i32, i32
  }
  func.func @transform_3(%arg0: i32, %arg1: i32, %arg2: i32) -> (i32, i32) {
    %c0_i32 = arith.constant 0 : i32
    return %arg0, %arg1 : i32, i32
  }
}

module attributes {stable_mosaic.version = 11 : i64} {
  func.func @_matmul_bias_act_kernel(%arg0: i32, %arg1: i32, %arg2: i32, %arg3: memref<16x512xbf16, #tpu.memory_space<vmem>>, %arg4: memref<512x256xbf16, #tpu.memory_space<vmem>>, %arg5: memref<1x256xf32, #tpu.memory_space<vmem>>, %arg6: memref<16x256xf32, #tpu.memory_space<vmem>>, %arg7: memref<16x256xf32, #tpu.memory_space<vmem>>) attributes {dimension_semantics = [#tpu.dimension_semantics<parallel>, #tpu.dimension_semantics<parallel>, #tpu.dimension_semantics<arbitrary>], iteration_bounds = array<i64: 1, 1, 4>, scalar_prefetch = 0 : i64, scratch_operands = 1 : i64, tpu.core_type = #tpu.core_type<tc>, window_params = [{transform_indices = @transform_0, window_bounds = array<i64: 16, 512>}, {transform_indices = @transform_1, window_bounds = array<i64: 512, 256>}, {transform_indices = @transform_2, window_bounds = array<i64: 1, 256>}, {transform_indices = @transform_3, window_bounds = array<i64: 16, 256>}]} {
    %c0_i32 = arith.constant 0 : i32
    %0 = arith.cmpi eq, %arg2, %c0_i32 : i32
    %1 = arith.extui %0 : i1 to i32
    %c0_i32_0 = arith.constant 0 : i32
    %2 = arith.cmpi ne, %1, %c0_i32_0 : i32
    scf.if %2 {
      %cst_9 = arith.constant 0.000000e+00 : f32
      %12 = vector.broadcast %cst_9 : f32 to vector<16x256xf32>
      %c0_10 = arith.constant 0 : index
      %c0_11 = arith.constant 0 : index
      %13 = vector.load %arg7[%c0_10, %c0_11] : memref<16x256xf32, #tpu.memory_space<vmem>>, vector<16x256xf32>
      tpu.vector_store %arg7[%c0_10, %c0_11], %12 {strides = array<i32>} : memref<16x256xf32, #tpu.memory_space<vmem>>, vector<16x256xf32>,
    } else {
    }
    %c0 = arith.constant 0 : index
    %c0_1 = arith.constant 0 : index
    %3 = vector.load %arg7[%c0, %c0_1] : memref<16x256xf32, #tpu.memory_space<vmem>>, vector<16x256xf32>
    %c0_2 = arith.constant 0 : index
    %c0_3 = arith.constant 0 : index
    %4 = vector.load %arg3[%c0_2, %c0_3] : memref<16x512xbf16, #tpu.memory_space<vmem>>, vector<16x512xbf16>
    %c0_4 = arith.constant 0 : index
    %c0_5 = arith.constant 0 : index
    %5 = vector.load %arg4[%c0_4, %c0_5] : memref<512x256xbf16, #tpu.memory_space<vmem>>, vector<512x256xbf16>
    %cst = arith.constant dense<0.000000e+00> : vector<16x256xf32>
    %6 = tpu.matmul %4, %5, %cst {dimension_numbers = #tpu.dot_dimension_numbers<[1], [0], [0], [1], [0, 0, 1, 1], [], []>} : vector<16x512xbf16>, vector<512x256xbf16>, vector<16x256xf32> -> vector<16x256xf32>
    %7 = arith.addf %3, %6 : vector<16x256xf32>
    %c0_6 = arith.constant 0 : index
    %c0_7 = arith.constant 0 : index
    %8 = vector.load %arg7[%c0_6, %c0_7] : memref<16x256xf32, #tpu.memory_space<vmem>>, vector<16x256xf32>
    tpu.vector_store %arg7[%c0_6, %c0_7], %7 {strides = array<i32>} : memref<16x256xf32, #tpu.memory_space<vmem>>, vector<16x256xf32>,
    %c3_i32 = arith.constant 3 : i32
    %9 = arith.cmpi eq, %arg2, %c3_i32 : i32
    %10 = arith.extui %9 : i1 to i32
    %c0_i32_8 = arith.constant 0 : i32
    %11 = arith.cmpi ne, %10, %c0_i32_8 : i32
    scf.if %11 {
      %c0_9 = arith.constant 0 : index
      %c0_10 = arith.constant 0 : index
      %12 = vector.load %arg7[%c0_9, %c0_10] : memref<16x256xf32, #tpu.memory_space<vmem>>, vector<16x256xf32>
      %c0_11 = arith.constant 0 : index
      %c0_12 = arith.constant 0 : index
      %13 = vector.load %arg5[%c0_11, %c0_12] : memref<1x256xf32, #tpu.memory_space<vmem>>, vector<1x256xf32>
      %14 = vector.broadcast %13 : vector<1x256xf32> to vector<16x256xf32>
      %15 = arith.addf %12, %14 : vector<16x256xf32>
      %cst_13 = arith.constant 0.000000e+00 : f32
      %16 = vector.broadcast %cst_13 : f32 to vector<16x256xf32>
      %17 = arith.cmpf oge, %15, %16 : vector<16x256xf32>
      %cst_14 = arith.constant 2.000000e-01 : f32
      %18 = vector.broadcast %cst_14 : f32 to vector<16x256xf32>
      %19 = arith.mulf %15, %18 : vector<16x256xf32>
      %20 = arith.select %17, %15, %19 : vector<16x256xi1>, vector<16x256xf32>
      %c0_15 = arith.constant 0 : index
      %c0_16 = arith.constant 0 : index
      %21 = vector.load %arg6[%c0_15, %c0_16] : memref<16x256xf32, #tpu.memory_space<vmem>>, vector<16x256xf32>
      tpu.vector_store %arg6[%c0_15, %c0_16], %20 {strides = array<i32>} : memref<16x256xf32, #tpu.memory_space<vmem>>, vector<16x256xf32>,
    } else {
    }
    return
  }
  func.func @transform_0(%arg0: i32, %arg1: i32, %arg2: i32) -> (i32, i32) {
    %c0_i32 = arith.constant 0 : i32
    return %arg0, %arg2 : i32, i32
  }
  func.func @transform_1(%arg0: i32, %arg1: i32, %arg2: i32) -> (i32, i32) {
    %c0_i32 = arith.constant 0 : i32
    return %arg2, %arg1 : i32, i32
  }
  func.func @transform_2(%arg0: i32, %arg1: i32, %arg2: i32) -> (i32, i32) {
    %c0_i32 = arith.constant 0 : i32
    %c0_i32_0 = arith.constant 0 : i32
    return %c0_i32, %arg1 : i32, i32
  }
  func.func @transform_3(%arg0: i32, %arg1: i32, %arg2: i32) -> (i32, i32) {
    %c0_i32 = arith.constant 0 : i32
    return %arg0, %arg1 : i32, i32
  }
}

module attributes {stable_mosaic.version = 11 : i64} {
  func.func @_matmul_bias_act_kernel(%arg0: i32, %arg1: i32, %arg2: i32, %arg3: memref<32x384xbf16, #tpu.memory_space<vmem>>, %arg4: memref<384x128xbf16, #tpu.memory_space<vmem>>, %arg5: memref<1x128xf32, #tpu.memory_space<vmem>>, %arg6: memref<32x128xf32, #tpu.memory_space<vmem>>, %arg7: memref<32x128xf32, #tpu.memory_space<vmem>>) attributes {dimension_semantics = [#tpu.dimension_semantics<parallel>, #tpu.dimension_semantics<parallel>, #tpu.dimension_semantics<arbitrary>], iteration_bounds = array<i64: 1, 1, 6>, scalar_prefetch = 0 : i64, scratch_operands = 1 : i64, tpu.core_type = #tpu.core_type<tc>, window_params = [{transform_indices = @transform_0, window_bounds = array<i64: 32, 384>}, {transform_indices = @transform_1, window_bounds = array<i64: 384, 128>}, {transform_indices = @transform_2, window_bounds = array<i64: 1, 128>}, {transform_indices = @transform_3, window_bounds = array<i64: 32, 128>}]} {
    %c0_i32 = arith.constant 0 : i32
    %0 = arith.cmpi eq, %arg2, %c0_i32 : i32
    %1 = arith.extui %0 : i1 to i32
    %c0_i32_0 = arith.constant 0 : i32
    %2 = arith.cmpi ne, %1, %c0_i32_0 : i32
    scf.if %2 {
      %cst_9 = arith.constant 0.000000e+00 : f32
      %12 = vector.broadcast %cst_9 : f32 to vector<32x128xf32>
      %c0_10 = arith.constant 0 : index
      %c0_11 = arith.constant 0 : index
      %13 = vector.load %arg7[%c0_10, %c0_11] : memref<32x128xf32, #tpu.memory_space<vmem>>, vector<32x128xf32>
      tpu.vector_store %arg7[%c0_10, %c0_11], %12 {strides = array<i32>} : memref<32x128xf32, #tpu.memory_space<vmem>>, vector<32x128xf32>,
    } else {
    }
    %c0 = arith.constant 0 : index
    %c0_1 = arith.constant 0 : index
    %3 = vector.load %arg7[%c0, %c0_1] : memref<32x128xf32, #tpu.memory_space<vmem>>, vector<32x128xf32>
    %c0_2 = arith.constant 0 : index
    %c0_3 = arith.constant 0 : index
    %4 = vector.load %arg3[%c0_2, %c0_3] : memref<32x384xbf16, #tpu.memory_space<vmem>>, vector<32x384xbf16>
    %c0_4 = arith.constant 0 : index
    %c0_5 = arith.constant 0 : index
    %5 = vector.load %arg4[%c0_4, %c0_5] : memref<384x128xbf16, #tpu.memory_space<vmem>>, vector<384x128xbf16>
    %cst = arith.constant dense<0.000000e+00> : vector<32x128xf32>
    %6 = tpu.matmul %4, %5, %cst {dimension_numbers = #tpu.dot_dimension_numbers<[1], [0], [0], [1], [0, 0, 1, 1], [], []>} : vector<32x384xbf16>, vector<384x128xbf16>, vector<32x128xf32> -> vector<32x128xf32>
    %7 = arith.addf %3, %6 : vector<32x128xf32>
    %c0_6 = arith.constant 0 : index
    %c0_7 = arith.constant 0 : index
    %8 = vector.load %arg7[%c0_6, %c0_7] : memref<32x128xf32, #tpu.memory_space<vmem>>, vector<32x128xf32>
    tpu.vector_store %arg7[%c0_6, %c0_7], %7 {strides = array<i32>} : memref<32x128xf32, #tpu.memory_space<vmem>>, vector<32x128xf32>,
    %c5_i32 = arith.constant 5 : i32
    %9 = arith.cmpi eq, %arg2, %c5_i32 : i32
    %10 = arith.extui %9 : i1 to i32
    %c0_i32_8 = arith.constant 0 : i32
    %11 = arith.cmpi ne, %10, %c0_i32_8 : i32
    scf.if %11 {
      %c0_9 = arith.constant 0 : index
      %c0_10 = arith.constant 0 : index
      %12 = vector.load %arg7[%c0_9, %c0_10] : memref<32x128xf32, #tpu.memory_space<vmem>>, vector<32x128xf32>
      %c0_11 = arith.constant 0 : index
      %c0_12 = arith.constant 0 : index
      %13 = vector.load %arg5[%c0_11, %c0_12] : memref<1x128xf32, #tpu.memory_space<vmem>>, vector<1x128xf32>
      %14 = vector.broadcast %13 : vector<1x128xf32> to vector<32x128xf32>
      %15 = arith.addf %12, %14 : vector<32x128xf32>
      %cst_13 = arith.constant 0.000000e+00 : f32
      %16 = vector.broadcast %cst_13 : f32 to vector<32x128xf32>
      %17 = arith.cmpf oge, %15, %16 : vector<32x128xf32>
      %cst_14 = arith.constant 2.000000e-01 : f32
      %18 = vector.broadcast %cst_14 : f32 to vector<32x128xf32>
      %19 = arith.mulf %15, %18 : vector<32x128xf32>
      %20 = arith.select %17, %15, %19 : vector<32x128xi1>, vector<32x128xf32>
      %c0_15 = arith.constant 0 : index
      %c0_16 = arith.constant 0 : index
      %21 = vector.load %arg6[%c0_15, %c0_16] : memref<32x128xf32, #tpu.memory_space<vmem>>, vector<32x128xf32>
      tpu.vector_store %arg6[%c0_15, %c0_16], %20 {strides = array<i32>} : memref<32x128xf32, #tpu.memory_space<vmem>>, vector<32x128xf32>,
    } else {
    }
    return
  }
  func.func @transform_0(%arg0: i32, %arg1: i32, %arg2: i32) -> (i32, i32) {
    %c0_i32 = arith.constant 0 : i32
    return %arg0, %arg2 : i32, i32
  }
  func.func @transform_1(%arg0: i32, %arg1: i32, %arg2: i32) -> (i32, i32) {
    %c0_i32 = arith.constant 0 : i32
    return %arg2, %arg1 : i32, i32
  }
  func.func @transform_2(%arg0: i32, %arg1: i32, %arg2: i32) -> (i32, i32) {
    %c0_i32 = arith.constant 0 : i32
    %c0_i32_0 = arith.constant 0 : i32
    return %c0_i32, %arg1 : i32, i32
  }
  func.func @transform_3(%arg0: i32, %arg1: i32, %arg2: i32) -> (i32, i32) {
    %c0_i32 = arith.constant 0 : i32
    return %arg0, %arg1 : i32, i32
  }
}

module attributes {stable_mosaic.version = 11 : i64} {
  func.func @_matmul_bias_act_kernel(%arg0: i32, %arg1: i32, %arg2: i32, %arg3: memref<128x384xbf16, #tpu.memory_space<vmem>>, %arg4: memref<384x128xbf16, #tpu.memory_space<vmem>>, %arg5: memref<1x128xf32, #tpu.memory_space<vmem>>, %arg6: memref<128x128xf32, #tpu.memory_space<vmem>>, %arg7: memref<128x128xf32, #tpu.memory_space<vmem>>) attributes {dimension_semantics = [#tpu.dimension_semantics<parallel>, #tpu.dimension_semantics<parallel>, #tpu.dimension_semantics<arbitrary>], iteration_bounds = array<i64: 1, 1, 3>, scalar_prefetch = 0 : i64, scratch_operands = 1 : i64, tpu.core_type = #tpu.core_type<tc>, window_params = [{transform_indices = @transform_0, window_bounds = array<i64: 128, 384>}, {transform_indices = @transform_1, window_bounds = array<i64: 384, 128>}, {transform_indices = @transform_2, window_bounds = array<i64: 1, 128>}, {transform_indices = @transform_3, window_bounds = array<i64: 128, 128>}]} {
    %c0_i32 = arith.constant 0 : i32
    %0 = arith.cmpi eq, %arg2, %c0_i32 : i32
    %1 = arith.extui %0 : i1 to i32
    %c0_i32_0 = arith.constant 0 : i32
    %2 = arith.cmpi ne, %1, %c0_i32_0 : i32
    scf.if %2 {
      %cst_9 = arith.constant 0.000000e+00 : f32
      %12 = vector.broadcast %cst_9 : f32 to vector<128x128xf32>
      %c0_10 = arith.constant 0 : index
      %c0_11 = arith.constant 0 : index
      %13 = vector.load %arg7[%c0_10, %c0_11] : memref<128x128xf32, #tpu.memory_space<vmem>>, vector<128x128xf32>
      tpu.vector_store %arg7[%c0_10, %c0_11], %12 {strides = array<i32>} : memref<128x128xf32, #tpu.memory_space<vmem>>, vector<128x128xf32>,
    } else {
    }
    %c0 = arith.constant 0 : index
    %c0_1 = arith.constant 0 : index
    %3 = vector.load %arg7[%c0, %c0_1] : memref<128x128xf32, #tpu.memory_space<vmem>>, vector<128x128xf32>
    %c0_2 = arith.constant 0 : index
    %c0_3 = arith.constant 0 : index
    %4 = vector.load %arg3[%c0_2, %c0_3] : memref<128x384xbf16, #tpu.memory_space<vmem>>, vector<128x384xbf16>
    %c0_4 = arith.constant 0 : index
    %c0_5 = arith.constant 0 : index
    %5 = vector.load %arg4[%c0_4, %c0_5] : memref<384x128xbf16, #tpu.memory_space<vmem>>, vector<384x128xbf16>
    %cst = arith.constant dense<0.000000e+00> : vector<128x128xf32>
    %6 = tpu.matmul %4, %5, %cst {dimension_numbers = #tpu.dot_dimension_numbers<[1], [0], [0], [1], [0, 0, 1, 1], [], []>} : vector<128x384xbf16>, vector<384x128xbf16>, vector<128x128xf32> -> vector<128x128xf32>
    %7 = arith.addf %3, %6 : vector<128x128xf32>
    %c0_6 = arith.constant 0 : index
    %c0_7 = arith.constant 0 : index
    %8 = vector.load %arg7[%c0_6, %c0_7] : memref<128x128xf32, #tpu.memory_space<vmem>>, vector<128x128xf32>
    tpu.vector_store %arg7[%c0_6, %c0_7], %7 {strides = array<i32>} : memref<128x128xf32, #tpu.memory_space<vmem>>, vector<128x128xf32>,
    %c2_i32 = arith.constant 2 : i32
    %9 = arith.cmpi eq, %arg2, %c2_i32 : i32
    %10 = arith.extui %9 : i1 to i32
    %c0_i32_8 = arith.constant 0 : i32
    %11 = arith.cmpi ne, %10, %c0_i32_8 : i32
    scf.if %11 {
      %c0_9 = arith.constant 0 : index
      %c0_10 = arith.constant 0 : index
      %12 = vector.load %arg7[%c0_9, %c0_10] : memref<128x128xf32, #tpu.memory_space<vmem>>, vector<128x128xf32>
      %c0_11 = arith.constant 0 : index
      %c0_12 = arith.constant 0 : index
      %13 = vector.load %arg5[%c0_11, %c0_12] : memref<1x128xf32, #tpu.memory_space<vmem>>, vector<1x128xf32>
      %14 = vector.broadcast %13 : vector<1x128xf32> to vector<128x128xf32>
      %15 = arith.addf %12, %14 : vector<128x128xf32>
      %cst_13 = arith.constant 0.000000e+00 : f32
      %16 = vector.broadcast %cst_13 : f32 to vector<128x128xf32>
      %17 = arith.cmpf oge, %15, %16 : vector<128x128xf32>
      %cst_14 = arith.constant 2.000000e-01 : f32
      %18 = vector.broadcast %cst_14 : f32 to vector<128x128xf32>
      %19 = arith.mulf %15, %18 : vector<128x128xf32>
      %20 = arith.select %17, %15, %19 : vector<128x128xi1>, vector<128x128xf32>
      %c0_15 = arith.constant 0 : index
      %c0_16 = arith.constant 0 : index
      %21 = vector.load %arg6[%c0_15, %c0_16] : memref<128x128xf32, #tpu.memory_space<vmem>>, vector<128x128xf32>
      tpu.vector_store %arg6[%c0_15, %c0_16], %20 {strides = array<i32>} : memref<128x128xf32, #tpu.memory_space<vmem>>, vector<128x128xf32>,
    } else {
    }
    return
  }
  func.func @transform_0(%arg0: i32, %arg1: i32, %arg2: i32) -> (i32, i32) {
    %c0_i32 = arith.constant 0 : i32
    return %arg0, %arg2 : i32, i32
  }
  func.func @transform_1(%arg0: i32, %arg1: i32, %arg2: i32) -> (i32, i32) {
    %c0_i32 = arith.constant 0 : i32
    return %arg2, %arg1 : i32, i32
  }
  func.func @transform_2(%arg0: i32, %arg1: i32, %arg2: i32) -> (i32, i32) {
    %c0_i32 = arith.constant 0 : i32
    %c0_i32_0 = arith.constant 0 : i32
    return %c0_i32, %arg1 : i32, i32
  }
  func.func @transform_3(%arg0: i32, %arg1: i32, %arg2: i32) -> (i32, i32) {
    %c0_i32 = arith.constant 0 : i32
    return %arg0, %arg1 : i32, i32
  }
}

module attributes {stable_mosaic.version = 11 : i64} {
  func.func @_matmul_bias_act_kernel(%arg0: i32, %arg1: i32, %arg2: i32, %arg3: memref<256x128xbf16, #tpu.memory_space<vmem>>, %arg4: memref<128x128xbf16, #tpu.memory_space<vmem>>, %arg5: memref<1x128xf32, #tpu.memory_space<vmem>>, %arg6: memref<256x128xf32, #tpu.memory_space<vmem>>, %arg7: memref<256x128xf32, #tpu.memory_space<vmem>>) attributes {dimension_semantics = [#tpu.dimension_semantics<parallel>, #tpu.dimension_semantics<parallel>, #tpu.dimension_semantics<arbitrary>], iteration_bounds = array<i64: 2, 1, 5>, scalar_prefetch = 0 : i64, scratch_operands = 1 : i64, tpu.core_type = #tpu.core_type<tc>, window_params = [{transform_indices = @transform_0, window_bounds = array<i64: 256, 128>}, {transform_indices = @transform_1, window_bounds = array<i64: 128, 128>}, {transform_indices = @transform_2, window_bounds = array<i64: 1, 128>}, {transform_indices = @transform_3, window_bounds = array<i64: 256, 128>}]} {
    %c0_i32 = arith.constant 0 : i32
    %0 = arith.cmpi eq, %arg2, %c0_i32 : i32
    %1 = arith.extui %0 : i1 to i32
    %c0_i32_0 = arith.constant 0 : i32
    %2 = arith.cmpi ne, %1, %c0_i32_0 : i32
    scf.if %2 {
      %cst_9 = arith.constant 0.000000e+00 : f32
      %12 = vector.broadcast %cst_9 : f32 to vector<256x128xf32>
      %c0_10 = arith.constant 0 : index
      %c0_11 = arith.constant 0 : index
      %13 = vector.load %arg7[%c0_10, %c0_11] : memref<256x128xf32, #tpu.memory_space<vmem>>, vector<256x128xf32>
      tpu.vector_store %arg7[%c0_10, %c0_11], %12 {strides = array<i32>} : memref<256x128xf32, #tpu.memory_space<vmem>>, vector<256x128xf32>,
    } else {
    }
    %c0 = arith.constant 0 : index
    %c0_1 = arith.constant 0 : index
    %3 = vector.load %arg7[%c0, %c0_1] : memref<256x128xf32, #tpu.memory_space<vmem>>, vector<256x128xf32>
    %c0_2 = arith.constant 0 : index
    %c0_3 = arith.constant 0 : index
    %4 = vector.load %arg3[%c0_2, %c0_3] : memref<256x128xbf16, #tpu.memory_space<vmem>>, vector<256x128xbf16>
    %c0_4 = arith.constant 0 : index
    %c0_5 = arith.constant 0 : index
    %5 = vector.load %arg4[%c0_4, %c0_5] : memref<128x128xbf16, #tpu.memory_space<vmem>>, vector<128x128xbf16>
    %cst = arith.constant dense<0.000000e+00> : vector<256x128xf32>
    %6 = tpu.matmul %4, %5, %cst {dimension_numbers = #tpu.dot_dimension_numbers<[1], [0], [0], [1], [0, 0, 1, 1], [], []>} : vector<256x128xbf16>, vector<128x128xbf16>, vector<256x128xf32> -> vector<256x128xf32>
    %7 = arith.addf %3, %6 : vector<256x128xf32>
    %c0_6 = arith.constant 0 : index
    %c0_7 = arith.constant 0 : index
    %8 = vector.load %arg7[%c0_6, %c0_7] : memref<256x128xf32, #tpu.memory_space<vmem>>, vector<256x128xf32>
    tpu.vector_store %arg7[%c0_6, %c0_7], %7 {strides = array<i32>} : memref<256x128xf32, #tpu.memory_space<vmem>>, vector<256x128xf32>,
    %c4_i32 = arith.constant 4 : i32
    %9 = arith.cmpi eq, %arg2, %c4_i32 : i32
    %10 = arith.extui %9 : i1 to i32
    %c0_i32_8 = arith.constant 0 : i32
    %11 = arith.cmpi ne, %10, %c0_i32_8 : i32
    scf.if %11 {
      %c0_9 = arith.constant 0 : index
      %c0_10 = arith.constant 0 : index
      %12 = vector.load %arg7[%c0_9, %c0_10] : memref<256x128xf32, #tpu.memory_space<vmem>>, vector<256x128xf32>
      %c0_11 = arith.constant 0 : index
      %c0_12 = arith.constant 0 : index
      %13 = vector.load %arg5[%c0_11, %c0_12] : memref<1x128xf32, #tpu.memory_space<vmem>>, vector<1x128xf32>
      %14 = vector.broadcast %13 : vector<1x128xf32> to vector<256x128xf32>
      %15 = arith.addf %12, %14 : vector<256x128xf32>
      %cst_13 = arith.constant 0.000000e+00 : f32
      %16 = vector.broadcast %cst_13 : f32 to vector<256x128xf32>
      %17 = arith.cmpf oge, %15, %16 : vector<256x128xf32>
      %cst_14 = arith.constant 2.000000e-01 : f32
      %18 = vector.broadcast %cst_14 : f32 to vector<256x128xf32>
      %19 = arith.mulf %15, %18 : vector<256x128xf32>
      %20 = arith.select %17, %15, %19 : vector<256x128xi1>, vector<256x128xf32>
      %c0_15 = arith.constant 0 : index
      %c0_16 = arith.constant 0 : index
      %21 = vector.load %arg6[%c0_15, %c0_16] : memref<256x128xf32, #tpu.memory_space<vmem>>, vector<256x128xf32>
      tpu.vector_store %arg6[%c0_15, %c0_16], %20 {strides = array<i32>} : memref<256x128xf32, #tpu.memory_space<vmem>>, vector<256x128xf32>,
    } else {
    }
    return
  }
  func.func @transform_0(%arg0: i32, %arg1: i32, %arg2: i32) -> (i32, i32) {
    %c0_i32 = arith.constant 0 : i32
    return %arg0, %arg2 : i32, i32
  }
  func.func @transform_1(%arg0: i32, %arg1: i32, %arg2: i32) -> (i32, i32) {
    %c0_i32 = arith.constant 0 : i32
    return %arg2, %arg1 : i32, i32
  }
  func.func @transform_2(%arg0: i32, %arg1: i32, %arg2: i32) -> (i32, i32) {
    %c0_i32 = arith.constant 0 : i32
    %c0_i32_0 = arith.constant 0 : i32
    return %c0_i32, %arg1 : i32, i32
  }
  func.func @transform_3(%arg0: i32, %arg1: i32, %arg2: i32) -> (i32, i32) {
    %c0_i32 = arith.constant 0 : i32
    return %arg0, %arg1 : i32, i32
  }
}

module attributes {stable_mosaic.version = 11 : i64} {
  func.func @_matmul_bias_act_kernel(%arg0: i32, %arg1: i32, %arg2: i32, %arg3: memref<256x384xbf16, #tpu.memory_space<vmem>>, %arg4: memref<384x128xbf16, #tpu.memory_space<vmem>>, %arg5: memref<1x128xf32, #tpu.memory_space<vmem>>, %arg6: memref<256x128xf32, #tpu.memory_space<vmem>>, %arg7: memref<256x128xf32, #tpu.memory_space<vmem>>) attributes {dimension_semantics = [#tpu.dimension_semantics<parallel>, #tpu.dimension_semantics<parallel>, #tpu.dimension_semantics<arbitrary>], iteration_bounds = array<i64: 2, 1, 1>, scalar_prefetch = 0 : i64, scratch_operands = 1 : i64, tpu.core_type = #tpu.core_type<tc>, window_params = [{transform_indices = @transform_0, window_bounds = array<i64: 256, 384>}, {transform_indices = @transform_1, window_bounds = array<i64: 384, 128>}, {transform_indices = @transform_2, window_bounds = array<i64: 1, 128>}, {transform_indices = @transform_3, window_bounds = array<i64: 256, 128>}]} {
    %c0_i32 = arith.constant 0 : i32
    %0 = arith.cmpi eq, %arg2, %c0_i32 : i32
    %1 = arith.extui %0 : i1 to i32
    %c0_i32_0 = arith.constant 0 : i32
    %2 = arith.cmpi ne, %1, %c0_i32_0 : i32
    scf.if %2 {
      %cst_10 = arith.constant 0.000000e+00 : f32
      %12 = vector.broadcast %cst_10 : f32 to vector<256x128xf32>
      %c0_11 = arith.constant 0 : index
      %c0_12 = arith.constant 0 : index
      %13 = vector.load %arg7[%c0_11, %c0_12] : memref<256x128xf32, #tpu.memory_space<vmem>>, vector<256x128xf32>
      tpu.vector_store %arg7[%c0_11, %c0_12], %12 {strides = array<i32>} : memref<256x128xf32, #tpu.memory_space<vmem>>, vector<256x128xf32>,
    } else {
    }
    %c0 = arith.constant 0 : index
    %c0_1 = arith.constant 0 : index
    %3 = vector.load %arg7[%c0, %c0_1] : memref<256x128xf32, #tpu.memory_space<vmem>>, vector<256x128xf32>
    %c0_2 = arith.constant 0 : index
    %c0_3 = arith.constant 0 : index
    %4 = vector.load %arg3[%c0_2, %c0_3] : memref<256x384xbf16, #tpu.memory_space<vmem>>, vector<256x384xbf16>
    %c0_4 = arith.constant 0 : index
    %c0_5 = arith.constant 0 : index
    %5 = vector.load %arg4[%c0_4, %c0_5] : memref<384x128xbf16, #tpu.memory_space<vmem>>, vector<384x128xbf16>
    %cst = arith.constant dense<0.000000e+00> : vector<256x128xf32>
    %6 = tpu.matmul %4, %5, %cst {dimension_numbers = #tpu.dot_dimension_numbers<[1], [0], [0], [1], [0, 0, 1, 1], [], []>} : vector<256x384xbf16>, vector<384x128xbf16>, vector<256x128xf32> -> vector<256x128xf32>
    %7 = arith.addf %3, %6 : vector<256x128xf32>
    %c0_6 = arith.constant 0 : index
    %c0_7 = arith.constant 0 : index
    %8 = vector.load %arg7[%c0_6, %c0_7] : memref<256x128xf32, #tpu.memory_space<vmem>>, vector<256x128xf32>
    tpu.vector_store %arg7[%c0_6, %c0_7], %7 {strides = array<i32>} : memref<256x128xf32, #tpu.memory_space<vmem>>, vector<256x128xf32>,
    %c0_i32_8 = arith.constant 0 : i32
    %9 = arith.cmpi eq, %arg2, %c0_i32_8 : i32
    %10 = arith.extui %9 : i1 to i32
    %c0_i32_9 = arith.constant 0 : i32
    %11 = arith.cmpi ne, %10, %c0_i32_9 : i32
    scf.if %11 {
      %c0_10 = arith.constant 0 : index
      %c0_11 = arith.constant 0 : index
      %12 = vector.load %arg7[%c0_10, %c0_11] : memref<256x128xf32, #tpu.memory_space<vmem>>, vector<256x128xf32>
      %c0_12 = arith.constant 0 : index
      %c0_13 = arith.constant 0 : index
      %13 = vector.load %arg5[%c0_12, %c0_13] : memref<1x128xf32, #tpu.memory_space<vmem>>, vector<1x128xf32>
      %14 = vector.broadcast %13 : vector<1x128xf32> to vector<256x128xf32>
      %15 = arith.addf %12, %14 : vector<256x128xf32>
      %cst_14 = arith.constant 0.000000e+00 : f32
      %16 = vector.broadcast %cst_14 : f32 to vector<256x128xf32>
      %17 = arith.cmpf oge, %15, %16 : vector<256x128xf32>
      %cst_15 = arith.constant 2.000000e-01 : f32
      %18 = vector.broadcast %cst_15 : f32 to vector<256x128xf32>
      %19 = arith.mulf %15, %18 : vector<256x128xf32>
      %20 = arith.select %17, %15, %19 : vector<256x128xi1>, vector<256x128xf32>
      %c0_16 = arith.constant 0 : index
      %c0_17 = arith.constant 0 : index
      %21 = vector.load %arg6[%c0_16, %c0_17] : memref<256x128xf32, #tpu.memory_space<vmem>>, vector<256x128xf32>
      tpu.vector_store %arg6[%c0_16, %c0_17], %20 {strides = array<i32>} : memref<256x128xf32, #tpu.memory_space<vmem>>, vector<256x128xf32>,
    } else {
    }
    return
  }
  func.func @transform_0(%arg0: i32, %arg1: i32, %arg2: i32) -> (i32, i32) {
    %c0_i32 = arith.constant 0 : i32
    return %arg0, %arg2 : i32, i32
  }
  func.func @transform_1(%arg0: i32, %arg1: i32, %arg2: i32) -> (i32, i32) {
    %c0_i32 = arith.constant 0 : i32
    return %arg2, %arg1 : i32, i32
  }
  func.func @transform_2(%arg0: i32, %arg1: i32, %arg2: i32) -> (i32, i32) {
    %c0_i32 = arith.constant 0 : i32
    %c0_i32_0 = arith.constant 0 : i32
    return %c0_i32, %arg1 : i32, i32
  }
  func.func @transform_3(%arg0: i32, %arg1: i32, %arg2: i32) -> (i32, i32) {
    %c0_i32 = arith.constant 0 : i32
    return %arg0, %arg1 : i32, i32
  }
}

module attributes {stable_mosaic.version = 11 : i64} {
  func.func @_matmul_bias_act_kernel(%arg0: i32, %arg1: i32, %arg2: i32, %arg3: memref<256x384xbf16, #tpu.memory_space<vmem>>, %arg4: memref<384x128xbf16, #tpu.memory_space<vmem>>, %arg5: memref<1x128xf32, #tpu.memory_space<vmem>>, %arg6: memref<256x128xf32, #tpu.memory_space<vmem>>, %arg7: memref<256x128xf32, #tpu.memory_space<vmem>>) attributes {dimension_semantics = [#tpu.dimension_semantics<parallel>, #tpu.dimension_semantics<parallel>, #tpu.dimension_semantics<arbitrary>], iteration_bounds = array<i64: 2, 1, 1>, scalar_prefetch = 0 : i64, scratch_operands = 1 : i64, tpu.core_type = #tpu.core_type<tc>, window_params = [{transform_indices = @transform_0, window_bounds = array<i64: 256, 384>}, {transform_indices = @transform_1, window_bounds = array<i64: 384, 128>}, {transform_indices = @transform_2, window_bounds = array<i64: 1, 128>}, {transform_indices = @transform_3, window_bounds = array<i64: 256, 128>}]} {
    %c0_i32 = arith.constant 0 : i32
    %0 = arith.cmpi eq, %arg2, %c0_i32 : i32
    %1 = arith.extui %0 : i1 to i32
    %c0_i32_0 = arith.constant 0 : i32
    %2 = arith.cmpi ne, %1, %c0_i32_0 : i32
    scf.if %2 {
      %cst_10 = arith.constant 0.000000e+00 : f32
      %12 = vector.broadcast %cst_10 : f32 to vector<256x128xf32>
      %c0_11 = arith.constant 0 : index
      %c0_12 = arith.constant 0 : index
      %13 = vector.load %arg7[%c0_11, %c0_12] : memref<256x128xf32, #tpu.memory_space<vmem>>, vector<256x128xf32>
      tpu.vector_store %arg7[%c0_11, %c0_12], %12 {strides = array<i32>} : memref<256x128xf32, #tpu.memory_space<vmem>>, vector<256x128xf32>,
    } else {
    }
    %c0 = arith.constant 0 : index
    %c0_1 = arith.constant 0 : index
    %3 = vector.load %arg7[%c0, %c0_1] : memref<256x128xf32, #tpu.memory_space<vmem>>, vector<256x128xf32>
    %c0_2 = arith.constant 0 : index
    %c0_3 = arith.constant 0 : index
    %4 = vector.load %arg3[%c0_2, %c0_3] : memref<256x384xbf16, #tpu.memory_space<vmem>>, vector<256x384xbf16>
    %c0_4 = arith.constant 0 : index
    %c0_5 = arith.constant 0 : index
    %5 = vector.load %arg4[%c0_4, %c0_5] : memref<384x128xbf16, #tpu.memory_space<vmem>>, vector<384x128xbf16>
    %cst = arith.constant dense<0.000000e+00> : vector<256x128xf32>
    %6 = tpu.matmul %4, %5, %cst {dimension_numbers = #tpu.dot_dimension_numbers<[1], [0], [0], [1], [0, 0, 1, 1], [], []>} : vector<256x384xbf16>, vector<384x128xbf16>, vector<256x128xf32> -> vector<256x128xf32>
    %7 = arith.addf %3, %6 : vector<256x128xf32>
    %c0_6 = arith.constant 0 : index
    %c0_7 = arith.constant 0 : index
    %8 = vector.load %arg7[%c0_6, %c0_7] : memref<256x128xf32, #tpu.memory_space<vmem>>, vector<256x128xf32>
    tpu.vector_store %arg7[%c0_6, %c0_7], %7 {strides = array<i32>} : memref<256x128xf32, #tpu.memory_space<vmem>>, vector<256x128xf32>,
    %c0_i32_8 = arith.constant 0 : i32
    %9 = arith.cmpi eq, %arg2, %c0_i32_8 : i32
    %10 = arith.extui %9 : i1 to i32
    %c0_i32_9 = arith.constant 0 : i32
    %11 = arith.cmpi ne, %10, %c0_i32_9 : i32
    scf.if %11 {
      %c0_10 = arith.constant 0 : index
      %c0_11 = arith.constant 0 : index
      %12 = vector.load %arg7[%c0_10, %c0_11] : memref<256x128xf32, #tpu.memory_space<vmem>>, vector<256x128xf32>
      %c0_12 = arith.constant 0 : index
      %c0_13 = arith.constant 0 : index
      %13 = vector.load %arg5[%c0_12, %c0_13] : memref<1x128xf32, #tpu.memory_space<vmem>>, vector<1x128xf32>
      %14 = vector.broadcast %13 : vector<1x128xf32> to vector<256x128xf32>
      %15 = arith.addf %12, %14 : vector<256x128xf32>
      %c0_14 = arith.constant 0 : index
      %c0_15 = arith.constant 0 : index
      %16 = vector.load %arg6[%c0_14, %c0_15] : memref<256x128xf32, #tpu.memory_space<vmem>>, vector<256x128xf32>
      tpu.vector_store %arg6[%c0_14, %c0_15], %15 {strides = array<i32>} : memref<256x128xf32, #tpu.memory_space<vmem>>, vector<256x128xf32>,
    } else {
    }
    return
  }
  func.func @transform_0(%arg0: i32, %arg1: i32, %arg2: i32) -> (i32, i32) {
    %c0_i32 = arith.constant 0 : i32
    return %arg0, %arg2 : i32, i32
  }
  func.func @transform_1(%arg0: i32, %arg1: i32, %arg2: i32) -> (i32, i32) {
    %c0_i32 = arith.constant 0 : i32
    return %arg2, %arg1 : i32, i32
  }
  func.func @transform_2(%arg0: i32, %arg1: i32, %arg2: i32) -> (i32, i32) {
    %c0_i32 = arith.constant 0 : i32
    %c0_i32_0 = arith.constant 0 : i32
    return %c0_i32, %arg1 : i32, i32
  }
  func.func @transform_3(%arg0: i32, %arg1: i32, %arg2: i32) -> (i32, i32) {
    %c0_i32 = arith.constant 0 : i32
    return %arg0, %arg1 : i32, i32
  }
}

</mosaic_0001>

<bundles_post_ra>
// kernel: _lambda_.10
= control target key start
LH: loop header
LB: loop body
LE: loop exit
PB: predicated region body
PF: predicated region fallthrough
CT: control target
= control target key end

     0   :  { %s1276_s12 = smov 0   ;;  %s1278_s13 = smov 0   ;;  %s1426_s0 = inlined_call_operand.vmem [shape: bf16[512,128], index: 0, kind: input, shape index: {}]   ;;  %s1427_s1 = inlined_call_operand.vmem [shape: bf16[128,128], index: 1, kind: input, shape index: {}]   ;;  %s1428_s2 = inlined_call_operand.vmem [shape: f32[1,128], index: 2, kind: input, shape index: {}]   ;;  %s1429_s3 = inlined_call_operand.vmem [shape: f32[512,128], index: 3, kind: output, shape index: {}]  }
   0x1   :  { %s1280_s14 = smov 0  }
   0x2 LB: > { %s32_s15 = sadd.s32 1, %s1250_s13  ;;  %p1064_p0 = scmp.ge.s32.totalorder %s1254_s14, 1  ;;  %s1254_s14 = sphi %s1280_s14, %s13_s14   ;;  %s1250_s13 = sphi %s1278_s13, %s1431_s13   ;;  %s1246_s12 = sphi %s1276_s12, %s1430_s12  }
   0x3   : > { %p34_p1 = scmp.ge.s32.totalorder %s32_s15, 2  ;;  %p188_p2 = scmp.lt.s32.totalorder %s1254_s14, 3 }
   0x5   : > { %s1433_s15 = smov (%p34_p1, %s32_s15), 0  ;;  %p189_p3 = pnand %p1064_p0, %p188_p2 }
   0x6   : > { %v1208_v0 = vld [vmem:[%s1427_s1] sm:$0xff] (!%p189_p3)   ;;  %s1065_s18 = sshll.u32 (!%p189_p3), %s1246_s12, 5  ;;  %v1209_v1 = vld [vmem:[%s1427_s1 + $0x8] sm:$0xff] (!%p189_p3)   ;;  %v1210_v2 = vld [vmem:[%s1427_s1 + $0x10] sm:$0xff] (!%p189_p3)  }
   0x7   : > { %192 = sbr.rel (%p189_p3) target bundleno = 288 (0x120), region = 32  ;;  %p230_p4 = scmp.lt.s32.totalorder (!%p189_p3), %s1065_s18, 63  ;;  %1120 = vmatprep.subr.bf16.mxu0 (!%p189_p3), %v1208_v0  ;;  %1168 = vmatprep.subr.bf16.mxu1 (!%p189_p3), %v1208_v0  ;;  %v1211_v3 = vld [vmem:[%s1427_s1 + $0x18] sm:$0xff] (!%p189_p3)   ;;  %v1212_v6 = vld [vmem:[%s1427_s1 + $0x20] sm:$0xff] (!%p189_p3)   ;;  %v1213_v7 = vld [vmem:[%s1427_s1 + $0x28] sm:$0xff] (!%p189_p3)  }
   0x8   : > { %1121 = vmatpush3.bf16.msra.mxu0 (!%p189_p3), %v1208_v0  ;;  %1176 = vmatpush3.bf16.msra.mxu1 (!%p189_p3), %v1208_v0  ;;  %v1214_v8 = vld [vmem:[%s1427_s1 + $0x30] sm:$0xff] (!%p189_p3)   ;;  %v1215_v9 = vld [vmem:[%s1427_s1 + $0x38] sm:$0xff] (!%p189_p3)   ;;  %v1345_v24 = vld [vmem:[%s1428_s2] ss:$0 sm:$0xff] (!%p189_p3) }
   0x9   : > { %1122 = vmatprep.subr.bf16.mxu0 (!%p189_p3), %v1209_v1  ;;  %1169 = vmatprep.subr.bf16.mxu1 (!%p189_p3), %v1209_v1 }
   0xc   : > { %1123 = vmatpush3.bf16.msra.mxu0 (!%p189_p3), %v1209_v1  ;;  %1177 = vmatpush3.bf16.msra.mxu1 (!%p189_p3), %v1209_v1 }
   0xd   : > { %1124 = vmatprep.subr.bf16.mxu0 (!%p189_p3), %v1210_v2  ;;  %1170 = vmatprep.subr.bf16.mxu1 (!%p189_p3), %v1210_v2 }
   0xe   : > { %s1435_s18 = smov (!%p230_p4, %s1065_s18), 63 }
   0xf   : > { %s1066_s23 = sshll.u32 %s1435_s18, 2  ;;  %s1068_s12 = sshll.u32 %s1435_s18, 3 }
  0x10   : > { %s1309_s26 = scalar_lea.vmem %s1426_s0, %s1066_s23  ;;  %1125 = vmatpush3.bf16.msra.mxu0 %v1210_v2  ;;  %1178 = vmatpush3.bf16.msra.mxu1 %v1210_v2  ;;  %s1355_s19 = scalar_lea.vmem %s1429_s3, %s1068_s12 }
  0x11   : > { %v1216_v4 = vld [vmem:[%s1309_s26] sm:$0xff]   ;;  %1126 = vmatprep.subr.bf16.mxu0 %v1211_v3  ;;  %1171 = vmatprep.subr.bf16.mxu1 %v1211_v3  ;;  %v1218_v10 = vld [vmem:[%s1309_s26 + $0x8] sm:$0xff]   ;;  %v1220_v12 = vld [vmem:[%s1309_s26 + $0x10] sm:$0xff]  }
  0x12   : > { %v1217_v5 = vld [vmem:[%s1309_s26 + $0x40] sm:$0xff]   ;;  %1136 = vmatprep.mubr.bf16.mxu0 %v1216_v4  ;;  %v1219_v11 = vld [vmem:[%s1309_s26 + $0x48] sm:$0xff]   ;;  %v1221_v13 = vld [vmem:[%s1309_s26 + $0x50] sm:$0xff]  }
  0x13   : > { %1152 = vmatprep.mubr.bf16.mxu1 %v1217_v5  ;;  %v1222_v14 = vld [vmem:[%s1309_s26 + $0x18] sm:$0xff]   ;;  %v1224_v16 = vld [vmem:[%s1309_s26 + $0x20] sm:$0xff]   ;;  %v1226_v18 = vld [vmem:[%s1309_s26 + $0x28] sm:$0xff]  }
  0x14   : > { %1127 = vmatpush3.bf16.msra.mxu0 %v1211_v3  ;;  %1179 = vmatpush3.bf16.msra.mxu1 %v1211_v3  ;;  %v1223_v15 = vld [vmem:[%s1309_s26 + $0x58] sm:$0xff]   ;;  %v1225_v17 = vld [vmem:[%s1309_s26 + $0x60] sm:$0xff]   ;;  %v1227_v19 = vld [vmem:[%s1309_s26 + $0x68] sm:$0xff]  }
  0x15   : > { %1128 = vmatprep.subr.bf16.mxu0 %v1212_v6  ;;  %1172 = vmatprep.subr.bf16.mxu1 %v1212_v6  ;;  %v1228_v20 = vld [vmem:[%s1309_s26 + $0x30] sm:$0xff]   ;;  %v1230_v22 = vld [vmem:[%s1309_s26 + $0x38] sm:$0xff]  }
  0x16   : > { %v1229_v21 = vld [vmem:[%s1309_s26 + $0x70] sm:$0xff]   ;;  %v1231_v23 = vld [vmem:[%s1309_s26 + $0x78] sm:$0xff]  }
  0x18   : > { %1129 = vmatpush3.bf16.msra.mxu0 %v1212_v6  ;;  %1180 = vmatpush3.bf16.msra.mxu1 %v1212_v6 }
  0x19   : > { %1130 = vmatprep.subr.bf16.mxu0 %v1213_v7  ;;  %1173 = vmatprep.subr.bf16.mxu1 %v1213_v7 }
  0x1c   : > { %1131 = vmatpush3.bf16.msra.mxu0 %v1213_v7  ;;  %1181 = vmatpush3.bf16.msra.mxu1 %v1213_v7 }
  0x1d   : > { %1132 = vmatprep.subr.bf16.mxu0 %v1214_v8  ;;  %1174 = vmatprep.subr.bf16.mxu1 %v1214_v8 }
  0x20   : > { %1133 = vmatpush3.bf16.msra.mxu0 %v1214_v8  ;;  %1182 = vmatpush3.bf16.msra.mxu1 %v1214_v8 }
  0x21   : > { %1134 = vmatprep.subr.bf16.mxu0 %v1215_v9  ;;  %1175 = vmatprep.subr.bf16.mxu1 %v1215_v9 }
  0x24   : > { %1135 = vmatpush3.bf16.msra.mxu0 %v1215_v9  ;;  %1183 = vmatpush3.bf16.msra.mxu1 %v1215_v9 }
  0x27   : > { %1137 = vmatmul.mubr.bf16.vlgmr.msra.gmra.mrb[0].mxu0 %v1218_v10  ;;  %1153 = vmatmul.mubr.bf16.vlgmr.msra.gmra.mrb[0].mxu1 %v1219_v11 }
  0x28   : > { %1140 = vmatprep.mubr.bf16.mxu0 %v1220_v12  ;;  %1156 = vmatprep.mubr.bf16.mxu1 %v1221_v13 }
  0x2f   : > { %1141 = vmatmul.mubr.bf16.gmra.mrb[4].mxu0 %v1222_v14  ;;  %1157 = vmatmul.mubr.bf16.gmra.mrb[4].mxu1 %v1223_v15 }
  0x30   : > { %1144 = vmatprep.mubr.bf16.mxu0 %v1224_v16  ;;  %1160 = vmatprep.mubr.bf16.mxu1 %v1225_v17 }
  0x37   : > { %1145 = vmatmul.mubr.bf16.gmra.mrb[8].mxu0 %v1226_v18  ;;  %1161 = vmatmul.mubr.bf16.gmra.mrb[8].mxu1 %v1227_v19 }
  0x38   : > { %1148 = vmatprep.mubr.bf16.mxu0 %v1228_v20  ;;  %1164 = vmatprep.mubr.bf16.mxu1 %v1229_v21 }
  0x3f   : > { %1149 = vmatmul.mubr.bf16.gmra.mrb[12].mxu0 %v1230_v22  ;;  %1165 = vmatmul.mubr.bf16.gmra.mrb[12].mxu1 %v1231_v23 }
  0xfa   : > { %v1138_v25 = vpop.f32.mrb[0].mxu0  ;;  %v1154_v26 = vpop.f32.mrb[0].mxu1 }
  0xfb   : > { %v789_v27 = vadd.f32 %v1138_v25, %v1345_v24  ;;  %v805_v28 = vadd.f32 %v1154_v26, %v1345_v24  ;;  %v554_v29 = vpop.f32.mrb[1].mxu0  ;;  %v618_v30 = vpop.f32.mrb[1].mxu1 }
  0xfc   : > { %v787_v31 = vadd.f32 %v1345_v24, %v554_v29  ;;  %v803_v32 = vadd.f32 %v1345_v24, %v618_v30  ;;  %v1139_v33 = vpop.f32.mrb[2].mxu0  ;;  %v1155_v34 = vpop.f32.mrb[2].mxu1 }
  0xfd   : > { %vm821_vm0 = vcmp.ge.f32.partialorder %v789_v27, 0.0  ;;  %v853_v35 = vmul.f32 0.2, %v789_v27  ;;  %vm837_vm1 = vcmp.ge.f32.partialorder %v805_v28, 0.0  ;;  %v869_v36 = vmul.f32 0.2, %v805_v28 }
  0xfe   : > { %vm819_vm2 = vcmp.ge.f32.partialorder %v787_v31, 0.0  ;;  %v851_v37 = vmul.f32 0.2, %v787_v31  ;;  %vm835_vm3 = vcmp.ge.f32.partialorder %v803_v32, 0.0  ;;  %v867_v38 = vmul.f32 0.2, %v803_v32 }
  0xff   : > { %v885_v39 = vsel %vm821_vm0, %v789_v27, %v853_v35  ;;  %v901_v40 = vsel %vm837_vm1, %v805_v28, %v869_v36  ;;  %v790_v41 = vadd.f32 %v1139_v33, %v1345_v24  ;;  %v806_v42 = vadd.f32 %v1155_v34, %v1345_v24  ;;  %v557_v43 = vpop.f32.mrb[3].mxu0  ;;  %v621_v44 = vpop.f32.mrb[3].mxu1 }
 0x100   : > { %917 = vst [vmem:[%s1355_s19 + $0x10] sm:$0xff] %v885_v39  ;;  %933 = vst [vmem:[%s1355_s19 + $0x90] sm:$0xff] %v901_v40  ;;  %v883_v45 = vsel %vm819_vm2, %v787_v31, %v851_v37  ;;  %v899_v46 = vsel %vm835_vm3, %v803_v32, %v867_v38  ;;  %v788_v47 = vadd.f32 %v1345_v24, %v557_v43 }
 0x101   : > { %v804_v48 = vadd.f32 %v1345_v24, %v621_v44  ;;  %915 = vst [vmem:[%s1355_s19] sm:$0xff] %v883_v45  ;;  %931 = vst [vmem:[%s1355_s19 + $0x80] sm:$0xff] %v899_v46  ;;  %vm822_vm4 = vcmp.ge.f32.partialorder %v790_v41, 0.0  ;;  %v854_v49 = vmul.f32 0.2, %v790_v41  ;;  %vm838_vm5 = vcmp.ge.f32.partialorder %v806_v42, 0.0 }
 0x102   : > { %v870_v50 = vmul.f32 0.2, %v806_v42  ;;  %vm820_vm6 = vcmp.ge.f32.partialorder %v788_v47, 0.0  ;;  %v852_v51 = vmul.f32 0.2, %v788_v47  ;;  %v1142_v55 = vpop.f32.mrb[4].mxu0 }
 0x103   : > { %vm836_vm7 = vcmp.ge.f32.partialorder %v804_v48, 0.0  ;;  %v868_v52 = vmul.f32 0.2, %v804_v48  ;;  %v886_v53 = vsel %vm822_vm4, %v790_v41, %v854_v49  ;;  %v1158_v56 = vpop.f32.mrb[4].mxu1  ;;  %v793_v59 = vadd.f32 %v1142_v55, %v1345_v24  ;;  %v570_v61 = vpop.f32.mrb[5].mxu0 }
 0x104   : > { %v902_v54 = vsel %vm838_vm5, %v806_v42, %v870_v50  ;;  %918 = vst [vmem:[%s1355_s19 + $0x18] sm:$0xff] %v886_v53  ;;  %v884_v57 = vsel %vm820_vm6, %v788_v47, %v852_v51  ;;  %v809_v60 = vadd.f32 %v1158_v56, %v1345_v24  ;;  %v634_v62 = vpop.f32.mrb[5].mxu1  ;;  %v791_v63 = vadd.f32 %v1345_v24, %v570_v61  ;;  %v1143_v1 = vpop.f32.mrb[6].mxu0 }
 0x105   : > { %934 = vst [vmem:[%s1355_s19 + $0x98] sm:$0xff] %v902_v54  ;;  %v900_v58 = vsel %vm836_vm7, %v804_v48, %v868_v52  ;;  %916 = vst [vmem:[%s1355_s19 + $0x8] sm:$0xff] %v884_v57  ;;  %v807_v0 = vadd.f32 %v1345_v24, %v634_v62  ;;  %v1159_v2 = vpop.f32.mrb[6].mxu1  ;;  %vm825_vm8 = vcmp.ge.f32.partialorder %v793_v59, 0.0  ;;  %v857_v3 = vmul.f32 0.2, %v793_v59 }
 0x106   : > { %932 = vst [vmem:[%s1355_s19 + $0x88] sm:$0xff] %v900_v58  ;;  %vm841_vm9 = vcmp.ge.f32.partialorder %v809_v60, 0.0  ;;  %v873_v4 = vmul.f32 0.2, %v809_v60  ;;  %vm823_vm10 = vcmp.ge.f32.partialorder %v791_v63, 0.0  ;;  %v794_v9 = vadd.f32 %v1143_v1, %v1345_v24  ;;  %v573_v11 = vpop.f32.mrb[7].mxu0 }
 0x107   : > { %v855_v5 = vmul.f32 0.2, %v791_v63  ;;  %vm839_vm11 = vcmp.ge.f32.partialorder %v807_v0, 0.0  ;;  %v871_v6 = vmul.f32 0.2, %v807_v0  ;;  %v889_v7 = vsel %vm825_vm8, %v793_v59, %v857_v3  ;;  %v637_v12 = vpop.f32.mrb[7].mxu1 }
 0x108   : > { %v905_v8 = vsel %vm841_vm9, %v809_v60, %v873_v4  ;;  %v810_v10 = vadd.f32 %v1159_v2, %v1345_v24  ;;  %921 = vst [vmem:[%s1355_s19 + $0x30] sm:$0xff] %v889_v7  ;;  %v792_v15 = vadd.f32 %v1345_v24, %v573_v11  ;;  %v808_v16 = vadd.f32 %v1345_v24, %v637_v12 }
 0x109   : > { %937 = vst [vmem:[%s1355_s19 + $0xb0] sm:$0xff] %v905_v8  ;;  %v887_v13 = vsel %vm823_vm10, %v791_v63, %v855_v5  ;;  %v903_v14 = vsel %vm839_vm11, %v807_v0, %v871_v6  ;;  %vm826_vm12 = vcmp.ge.f32.partialorder %v794_v9, 0.0  ;;  %v858_v17 = vmul.f32 0.2, %v794_v9 }
 0x10a   : > { %919 = vst [vmem:[%s1355_s19 + $0x20] sm:$0xff] %v887_v13  ;;  %935 = vst [vmem:[%s1355_s19 + $0xa0] sm:$0xff] %v903_v14  ;;  %vm842_vm13 = vcmp.ge.f32.partialorder %v810_v10, 0.0  ;;  %v874_v18 = vmul.f32 0.2, %v810_v10  ;;  %vm824_vm14 = vcmp.ge.f32.partialorder %v792_v15, 0.0 }
 0x10b   : > { %v856_v19 = vmul.f32 0.2, %v792_v15  ;;  %vm840_vm15 = vcmp.ge.f32.partialorder %v808_v16, 0.0  ;;  %v872_v20 = vmul.f32 0.2, %v808_v16  ;;  %v890_v21 = vsel %vm826_vm12, %v794_v9, %v858_v17  ;;  %v1146_v23 = vpop.f32.mrb[8].mxu0 }
 0x10c   : > { %v906_v22 = vsel %vm842_vm13, %v810_v10, %v874_v18  ;;  %v1162_v25 = vpop.f32.mrb[8].mxu1  ;;  %922 = vst [vmem:[%s1355_s19 + $0x38] sm:$0xff] %v890_v21  ;;  %v797_v28 = vadd.f32 %v1146_v23, %v1345_v24  ;;  %v586_v30 = vpop.f32.mrb[9].mxu0 }
 0x10d   : > { %938 = vst [vmem:[%s1355_s19 + $0xb8] sm:$0xff] %v906_v22  ;;  %v888_v26 = vsel %vm824_vm14, %v792_v15, %v856_v19  ;;  %v904_v27 = vsel %vm840_vm15, %v808_v16, %v872_v20  ;;  %v813_v29 = vadd.f32 %v1162_v25, %v1345_v24  ;;  %v650_v31 = vpop.f32.mrb[9].mxu1  ;;  %v795_v32 = vadd.f32 %v1345_v24, %v586_v30  ;;  %v1147_v34 = vpop.f32.mrb[10].mxu0 }
 0x10e   : > { %920 = vst [vmem:[%s1355_s19 + $0x28] sm:$0xff] %v888_v26  ;;  %936 = vst [vmem:[%s1355_s19 + $0xa8] sm:$0xff] %v904_v27  ;;  %v811_v33 = vadd.f32 %v1345_v24, %v650_v31  ;;  %v1163_v35 = vpop.f32.mrb[10].mxu1  ;;  %vm829_vm0 = vcmp.ge.f32.partialorder %v797_v28, 0.0  ;;  %v861_v36 = vmul.f32 0.2, %v797_v28  ;;  %v798_v42 = vadd.f32 %v1147_v34, %v1345_v24 }
 0x10f   : > { %vm845_vm1 = vcmp.ge.f32.partialorder %v813_v29, 0.0  ;;  %v877_v37 = vmul.f32 0.2, %v813_v29  ;;  %vm827_vm2 = vcmp.ge.f32.partialorder %v795_v32, 0.0  ;;  %v859_v38 = vmul.f32 0.2, %v795_v32 }
 0x110   : > { %vm843_vm3 = vcmp.ge.f32.partialorder %v811_v33, 0.0  ;;  %v875_v39 = vmul.f32 0.2, %v811_v33  ;;  %v893_v40 = vsel %vm829_vm0, %v797_v28, %v861_v36  ;;  %v814_v43 = vadd.f32 %v1163_v35, %v1345_v24  ;;  %v589_v44 = vpop.f32.mrb[11].mxu0  ;;  %v653_v45 = vpop.f32.mrb[11].mxu1 }
 0x111   : > { %v909_v41 = vsel %vm845_vm1, %v813_v29, %v877_v37  ;;  %925 = vst [vmem:[%s1355_s19 + $0x50] sm:$0xff] %v893_v40  ;;  %v891_v46 = vsel %vm827_vm2, %v795_v32, %v859_v38  ;;  %v796_v48 = vadd.f32 %v1345_v24, %v589_v44  ;;  %v812_v49 = vadd.f32 %v1345_v24, %v653_v45 }
 0x112   : > { %941 = vst [vmem:[%s1355_s19 + $0xd0] sm:$0xff] %v909_v41  ;;  %v907_v47 = vsel %vm843_vm3, %v811_v33, %v875_v39  ;;  %v1150_v50 = vpop.f32.mrb[12].mxu0  ;;  %v1166_v51 = vpop.f32.mrb[12].mxu1  ;;  %923 = vst [vmem:[%s1355_s19 + $0x40] sm:$0xff] %v891_v46  ;;  %vm830_vm4 = vcmp.ge.f32.partialorder %v798_v42, 0.0  ;;  %vm846_vm5 = vcmp.ge.f32.partialorder %v814_v43, 0.0 }
 0x113   : > { %939 = vst [vmem:[%s1355_s19 + $0xc0] sm:$0xff] %v907_v47  ;;  %v862_v52 = vmul.f32 0.2, %v798_v42  ;;  %v878_v53 = vmul.f32 0.2, %v814_v43  ;;  %vm828_vm6 = vcmp.ge.f32.partialorder %v796_v48, 0.0  ;;  %v801_v58 = vadd.f32 %v1150_v50, %v1345_v24 }
 0x114   : > { %v860_v54 = vmul.f32 0.2, %v796_v48  ;;  %vm844_vm7 = vcmp.ge.f32.partialorder %v812_v49, 0.0  ;;  %v876_v55 = vmul.f32 0.2, %v812_v49  ;;  %v817_v59 = vadd.f32 %v1166_v51, %v1345_v24  ;;  %v602_v60 = vpop.f32.mrb[13].mxu0 }
 0x115   : > { %v894_v56 = vsel %vm830_vm4, %v798_v42, %v862_v52  ;;  %v910_v57 = vsel %vm846_vm5, %v814_v43, %v878_v53  ;;  %v666_v61 = vpop.f32.mrb[13].mxu1  ;;  %v799_v0 = vadd.f32 %v1345_v24, %v602_v60  ;;  %v1151_v2 = vpop.f32.mrb[14].mxu0  ;;  %vm833_vm8 = vcmp.ge.f32.partialorder %v801_v58, 0.0 }
 0x116   : > { %926 = vst [vmem:[%s1355_s19 + $0x58] sm:$0xff] %v894_v56  ;;  %942 = vst [vmem:[%s1355_s19 + $0xd8] sm:$0xff] %v910_v57  ;;  %v892_v62 = vsel %vm828_vm6, %v796_v48, %v860_v54  ;;  %v908_v63 = vsel %vm844_vm7, %v812_v49, %v876_v55  ;;  %v815_v1 = vadd.f32 %v1345_v24, %v666_v61  ;;  %v1167_v3 = vpop.f32.mrb[14].mxu1  ;;  %v865_v4 = vmul.f32 0.2, %v801_v58  ;;  %v605_v12 = vpop.f32.mrb[15].mxu0 }
 0x117   : > { %924 = vst [vmem:[%s1355_s19 + $0x48] sm:$0xff] %v892_v62  ;;  %940 = vst [vmem:[%s1355_s19 + $0xc8] sm:$0xff] %v908_v63  ;;  %vm849_vm9 = vcmp.ge.f32.partialorder %v817_v59, 0.0  ;;  %v881_v5 = vmul.f32 0.2, %v817_v59  ;;  %vm831_vm10 = vcmp.ge.f32.partialorder %v799_v0, 0.0  ;;  %v802_v10 = vadd.f32 %v1151_v2, %v1345_v24 }
 0x118   : > { %v863_v6 = vmul.f32 0.2, %v799_v0  ;;  %vm847_vm11 = vcmp.ge.f32.partialorder %v815_v1, 0.0  ;;  %v879_v7 = vmul.f32 0.2, %v815_v1  ;;  %v897_v8 = vsel %vm833_vm8, %v801_v58, %v865_v4  ;;  %v669_v13 = vpop.f32.mrb[15].mxu1 }
 0x119   : > { %v913_v9 = vsel %vm849_vm9, %v817_v59, %v881_v5  ;;  %v818_v11 = vadd.f32 %v1167_v3, %v1345_v24  ;;  %929 = vst [vmem:[%s1355_s19 + $0x70] sm:$0xff] %v897_v8  ;;  %v800_v16 = vadd.f32 %v1345_v24, %v605_v12  ;;  %v816_v17 = vadd.f32 %v1345_v24, %v669_v13 }
 0x11a   : > { %945 = vst [vmem:[%s1355_s19 + $0xf0] sm:$0xff] %v913_v9  ;;  %v895_v14 = vsel %vm831_vm10, %v799_v0, %v863_v6  ;;  %v911_v15 = vsel %vm847_vm11, %v815_v1, %v879_v7  ;;  %vm834_vm12 = vcmp.ge.f32.partialorder %v802_v10, 0.0  ;;  %v866_v18 = vmul.f32 0.2, %v802_v10 }
 0x11b   : > { %927 = vst [vmem:[%s1355_s19 + $0x60] sm:$0xff] %v895_v14  ;;  %943 = vst [vmem:[%s1355_s19 + $0xe0] sm:$0xff] %v911_v15  ;;  %vm850_vm13 = vcmp.ge.f32.partialorder %v818_v11, 0.0  ;;  %v882_v19 = vmul.f32 0.2, %v818_v11  ;;  %vm832_vm14 = vcmp.ge.f32.partialorder %v800_v16, 0.0 }
 0x11c   : > { %v864_v20 = vmul.f32 0.2, %v800_v16  ;;  %vm848_vm15 = vcmp.ge.f32.partialorder %v816_v17, 0.0  ;;  %v880_v21 = vmul.f32 0.2, %v816_v17  ;;  %v898_v22 = vsel %vm834_vm12, %v802_v10, %v866_v18 }
 0x11d   : > { %v914_v23 = vsel %vm850_vm13, %v818_v11, %v882_v19  ;;  %930 = vst [vmem:[%s1355_s19 + $0x78] sm:$0xff] %v898_v22 }
 0x11e   : > { %946 = vst [vmem:[%s1355_s19 + $0xf8] sm:$0xff] %v914_v23  ;;  %v896_v25 = vsel %vm832_vm14, %v800_v16, %v864_v20  ;;  %v912_v26 = vsel %vm848_vm15, %v816_v17, %v880_v21 }
 0x11f   : > { %928 = vst [vmem:[%s1355_s19 + $0x68] sm:$0xff] %v896_v25  ;;  %944 = vst [vmem:[%s1355_s19 + $0xe8] sm:$0xff] %v912_v26 }
 0x120 PF: > { %s13_s14 = sadd.s32 1, %s1254_s14   ;;  %s1430_s12 = smov %s1250_s13 }
 0x121   : > { %p10_p5 = scmp.ge.s32.totalorder %s13_s14, 4   ;;  %s1431_s13 = smov %s1433_s15 }
 0x123   :  { %12 = sbr.rel (!%p10_p5) target bundleno = 2 (0x2), region = 76 }

// kernel: _lambda_.11
= control target key start
LH: loop header
LB: loop body
LE: loop exit
PB: predicated region body
PF: predicated region fallthrough
CT: control target
= control target key end

     0   :  { %s1389_s1 = inlined_call_operand.vmem [shape: bf16[512,128], index: 1, kind: input, shape index: {}]   ;;  %s1390_s0 = inlined_call_operand.vmem [shape: bf16[128,512], index: 0, kind: input, shape index: {}]   ;;  %s1391_s2 = inlined_call_operand.vmem [shape: f32[1,128], index: 2, kind: input, shape index: {}]   ;;  %s1392_s3 = inlined_call_operand.vmem [shape: f32[128,128], index: 3, kind: output, shape index: {}]  }
   0x1   :  { %v1028_v0 = vld [vmem:[%s1389_s1 + $0x40] sm:$0xff]   ;;  %v1032_v4 = vld [vmem:[%s1389_s1 + $0x48] sm:$0xff]   ;;  %v1036_v8 = vld [vmem:[%s1389_s1 + $0x50] sm:$0xff]  }
   0x2   :  { %v1029_v1 = vld [vmem:[%s1389_s1 + $0xc0] sm:$0xff]   ;;  %900 = vmatprep.subr.bf16.mxu0 %v1028_v0  ;;  %v1033_v5 = vld [vmem:[%s1389_s1 + $0xc8] sm:$0xff]   ;;  %v1037_v9 = vld [vmem:[%s1389_s1 + $0xd0] sm:$0xff]  }
   0x3   :  { %v1030_v2 = vld [vmem:[%s1389_s1] sm:$0xff]   ;;  %964 = vmatprep.subr.bf16.mxu1 %v1029_v1  ;;  %v1034_v6 = vld [vmem:[%s1389_s1 + $0x8] sm:$0xff]   ;;  %v1038_v10 = vld [vmem:[%s1389_s1 + $0x10] sm:$0xff]  }
   0x4   :  { %v1031_v3 = vld [vmem:[%s1389_s1 + $0x80] sm:$0xff]   ;;  %901 = vmatpush3.bf16.msra.mxu0 %v1030_v2  ;;  %v1035_v7 = vld [vmem:[%s1389_s1 + $0x88] sm:$0xff]   ;;  %v1039_v11 = vld [vmem:[%s1389_s1 + $0x90] sm:$0xff]  }
   0x5   :  { %965 = vmatpush3.bf16.msra.mxu1 %v1031_v3  ;;  %902 = vmatprep.subr.bf16.mxu0 %v1032_v4  ;;  %v1040_v12 = vld [vmem:[%s1389_s1 + $0x58] sm:$0xff]   ;;  %v1044_v16 = vld [vmem:[%s1389_s1 + $0x60] sm:$0xff]   ;;  %v1048_v20 = vld [vmem:[%s1389_s1 + $0x68] sm:$0xff]  }
   0x6   :  { %966 = vmatprep.subr.bf16.mxu1 %v1033_v5  ;;  %v1041_v13 = vld [vmem:[%s1389_s1 + $0xd8] sm:$0xff]   ;;  %v1045_v17 = vld [vmem:[%s1389_s1 + $0xe0] sm:$0xff]   ;;  %v1049_v21 = vld [vmem:[%s1389_s1 + $0xe8] sm:$0xff]  }
   0x7   :  { %v1042_v14 = vld [vmem:[%s1389_s1 + $0x18] sm:$0xff]   ;;  %v1046_v18 = vld [vmem:[%s1389_s1 + $0x20] sm:$0xff]   ;;  %v1050_v22 = vld [vmem:[%s1389_s1 + $0x28] sm:$0xff]  }
   0x8   :  { %903 = vmatpush3.bf16.msra.mxu0 %v1034_v6  ;;  %v1043_v15 = vld [vmem:[%s1389_s1 + $0x98] sm:$0xff]   ;;  %v1047_v19 = vld [vmem:[%s1389_s1 + $0xa0] sm:$0xff]   ;;  %v1051_v23 = vld [vmem:[%s1389_s1 + $0xa8] sm:$0xff]  }
   0x9   :  { %967 = vmatpush3.bf16.msra.mxu1 %v1035_v7  ;;  %904 = vmatprep.subr.bf16.mxu0 %v1036_v8  ;;  %v1052_v24 = vld [vmem:[%s1389_s1 + $0x70] sm:$0xff]   ;;  %v1056_v28 = vld [vmem:[%s1389_s1 + $0x78] sm:$0xff]  }
   0xa   :  { %968 = vmatprep.subr.bf16.mxu1 %v1037_v9  ;;  %v1053_v25 = vld [vmem:[%s1389_s1 + $0xf0] sm:$0xff]   ;;  %v1057_v29 = vld [vmem:[%s1389_s1 + $0xf8] sm:$0xff]   ;;  %v1323_v9 = vld [vmem:[%s1391_s2] ss:$0 sm:$0xff] }
   0xb   :  { %v1054_v26 = vld [vmem:[%s1389_s1 + $0x30] sm:$0xff]   ;;  %v1058_v30 = vld [vmem:[%s1389_s1 + $0x38] sm:$0xff]  }
   0xc   :  { %905 = vmatpush3.bf16.msra.mxu0 %v1038_v10  ;;  %v1055_v27 = vld [vmem:[%s1389_s1 + $0xb0] sm:$0xff]   ;;  %v1059_v31 = vld [vmem:[%s1389_s1 + $0xb8] sm:$0xff]  }
   0xd   :  { %969 = vmatpush3.bf16.msra.mxu1 %v1039_v11  ;;  %906 = vmatprep.subr.bf16.mxu0 %v1040_v12  ;;  %v1060_v32 = vld [vmem:[%s1390_s0] ss:$16 sps:$4 sm:$0xff]   ;;  %v1062_v33 = vld [vmem:[%s1390_s0 + $0x4] ss:$16 sps:$4 sm:$0xff]   ;;  %v1063_v34 = vld [vmem:[%s1390_s0 + $0x8] ss:$16 sps:$4 sm:$0xff]  }
   0xe   :  { %970 = vmatprep.subr.bf16.mxu1 %v1041_v13  ;;  %v1065_v35 = vld [vmem:[%s1390_s0 + $0xc] ss:$16 sps:$4 sm:$0xff]   ;;  %531 = vmatprep.mubr.bf16.mxu0 %v1062_v33  ;;  %v1066_v36 = vld [vmem:[%s1390_s0 + $0x24] ss:$16 sps:$4 sm:$0xff]   ;;  %v1070_v38 = vld [vmem:[%s1390_s0 + $0x20] ss:$16 sps:$4 sm:$0xff]  }
   0xf   :  { %628 = vmatprep.mubr.bf16.mxu1 %v1065_v35  ;;  %v1068_v37 = vld [vmem:[%s1390_s0 + $0x2c] ss:$16 sps:$4 sm:$0xff]   ;;  %v1071_v39 = vld [vmem:[%s1390_s0 + $0x28] ss:$16 sps:$4 sm:$0xff]   ;;  %v1072_v40 = vld [vmem:[%s1390_s0 + $0x44] ss:$16 sps:$4 sm:$0xff]  }
  0x10   :  { %907 = vmatpush3.bf16.msra.mxu0 %v1042_v14  ;;  %v1074_v41 = vld [vmem:[%s1390_s0 + $0x4c] ss:$16 sps:$4 sm:$0xff]   ;;  %v1076_v42 = vld [vmem:[%s1390_s0 + $0x40] ss:$16 sps:$4 sm:$0xff]   ;;  %v1077_v43 = vld [vmem:[%s1390_s0 + $0x48] ss:$16 sps:$4 sm:$0xff]  }
  0x11   :  { %971 = vmatpush3.bf16.msra.mxu1 %v1043_v15  ;;  %908 = vmatprep.subr.bf16.mxu0 %v1044_v16  ;;  %v1078_v44 = vld [vmem:[%s1390_s0 + $0x64] ss:$16 sps:$4 sm:$0xff]   ;;  %v1080_v45 = vld [vmem:[%s1390_s0 + $0x6c] ss:$16 sps:$4 sm:$0xff]   ;;  %v1082_v46 = vld [vmem:[%s1390_s0 + $0x60] ss:$16 sps:$4 sm:$0xff]  }
  0x12   :  { %972 = vmatprep.subr.bf16.mxu1 %v1045_v17  ;;  %v1083_v47 = vld [vmem:[%s1390_s0 + $0x68] ss:$16 sps:$4 sm:$0xff]   ;;  %v1084_v48 = vld [vmem:[%s1390_s0 + $0x84] ss:$16 sps:$4 sm:$0xff]   ;;  %v1086_v49 = vld [vmem:[%s1390_s0 + $0x8c] ss:$16 sps:$4 sm:$0xff]  }
  0x13   :  { %v1088_v50 = vld [vmem:[%s1390_s0 + $0x80] ss:$16 sps:$4 sm:$0xff]   ;;  %v1089_v51 = vld [vmem:[%s1390_s0 + $0x88] ss:$16 sps:$4 sm:$0xff]   ;;  %v1090_v52 = vld [vmem:[%s1390_s0 + $0xa4] ss:$16 sps:$4 sm:$0xff]  }
  0x14   :  { %909 = vmatpush3.bf16.msra.mxu0 %v1046_v18  ;;  %v1092_v53 = vld [vmem:[%s1390_s0 + $0xac] ss:$16 sps:$4 sm:$0xff]   ;;  %v1094_v54 = vld [vmem:[%s1390_s0 + $0xa0] ss:$16 sps:$4 sm:$0xff]   ;;  %v1095_v55 = vld [vmem:[%s1390_s0 + $0xa8] ss:$16 sps:$4 sm:$0xff]  }
  0x15   :  { %973 = vmatpush3.bf16.msra.mxu1 %v1047_v19  ;;  %910 = vmatprep.subr.bf16.mxu0 %v1048_v20  ;;  %v1096_v56 = vld [vmem:[%s1390_s0 + $0xc4] ss:$16 sps:$4 sm:$0xff]   ;;  %v1098_v57 = vld [vmem:[%s1390_s0 + $0xcc] ss:$16 sps:$4 sm:$0xff]   ;;  %v1100_v58 = vld [vmem:[%s1390_s0 + $0xc0] ss:$16 sps:$4 sm:$0xff]  }
  0x16   :  { %974 = vmatprep.subr.bf16.mxu1 %v1049_v21  ;;  %v1101_v59 = vld [vmem:[%s1390_s0 + $0xc8] ss:$16 sps:$4 sm:$0xff]   ;;  %v1102_v60 = vld [vmem:[%s1390_s0 + $0xe4] ss:$16 sps:$4 sm:$0xff]   ;;  %v1104_v61 = vld [vmem:[%s1390_s0 + $0xec] ss:$16 sps:$4 sm:$0xff]  }
  0x17   :  { %v1106_v62 = vld [vmem:[%s1390_s0 + $0xe0] ss:$16 sps:$4 sm:$0xff]   ;;  %v1107_v63 = vld [vmem:[%s1390_s0 + $0xe8] ss:$16 sps:$4 sm:$0xff]  }
  0x18   :  { %911 = vmatpush3.bf16.msra.mxu0 %v1050_v22 }
  0x19   :  { %975 = vmatpush3.bf16.msra.mxu1 %v1051_v23  ;;  %912 = vmatprep.subr.bf16.mxu0 %v1052_v24 }
  0x1a   :  { %976 = vmatprep.subr.bf16.mxu1 %v1053_v25 }
  0x1c   :  { %913 = vmatpush3.bf16.msra.mxu0 %v1054_v26 }
  0x1d   :  { %977 = vmatpush3.bf16.msra.mxu1 %v1055_v27  ;;  %914 = vmatprep.subr.bf16.mxu0 %v1056_v28 }
  0x1e   :  { %978 = vmatprep.subr.bf16.mxu1 %v1057_v29 }
  0x20   :  { %915 = vmatpush3.bf16.msra.mxu0 %v1058_v30 }
  0x21   :  { %979 = vmatpush3.bf16.msra.mxu1 %v1059_v31 }
  0x23   :  { %532 = vmatmul.mubr.bf16.vlgmr.msra.gmra.mrb[0].mxu0 %v1060_v32 }
  0x24   :  { %629 = vmatmul.mubr.bf16.vlgmr.msra.gmra.mrb[0].mxu1 %v1063_v34  ;;  %539 = vmatprep.mubr.bf16.mxu0 %v1066_v36 }
  0x25   :  { %636 = vmatprep.mubr.bf16.mxu1 %v1068_v37 }
  0x2b   :  { %540 = vmatmul.mubr.bf16.gmra.mrb[4].mxu0 %v1070_v38 }
  0x2c   :  { %637 = vmatmul.mubr.bf16.gmra.mrb[4].mxu1 %v1071_v39  ;;  %547 = vmatprep.mubr.bf16.mxu0 %v1072_v40 }
  0x2d   :  { %644 = vmatprep.mubr.bf16.mxu1 %v1074_v41 }
  0x33   :  { %548 = vmatmul.mubr.bf16.gmra.mrb[8].mxu0 %v1076_v42 }
  0x34   :  { %645 = vmatmul.mubr.bf16.gmra.mrb[8].mxu1 %v1077_v43  ;;  %555 = vmatprep.mubr.bf16.mxu0 %v1078_v44 }
  0x35   :  { %652 = vmatprep.mubr.bf16.mxu1 %v1080_v45 }
  0x3b   :  { %556 = vmatmul.mubr.bf16.gmra.mrb[12].mxu0 %v1082_v46 }
  0x3c   :  { %653 = vmatmul.mubr.bf16.gmra.mrb[12].mxu1 %v1083_v47  ;;  %563 = vmatprep.mubr.bf16.mxu0 %v1084_v48 }
  0x3d   :  { %660 = vmatprep.mubr.bf16.mxu1 %v1086_v49 }
  0x43   :  { %564 = vmatmul.mubr.bf16.gmra.mrb[16].mxu0 %v1088_v50 }
  0x44   :  { %661 = vmatmul.mubr.bf16.gmra.mrb[16].mxu1 %v1089_v51  ;;  %571 = vmatprep.mubr.bf16.mxu0 %v1090_v52 }
  0x45   :  { %668 = vmatprep.mubr.bf16.mxu1 %v1092_v53 }
  0x4b   :  { %572 = vmatmul.mubr.bf16.gmra.mrb[20].mxu0 %v1094_v54 }
  0x4c   :  { %669 = vmatmul.mubr.bf16.gmra.mrb[20].mxu1 %v1095_v55  ;;  %579 = vmatprep.mubr.bf16.mxu0 %v1096_v56 }
  0x4d   :  { %676 = vmatprep.mubr.bf16.mxu1 %v1098_v57 }
  0x53   :  { %580 = vmatmul.mubr.bf16.gmra.mrb[24].mxu0 %v1100_v58 }
  0x54   :  { %677 = vmatmul.mubr.bf16.gmra.mrb[24].mxu1 %v1101_v59  ;;  %587 = vmatprep.mubr.bf16.mxu0 %v1102_v60 }
  0x55   :  { %684 = vmatprep.mubr.bf16.mxu1 %v1104_v61 }
  0x5b   :  { %588 = vmatmul.mubr.bf16.gmra.mrb[28].mxu0 %v1106_v62 }
  0x5c   :  { %685 = vmatmul.mubr.bf16.gmra.mrb[28].mxu1 %v1107_v63 }
  0xf6   :  { %v916_v0 = vpop.f32.mrb[0].mxu0 }
  0xf7   :  { %v980_v1 = vpop.f32.mrb[0].mxu1  ;;  %v917_v2 = vpop.f32.mrb[1].mxu0 }
  0xf8   :  { %v918_v3 = vadd.f32 %v917_v2, %v916_v0  ;;  %v981_v4 = vpop.f32.mrb[1].mxu1  ;;  %v919_v5 = vpop.f32.mrb[2].mxu0 }
  0xf9   :  { %v982_v6 = vadd.f32 %v981_v4, %v980_v1  ;;  %v983_v7 = vpop.f32.mrb[2].mxu1  ;;  %v920_v8 = vpop.f32.mrb[3].mxu0 }
  0xfa   :  { %v921_v10 = vadd.f32 %v920_v8, %v919_v5  ;;  %v984_v11 = vpop.f32.mrb[3].mxu1 }
  0xfb   :  { %v631_v12 = vadd.f32 %v982_v6, %v918_v3  ;;  %v985_v13 = vadd.f32 %v984_v11, %v983_v7 }
  0xfd   :  { %v751_v14 = vadd.f32 %v1323_v9, %v631_v12  ;;  %v634_v15 = vadd.f32 %v985_v13, %v921_v10 }
  0xfe   :  { %v922_v16 = vpop.f32.mrb[4].mxu0 }
  0xff   :  { %vm767_vm0 = vcmp.ge.f32.partialorder %v751_v14, 0.0  ;;  %v783_v17 = vmul.f32 0.2, %v751_v14  ;;  %v752_v18 = vadd.f32 %v1323_v9, %v634_v15  ;;  %v986_v19 = vpop.f32.mrb[4].mxu1  ;;  %v923_v20 = vpop.f32.mrb[5].mxu0 }
 0x100   :  { %v924_v21 = vadd.f32 %v923_v20, %v922_v16  ;;  %v987_v22 = vpop.f32.mrb[5].mxu1  ;;  %v925_v23 = vpop.f32.mrb[6].mxu0 }
 0x101   :  { %v799_v24 = vsel %vm767_vm0, %v751_v14, %v783_v17  ;;  %vm768_vm1 = vcmp.ge.f32.partialorder %v752_v18, 0.0  ;;  %v784_v25 = vmul.f32 0.2, %v752_v18  ;;  %v988_v26 = vadd.f32 %v987_v22, %v986_v19  ;;  %v989_v27 = vpop.f32.mrb[6].mxu1  ;;  %v926_v28 = vpop.f32.mrb[7].mxu0 }
 0x102   :  { %815 = vst [vmem:[%s1392_s3] sm:$0xff] %v799_v24  ;;  %v927_v29 = vadd.f32 %v926_v28, %v925_v23  ;;  %v990_v30 = vpop.f32.mrb[7].mxu1 }
 0x103   :  { %v800_v31 = vsel %vm768_vm1, %v752_v18, %v784_v25  ;;  %v639_v32 = vadd.f32 %v988_v26, %v924_v21  ;;  %v991_v33 = vadd.f32 %v990_v30, %v989_v27 }
 0x104   :  { %816 = vst [vmem:[%s1392_s3 + $0x8] sm:$0xff] %v800_v31 }
 0x105   :  { %v753_v34 = vadd.f32 %v1323_v9, %v639_v32  ;;  %v642_v35 = vadd.f32 %v991_v33, %v927_v29 }
 0x106   :  { %v928_v36 = vpop.f32.mrb[8].mxu0 }
 0x107   :  { %vm769_vm2 = vcmp.ge.f32.partialorder %v753_v34, 0.0  ;;  %v785_v37 = vmul.f32 0.2, %v753_v34  ;;  %v754_v38 = vadd.f32 %v1323_v9, %v642_v35  ;;  %v992_v39 = vpop.f32.mrb[8].mxu1  ;;  %v929_v40 = vpop.f32.mrb[9].mxu0 }
 0x108   :  { %v930_v41 = vadd.f32 %v929_v40, %v928_v36  ;;  %v993_v42 = vpop.f32.mrb[9].mxu1  ;;  %v931_v43 = vpop.f32.mrb[10].mxu0 }
 0x109   :  { %v801_v44 = vsel %vm769_vm2, %v753_v34, %v785_v37  ;;  %vm770_vm3 = vcmp.ge.f32.partialorder %v754_v38, 0.0  ;;  %v786_v45 = vmul.f32 0.2, %v754_v38  ;;  %v994_v46 = vadd.f32 %v993_v42, %v992_v39  ;;  %v995_v47 = vpop.f32.mrb[10].mxu1  ;;  %v932_v48 = vpop.f32.mrb[11].mxu0 }
 0x10a   :  { %817 = vst [vmem:[%s1392_s3 + $0x10] sm:$0xff] %v801_v44  ;;  %v933_v49 = vadd.f32 %v932_v48, %v931_v43  ;;  %v996_v50 = vpop.f32.mrb[11].mxu1 }
 0x10b   :  { %v802_v51 = vsel %vm770_vm3, %v754_v38, %v786_v45  ;;  %v647_v52 = vadd.f32 %v994_v46, %v930_v41  ;;  %v997_v53 = vadd.f32 %v996_v50, %v995_v47 }
 0x10c   :  { %818 = vst [vmem:[%s1392_s3 + $0x18] sm:$0xff] %v802_v51 }
 0x10d   :  { %v755_v54 = vadd.f32 %v1323_v9, %v647_v52  ;;  %v650_v55 = vadd.f32 %v997_v53, %v933_v49 }
 0x10e   :  { %v934_v56 = vpop.f32.mrb[12].mxu0 }
 0x10f   :  { %vm771_vm4 = vcmp.ge.f32.partialorder %v755_v54, 0.0  ;;  %v787_v57 = vmul.f32 0.2, %v755_v54  ;;  %v756_v58 = vadd.f32 %v1323_v9, %v650_v55  ;;  %v998_v59 = vpop.f32.mrb[12].mxu1  ;;  %v935_v60 = vpop.f32.mrb[13].mxu0 }
 0x110   :  { %v936_v61 = vadd.f32 %v935_v60, %v934_v56  ;;  %v999_v62 = vpop.f32.mrb[13].mxu1  ;;  %v937_v63 = vpop.f32.mrb[14].mxu0 }
 0x111   :  { %v803_v0 = vsel %vm771_vm4, %v755_v54, %v787_v57  ;;  %vm772_vm5 = vcmp.ge.f32.partialorder %v756_v58, 0.0  ;;  %v788_v1 = vmul.f32 0.2, %v756_v58  ;;  %v1000_v2 = vadd.f32 %v999_v62, %v998_v59  ;;  %v1001_v3 = vpop.f32.mrb[14].mxu1  ;;  %v938_v4 = vpop.f32.mrb[15].mxu0 }
 0x112   :  { %819 = vst [vmem:[%s1392_s3 + $0x20] sm:$0xff] %v803_v0  ;;  %v939_v5 = vadd.f32 %v938_v4, %v937_v63  ;;  %v1002_v6 = vpop.f32.mrb[15].mxu1 }
 0x113   :  { %v804_v7 = vsel %vm772_vm5, %v756_v58, %v788_v1  ;;  %v655_v8 = vadd.f32 %v1000_v2, %v936_v61  ;;  %v1003_v10 = vadd.f32 %v1002_v6, %v1001_v3 }
 0x114   :  { %820 = vst [vmem:[%s1392_s3 + $0x28] sm:$0xff] %v804_v7 }
 0x115   :  { %v757_v11 = vadd.f32 %v1323_v9, %v655_v8  ;;  %v658_v12 = vadd.f32 %v1003_v10, %v939_v5 }
 0x116   :  { %v940_v13 = vpop.f32.mrb[16].mxu0 }
 0x117   :  { %vm773_vm6 = vcmp.ge.f32.partialorder %v757_v11, 0.0  ;;  %v789_v14 = vmul.f32 0.2, %v757_v11  ;;  %v758_v15 = vadd.f32 %v1323_v9, %v658_v12  ;;  %v1004_v16 = vpop.f32.mrb[16].mxu1  ;;  %v941_v17 = vpop.f32.mrb[17].mxu0 }
 0x118   :  { %v942_v18 = vadd.f32 %v941_v17, %v940_v13  ;;  %v1005_v19 = vpop.f32.mrb[17].mxu1  ;;  %v943_v20 = vpop.f32.mrb[18].mxu0 }
 0x119   :  { %v805_v21 = vsel %vm773_vm6, %v757_v11, %v789_v14  ;;  %vm774_vm7 = vcmp.ge.f32.partialorder %v758_v15, 0.0  ;;  %v790_v22 = vmul.f32 0.2, %v758_v15  ;;  %v1006_v23 = vadd.f32 %v1005_v19, %v1004_v16  ;;  %v1007_v24 = vpop.f32.mrb[18].mxu1  ;;  %v944_v25 = vpop.f32.mrb[19].mxu0 }
 0x11a   :  { %821 = vst [vmem:[%s1392_s3 + $0x30] sm:$0xff] %v805_v21  ;;  %v945_v26 = vadd.f32 %v944_v25, %v943_v20  ;;  %v1008_v27 = vpop.f32.mrb[19].mxu1 }
 0x11b   :  { %v806_v28 = vsel %vm774_vm7, %v758_v15, %v790_v22  ;;  %v663_v29 = vadd.f32 %v1006_v23, %v942_v18  ;;  %v1009_v30 = vadd.f32 %v1008_v27, %v1007_v24 }
 0x11c   :  { %822 = vst [vmem:[%s1392_s3 + $0x38] sm:$0xff] %v806_v28 }
 0x11d   :  { %v759_v31 = vadd.f32 %v1323_v9, %v663_v29  ;;  %v666_v32 = vadd.f32 %v1009_v30, %v945_v26 }
 0x11e   :  { %v946_v33 = vpop.f32.mrb[20].mxu0 }
 0x11f   :  { %vm775_vm8 = vcmp.ge.f32.partialorder %v759_v31, 0.0  ;;  %v791_v34 = vmul.f32 0.2, %v759_v31  ;;  %v760_v35 = vadd.f32 %v1323_v9, %v666_v32  ;;  %v1010_v36 = vpop.f32.mrb[20].mxu1  ;;  %v947_v37 = vpop.f32.mrb[21].mxu0 }
 0x120   :  { %v948_v38 = vadd.f32 %v947_v37, %v946_v33  ;;  %v1011_v39 = vpop.f32.mrb[21].mxu1  ;;  %v949_v40 = vpop.f32.mrb[22].mxu0 }
 0x121   :  { %v807_v41 = vsel %vm775_vm8, %v759_v31, %v791_v34  ;;  %vm776_vm9 = vcmp.ge.f32.partialorder %v760_v35, 0.0  ;;  %v792_v42 = vmul.f32 0.2, %v760_v35  ;;  %v1012_v43 = vadd.f32 %v1011_v39, %v1010_v36  ;;  %v1013_v44 = vpop.f32.mrb[22].mxu1  ;;  %v950_v45 = vpop.f32.mrb[23].mxu0 }
 0x122   :  { %823 = vst [vmem:[%s1392_s3 + $0x40] sm:$0xff] %v807_v41  ;;  %v951_v46 = vadd.f32 %v950_v45, %v949_v40  ;;  %v1014_v47 = vpop.f32.mrb[23].mxu1 }
 0x123   :  { %v808_v48 = vsel %vm776_vm9, %v760_v35, %v792_v42  ;;  %v671_v49 = vadd.f32 %v1012_v43, %v948_v38  ;;  %v1015_v50 = vadd.f32 %v1014_v47, %v1013_v44 }
 0x124   :  { %824 = vst [vmem:[%s1392_s3 + $0x48] sm:$0xff] %v808_v48 }
 0x125   :  { %v761_v51 = vadd.f32 %v1323_v9, %v671_v49  ;;  %v674_v52 = vadd.f32 %v1015_v50, %v951_v46 }
 0x126   :  { %v952_v53 = vpop.f32.mrb[24].mxu0 }
 0x127   :  { %vm777_vm10 = vcmp.ge.f32.partialorder %v761_v51, 0.0  ;;  %v793_v54 = vmul.f32 0.2, %v761_v51  ;;  %v762_v55 = vadd.f32 %v1323_v9, %v674_v52  ;;  %v1016_v56 = vpop.f32.mrb[24].mxu1  ;;  %v953_v57 = vpop.f32.mrb[25].mxu0 }
 0x128   :  { %v954_v58 = vadd.f32 %v953_v57, %v952_v53  ;;  %v1017_v59 = vpop.f32.mrb[25].mxu1  ;;  %v955_v60 = vpop.f32.mrb[26].mxu0 }
 0x129   :  { %v809_v61 = vsel %vm777_vm10, %v761_v51, %v793_v54  ;;  %vm778_vm11 = vcmp.ge.f32.partialorder %v762_v55, 0.0  ;;  %v794_v62 = vmul.f32 0.2, %v762_v55  ;;  %v1018_v63 = vadd.f32 %v1017_v59, %v1016_v56  ;;  %v1019_v0 = vpop.f32.mrb[26].mxu1  ;;  %v956_v1 = vpop.f32.mrb[27].mxu0 }
 0x12a   :  { %825 = vst [vmem:[%s1392_s3 + $0x50] sm:$0xff] %v809_v61  ;;  %v957_v2 = vadd.f32 %v956_v1, %v955_v60  ;;  %v1020_v3 = vpop.f32.mrb[27].mxu1 }
 0x12b   :  { %v810_v4 = vsel %vm778_vm11, %v762_v55, %v794_v62  ;;  %v679_v5 = vadd.f32 %v1018_v63, %v954_v58  ;;  %v1021_v6 = vadd.f32 %v1020_v3, %v1019_v0 }
 0x12c   :  { %826 = vst [vmem:[%s1392_s3 + $0x58] sm:$0xff] %v810_v4 }
 0x12d   :  { %v763_v7 = vadd.f32 %v1323_v9, %v679_v5  ;;  %v682_v8 = vadd.f32 %v1021_v6, %v957_v2 }
 0x12e   :  { %v958_v10 = vpop.f32.mrb[28].mxu0 }
 0x12f   :  { %vm779_vm12 = vcmp.ge.f32.partialorder %v763_v7, 0.0  ;;  %v795_v11 = vmul.f32 0.2, %v763_v7  ;;  %v764_v12 = vadd.f32 %v1323_v9, %v682_v8  ;;  %v1022_v13 = vpop.f32.mrb[28].mxu1  ;;  %v959_v14 = vpop.f32.mrb[29].mxu0 }
 0x130   :  { %v960_v15 = vadd.f32 %v959_v14, %v958_v10  ;;  %v1023_v16 = vpop.f32.mrb[29].mxu1  ;;  %v961_v17 = vpop.f32.mrb[30].mxu0 }
 0x131   :  { %v811_v18 = vsel %vm779_vm12, %v763_v7, %v795_v11  ;;  %vm780_vm13 = vcmp.ge.f32.partialorder %v764_v12, 0.0  ;;  %v796_v19 = vmul.f32 0.2, %v764_v12  ;;  %v1024_v20 = vadd.f32 %v1023_v16, %v1022_v13  ;;  %v1025_v21 = vpop.f32.mrb[30].mxu1  ;;  %v962_v22 = vpop.f32.mrb[31].mxu0 }
 0x132   :  { %827 = vst [vmem:[%s1392_s3 + $0x60] sm:$0xff] %v811_v18  ;;  %v963_v23 = vadd.f32 %v962_v22, %v961_v17  ;;  %v1026_v24 = vpop.f32.mrb[31].mxu1 }
 0x133   :  { %v812_v25 = vsel %vm780_vm13, %v764_v12, %v796_v19  ;;  %v687_v26 = vadd.f32 %v1024_v20, %v960_v15  ;;  %v1027_v27 = vadd.f32 %v1026_v24, %v1025_v21 }
 0x134   :  { %828 = vst [vmem:[%s1392_s3 + $0x68] sm:$0xff] %v812_v25 }
 0x135   :  { %v765_v28 = vadd.f32 %v1323_v9, %v687_v26  ;;  %v690_v29 = vadd.f32 %v1027_v27, %v963_v23 }
 0x137   :  { %vm781_vm14 = vcmp.ge.f32.partialorder %v765_v28, 0.0  ;;  %v797_v30 = vmul.f32 0.2, %v765_v28  ;;  %v766_v31 = vadd.f32 %v1323_v9, %v690_v29 }
 0x139   :  { %v813_v32 = vsel %vm781_vm14, %v765_v28, %v797_v30  ;;  %vm782_vm15 = vcmp.ge.f32.partialorder %v766_v31, 0.0  ;;  %v798_v33 = vmul.f32 0.2, %v766_v31 }
 0x13a   :  { %829 = vst [vmem:[%s1392_s3 + $0x70] sm:$0xff] %v813_v32 }
 0x13b   :  { %v814_v34 = vsel %vm782_vm15, %v766_v31, %v798_v33 }
 0x13c   :  { %830 = vst [vmem:[%s1392_s3 + $0x78] sm:$0xff] %v814_v34 }

// kernel: _lambda_.12
= control target key start
LH: loop header
LB: loop body
LE: loop exit
PB: predicated region body
PF: predicated region fallthrough
CT: control target
= control target key end

     0   :  { %s1117_s12 = smov 0   ;;  %s1119_s13 = smov 0   ;;  %s1243_s0 = inlined_call_operand.vmem [shape: bf16[32,1024], index: 0, kind: input, shape index: {}]   ;;  %s1244_s1 = inlined_call_operand.vmem [shape: bf16[1024,128], index: 1, kind: input, shape index: {}]   ;;  %s1245_s2 = inlined_call_operand.vmem [shape: f32[1,128], index: 2, kind: input, shape index: {}]   ;;  %s1246_s3 = inlined_call_operand.vmem [shape: f32[32,128], index: 3, kind: output, shape index: {}]  }
   0x1   :  { %s1121_s14 = smov 0   ;;  %s1123_s15 = smov 0  }
   0x2   :  { %s1125_s16 = smov 0  }
   0x3 LB: > { %s25_s17 = sadd.s32 1, %s1090_s15  ;;  %p48_p1 = scmp.ne.s32.totalorder %s1082_s13, %s1078_s12  ;;  %s1094_s16 = sphi %s1125_s16, %s13_s16   ;;  %s1090_s15 = sphi %s1123_s15, %s1250_s15   ;;  %s1086_s14 = sphi %s1121_s14, %s1249_s14   ;;  %s1082_s13 = sphi %s1119_s13, %s1248_s13   ;;  %s1078_s12 = sphi %s1117_s12, %s1247_s12  }
   0x4   : > { %p26_p0 = scmp.ge.s32.totalorder %s25_s17, 2  ;;  %p49_p2 = scmp.eq.s32.totalorder %s1094_s16, 0 }
   0x5   : > { %s41_s19 = sadd.s32 1, %s1082_s13  ;;  %p859_p5 = scmp.ge.s32.totalorder %s1094_s16, 2 }
   0x6   : > { %s1252_s17 = smov (%p26_p0, %s25_s17), 0  ;;  %p50_p3 = por %p49_p2, %p48_p1 }
   0x7   : > { %s37_s18 = ssub.s32 %s1090_s15, %s1252_s17  ;;  %162 = sbr.rel (%p859_p5) target bundleno = 22 (0x16), region = 20 }
   0x8   : > { %p39_p4 = scmp.eq.s32.totalorder %s37_s18, 0 }
   0xa   : > { %s1152_s20 = scalar_select %p39_p4, %s1082_s13, %s41_s19  }
   0xe   : > { %165 = sbr.rel (!%p50_p3) target bundleno = 22 (0x16), region = 24  ;;  %s167_s21 = sand.u32 (%p50_p3), 1, %s1082_s13  }
   0xf   : > { %s914_s22 = sshll.u32 (%p50_p3), %s1090_s15, 4  ;;  %s860_s23 = sshll.u32 (%p50_p3), %s167_s21, 6 }
  0x10   : > { %s175_s26 = scalar_lea.vmem (%p50_p3), %s1243_s0, %s914_s22  ;;  %s169_s27 = scalar_lea.vmem (%p50_p3), [#allocation3], %s860_s23 }
  0x11   : > { %v188_v0 = vld [vmem:[%s175_s26] sm:$0xff] (%p50_p3)  ;;  %v190_v1 = vld [vmem:[%s175_s26 + $0x8] sm:$0xff] (%p50_p3) }
  0x12   : > { %v192_v2 = vld [vmem:[%s175_s26 + $0x20] sm:$0xff] (%p50_p3)  ;;  %189 = vst [vmem:[%s169_s27] sm:$0xff] (%p50_p3), %v188_v0  ;;  %191 = vst [vmem:[%s169_s27 + $0x8] sm:$0xff] (%p50_p3), %v190_v1  ;;  %v194_v3 = vld [vmem:[%s175_s26 + $0x28] sm:$0xff] (%p50_p3) }
  0x13   : > { %193 = vst [vmem:[%s169_s27 + $0x10] sm:$0xff] (%p50_p3), %v192_v2  ;;  %v196_v4 = vld [vmem:[%s175_s26 + $0x40] sm:$0xff] (%p50_p3)  ;;  %v198_v5 = vld [vmem:[%s175_s26 + $0x48] sm:$0xff] (%p50_p3)  ;;  %195 = vst [vmem:[%s169_s27 + $0x18] sm:$0xff] (%p50_p3), %v194_v3 }
  0x14   : > { %197 = vst [vmem:[%s169_s27 + $0x20] sm:$0xff] (%p50_p3), %v196_v4  ;;  %199 = vst [vmem:[%s169_s27 + $0x28] sm:$0xff] (%p50_p3), %v198_v5  ;;  %v200_v6 = vld [vmem:[%s175_s26 + $0x60] sm:$0xff] (%p50_p3)  ;;  %v202_v7 = vld [vmem:[%s175_s26 + $0x68] sm:$0xff] (%p50_p3) }
  0x15   : > { %201 = vst [vmem:[%s169_s27 + $0x30] sm:$0xff] %v200_v6  ;;  %203 = vst [vmem:[%s169_s27 + $0x38] sm:$0xff] %v202_v7 }
  0x16 PF: > { %p863_p6 = scmp.ge.s32.totalorder %s1094_s16, 1  ;;  %p220_p7 = scmp.lt.s32.totalorder %s1094_s16, 3 }
  0x18   : > { %p221_p8 = pnand %p863_p6, %p220_p7 }
  0x19   : > { %s227_s28 = sand.u32 (!%p221_p8), 1, %s1078_s12   ;;  %s865_s29 = sshll.u32 (!%p221_p8), %s1086_s14, 6 }
  0x1a   : > { %224 = sbr.rel (%p221_p8) target bundleno = 318 (0x13e), region = 51  ;;  %s864_s30 = sshll.u32 (!%p221_p8), %s227_s28, 6 }
  0x1b   : > { %p267_p9 = scmp.lt.s32.totalorder (!%p221_p8), %s865_s29, 127  ;;  %s1169_s8 = scalar_lea.vmem (!%p221_p8), [#allocation3], %s864_s30 }
  0x1c   : > { %p867_p10 = scmp.ne.s32.totalorder (!%p221_p8), %s1086_s14, 0 }
  0x21   : > { %s1254_s29 = smov (!%p267_p9, %s865_s29), 127  ;;  %291 = sbr.rel (%p867_p10) target bundleno = 40 (0x28), region = 59 }
  0x22   : > { %s866_s4 = sshll.u32 %s1254_s29, 2  ;;  %v1096_v8 = vmov (!%p867_p10), 0.0  }
  0x23   : > { %s1167_s7 = scalar_lea.vmem %s1244_s1, %s866_s4  ;;  %292 = vst [vmem:[#allocation2] sm:$0xff] (!%p867_p10), %v1096_v8  ;;  %293 = vst [vmem:[#allocation2 + $0x8] sm:$0xff] (!%p867_p10), %v1096_v8 }
  0x24   : > { %294 = vst [vmem:[#allocation2 + $0x10] sm:$0xff] (!%p867_p10), %v1096_v8  ;;  %295 = vst [vmem:[#allocation2 + $0x18] sm:$0xff] (!%p867_p10), %v1096_v8 }
  0x28 PF: > { %v1012_v9 = vld [vmem:[%s1167_s7 + $0x40] sm:$0xff]   ;;  %v1016_v13 = vld [vmem:[%s1167_s7 + $0x48] sm:$0xff]   ;;  %v1020_v17 = vld [vmem:[%s1167_s7 + $0x50] sm:$0xff]   ;;  %p908_p11 = scmp.ne.s32.totalorder %s1086_s14, 1 }
  0x29   : > { %v1013_v10 = vld [vmem:[%s1167_s7 + $0xc0] sm:$0xff]   ;;  %915 = vmatprep.subr.bf16.mxu0 %v1012_v9  ;;  %v1017_v14 = vld [vmem:[%s1167_s7 + $0xc8] sm:$0xff]   ;;  %v1021_v18 = vld [vmem:[%s1167_s7 + $0xd0] sm:$0xff]  }
  0x2a   : > { %v1014_v11 = vld [vmem:[%s1167_s7] sm:$0xff]   ;;  %943 = vmatprep.subr.bf16.mxu1 %v1013_v10  ;;  %v1018_v15 = vld [vmem:[%s1167_s7 + $0x8] sm:$0xff]   ;;  %v1022_v19 = vld [vmem:[%s1167_s7 + $0x10] sm:$0xff]  }
  0x2b   : > { %v1015_v12 = vld [vmem:[%s1167_s7 + $0x80] sm:$0xff]   ;;  %916 = vmatpush3.bf16.msra.mxu0 %v1014_v11  ;;  %v1019_v16 = vld [vmem:[%s1167_s7 + $0x88] sm:$0xff]   ;;  %v1023_v20 = vld [vmem:[%s1167_s7 + $0x90] sm:$0xff]  }
  0x2c   : > { %944 = vmatpush3.bf16.msra.mxu1 %v1015_v12  ;;  %917 = vmatprep.subr.bf16.mxu0 %v1016_v13  ;;  %v1024_v21 = vld [vmem:[%s1167_s7 + $0x58] sm:$0xff]   ;;  %v1028_v25 = vld [vmem:[%s1167_s7 + $0x60] sm:$0xff]   ;;  %v1032_v29 = vld [vmem:[%s1167_s7 + $0x68] sm:$0xff]  }
  0x2d   : > { %945 = vmatprep.subr.bf16.mxu1 %v1017_v14  ;;  %v1025_v22 = vld [vmem:[%s1167_s7 + $0xd8] sm:$0xff]   ;;  %v1029_v26 = vld [vmem:[%s1167_s7 + $0xe0] sm:$0xff]   ;;  %v1033_v30 = vld [vmem:[%s1167_s7 + $0xe8] sm:$0xff]  }
  0x2e   : > { %v1026_v23 = vld [vmem:[%s1167_s7 + $0x18] sm:$0xff]   ;;  %v1030_v27 = vld [vmem:[%s1167_s7 + $0x20] sm:$0xff]   ;;  %v1034_v31 = vld [vmem:[%s1167_s7 + $0x28] sm:$0xff]  }
  0x2f   : > { %918 = vmatpush3.bf16.msra.mxu0 %v1018_v15  ;;  %v1027_v24 = vld [vmem:[%s1167_s7 + $0x98] sm:$0xff]   ;;  %v1031_v28 = vld [vmem:[%s1167_s7 + $0xa0] sm:$0xff]   ;;  %v1035_v32 = vld [vmem:[%s1167_s7 + $0xa8] sm:$0xff]  }
  0x30   : > { %946 = vmatpush3.bf16.msra.mxu1 %v1019_v16  ;;  %919 = vmatprep.subr.bf16.mxu0 %v1020_v17  ;;  %v1036_v33 = vld [vmem:[%s1167_s7 + $0x70] sm:$0xff]   ;;  %v1040_v37 = vld [vmem:[%s1167_s7 + $0x78] sm:$0xff]   ;;  %v296_v58 = vld [vmem:[#allocation2] sm:$0xff] }
  0x31   : > { %947 = vmatprep.subr.bf16.mxu1 %v1021_v18  ;;  %v1037_v34 = vld [vmem:[%s1167_s7 + $0xf0] sm:$0xff]   ;;  %v1041_v38 = vld [vmem:[%s1167_s7 + $0xf8] sm:$0xff]   ;;  %v297_v63 = vld [vmem:[#allocation2 + $0x8] sm:$0xff] }
  0x32   : > { %v1038_v35 = vld [vmem:[%s1167_s7 + $0x30] sm:$0xff]   ;;  %v1042_v39 = vld [vmem:[%s1167_s7 + $0x38] sm:$0xff]  }
  0x33   : > { %920 = vmatpush3.bf16.msra.mxu0 %v1022_v19  ;;  %v1039_v36 = vld [vmem:[%s1167_s7 + $0xb0] sm:$0xff]   ;;  %v1043_v40 = vld [vmem:[%s1167_s7 + $0xb8] sm:$0xff]  }
  0x34   : > { %948 = vmatpush3.bf16.msra.mxu1 %v1023_v20  ;;  %921 = vmatprep.subr.bf16.mxu0 %v1024_v21  ;;  %v1044_v41 = vld [vmem:[%s1169_s8] ss:$16 sps:$4 sm:$0xff]   ;;  %v1046_v42 = vld [vmem:[%s1169_s8 + $0x4] ss:$16 sps:$4 sm:$0xff]   ;;  %v1047_v43 = vld [vmem:[%s1169_s8 + $0x8] ss:$16 sps:$4 sm:$0xff]  }
  0x35   : > { %949 = vmatprep.subr.bf16.mxu1 %v1025_v22  ;;  %v1049_v44 = vld [vmem:[%s1169_s8 + $0xc] ss:$16 sps:$4 sm:$0xff]   ;;  %636 = vmatprep.mubr.bf16.mxu0 %v1046_v42  ;;  %v1050_v45 = vld [vmem:[%s1169_s8 + $0x24] ss:$16 sps:$4 sm:$0xff]   ;;  %v1054_v47 = vld [vmem:[%s1169_s8 + $0x20] ss:$16 sps:$4 sm:$0xff]  }
  0x36   : > { %685 = vmatprep.mubr.bf16.mxu1 %v1049_v44  ;;  %v1052_v46 = vld [vmem:[%s1169_s8 + $0x2c] ss:$16 sps:$4 sm:$0xff]   ;;  %v1055_v48 = vld [vmem:[%s1169_s8 + $0x28] ss:$16 sps:$4 sm:$0xff]   ;;  %v298_v12 = vld [vmem:[#allocation2 + $0x10] sm:$0xff] }
  0x37   : > { %922 = vmatpush3.bf16.msra.mxu0 %v1026_v23  ;;  %v299_v17 = vld [vmem:[#allocation2 + $0x18] sm:$0xff]  ;;  %v909_v22 = vld [vmem:[%s1245_s2] ss:$0 sm:$0xff] (!%p908_p11) }
  0x38   : > { %950 = vmatpush3.bf16.msra.mxu1 %v1027_v24  ;;  %923 = vmatprep.subr.bf16.mxu0 %v1028_v25 }
  0x39   : > { %951 = vmatprep.subr.bf16.mxu1 %v1029_v26 }
  0x3b   : > { %924 = vmatpush3.bf16.msra.mxu0 %v1030_v27 }
  0x3c   : > { %952 = vmatpush3.bf16.msra.mxu1 %v1031_v28  ;;  %925 = vmatprep.subr.bf16.mxu0 %v1032_v29 }
  0x3d   : > { %953 = vmatprep.subr.bf16.mxu1 %v1033_v30 }
  0x3f   : > { %926 = vmatpush3.bf16.msra.mxu0 %v1034_v31 }
  0x40   : > { %954 = vmatpush3.bf16.msra.mxu1 %v1035_v32  ;;  %927 = vmatprep.subr.bf16.mxu0 %v1036_v33 }
  0x41   : > { %955 = vmatprep.subr.bf16.mxu1 %v1037_v34 }
  0x43   : > { %928 = vmatpush3.bf16.msra.mxu0 %v1038_v35 }
  0x44   : > { %956 = vmatpush3.bf16.msra.mxu1 %v1039_v36  ;;  %929 = vmatprep.subr.bf16.mxu0 %v1040_v37 }
  0x45   : > { %957 = vmatprep.subr.bf16.mxu1 %v1041_v38 }
  0x47   : > { %930 = vmatpush3.bf16.msra.mxu0 %v1042_v39 }
  0x48   : > { %958 = vmatpush3.bf16.msra.mxu1 %v1043_v40 }
  0x4a   : > { %637 = vmatmul.mubr.bf16.vlgmr.msra.gmra.mrb[0].mxu0 %v1044_v41 }
  0x4b   : > { %686 = vmatmul.mubr.bf16.vlgmr.msra.gmra.mrb[0].mxu1 %v1047_v43  ;;  %644 = vmatprep.mubr.bf16.mxu0 %v1050_v45 }
  0x4c   : > { %693 = vmatprep.mubr.bf16.mxu1 %v1052_v46 }
  0x52   : > { %645 = vmatmul.mubr.bf16.gmra.mrb[4].mxu0 %v1054_v47 }
  0x53   : > { %694 = vmatmul.mubr.bf16.gmra.mrb[4].mxu1 %v1055_v48 }
 0x11d   : > { %v931_v49 = vpop.f32.mrb[0].mxu0 }
 0x11e   : > { %v959_v50 = vpop.f32.mrb[0].mxu1  ;;  %v932_v51 = vpop.f32.mrb[1].mxu0 }
 0x11f   : > { %v933_v52 = vadd.f32 %v932_v51, %v931_v49  ;;  %v960_v53 = vpop.f32.mrb[1].mxu1  ;;  %v934_v54 = vpop.f32.mrb[2].mxu0 }
 0x120   : > { %v961_v55 = vadd.f32 %v960_v53, %v959_v50  ;;  %v962_v56 = vpop.f32.mrb[2].mxu1  ;;  %v935_v57 = vpop.f32.mrb[3].mxu0 }
 0x121   : > { %v936_v59 = vadd.f32 %v935_v57, %v934_v54  ;;  %v963_v60 = vpop.f32.mrb[3].mxu1 }
 0x122   : > { %v688_v61 = vadd.f32 %v961_v55, %v933_v52  ;;  %v964_v62 = vadd.f32 %v963_v60, %v962_v56 }
 0x124   : > { %v702_v0 = vadd.f32 %v688_v61, %v296_v58  ;;  %v691_v1 = vadd.f32 %v964_v62, %v936_v59 }
 0x125   : > { %v937_v2 = vpop.f32.mrb[4].mxu0 }
 0x126   : > { %706 = vst [vmem:[#allocation2] sm:$0xff] %v702_v0  ;;  %v703_v3 = vadd.f32 %v691_v1, %v297_v63  ;;  %v965_v4 = vpop.f32.mrb[4].mxu1  ;;  %v938_v5 = vpop.f32.mrb[5].mxu0 }
 0x127   : > { %v939_v6 = vadd.f32 %v938_v5, %v937_v2  ;;  %v966_v7 = vpop.f32.mrb[5].mxu1  ;;  %v940_v8 = vpop.f32.mrb[6].mxu0 }
 0x128   : > { %707 = vst [vmem:[#allocation2 + $0x8] sm:$0xff] %v703_v3  ;;  %v967_v9 = vadd.f32 %v966_v7, %v965_v4  ;;  %v968_v10 = vpop.f32.mrb[6].mxu1  ;;  %v941_v11 = vpop.f32.mrb[7].mxu0 }
 0x129   : > { %v942_v13 = vadd.f32 %v941_v11, %v940_v8  ;;  %v969_v14 = vpop.f32.mrb[7].mxu1 }
 0x12a   : > { %v696_v15 = vadd.f32 %v967_v9, %v939_v6  ;;  %v970_v16 = vadd.f32 %v969_v14, %v968_v10  ;;  %713 = sbr.rel (%p908_p11) target bundleno = 318 (0x13e), region = 63 }
 0x12c   : > { %v704_v18 = vadd.f32 %v696_v15, %v298_v12  ;;  %v699_v19 = vadd.f32 %v970_v16, %v942_v13 }
 0x12d   : > { %v714_v21 = vld [vmem:[#allocation2] sm:$0xff] (!%p908_p11) }
 0x12e   : > { %708 = vst [vmem:[#allocation2 + $0x10] sm:$0xff] %v704_v18  ;;  %v705_v20 = vadd.f32 %v699_v19, %v299_v17  ;;  %v725_v24 = vadd.f32 (!%p908_p11), %v909_v22, %v714_v21 }
 0x12f   : > { %v715_v23 = vld [vmem:[#allocation2 + $0x8] sm:$0xff] (!%p908_p11) }
 0x130   : > { %709 = vst [vmem:[#allocation2 + $0x18] sm:$0xff] %v705_v20  ;;  %v726_v25 = vadd.f32 (!%p908_p11), %v909_v22, %v715_v23  ;;  %vm729_vm0 = vcmp.ge.f32.partialorder (!%p908_p11), %v725_v24, 0.0  ;;  %v733_v30 = vmul.f32 (!%p908_p11), 0.2, %v725_v24 }
 0x132   : > { %vm730_vm1 = vcmp.ge.f32.partialorder %v726_v25, 0.0  ;;  %v734_v31 = vmul.f32 0.2, %v726_v25  ;;  %v737_v34 = vsel %vm729_vm0, %v725_v24, %v733_v30 }
 0x133   : > { %741 = vst [vmem:[%s1246_s3] sm:$0xff] %v737_v34 }
 0x134   : > { %v738_v35 = vsel %vm730_vm1, %v726_v25, %v734_v31 }
 0x135   : > { %v716_v26 = vld [vmem:[#allocation2 + $0x10] sm:$0xff]  ;;  %742 = vst [vmem:[%s1246_s3 + $0x8] sm:$0xff] %v738_v35 }
 0x136   : > { %v727_v28 = vadd.f32 %v909_v22, %v716_v26 }
 0x137   : > { %v717_v27 = vld [vmem:[#allocation2 + $0x18] sm:$0xff] }
 0x138   : > { %v728_v29 = vadd.f32 %v909_v22, %v717_v27  ;;  %vm731_vm2 = vcmp.ge.f32.partialorder %v727_v28, 0.0  ;;  %v735_v32 = vmul.f32 0.2, %v727_v28 }
 0x13a   : > { %vm732_vm3 = vcmp.ge.f32.partialorder %v728_v29, 0.0  ;;  %v736_v33 = vmul.f32 0.2, %v728_v29  ;;  %v739_v36 = vsel %vm731_vm2, %v727_v28, %v735_v32 }
 0x13b   : > { %743 = vst [vmem:[%s1246_s3 + $0x10] sm:$0xff] %v739_v36 }
 0x13c   : > { %v740_v37 = vsel %vm732_vm3, %v728_v29, %v736_v33 }
 0x13d   : > { %744 = vst [vmem:[%s1246_s3 + $0x18] sm:$0xff] %v740_v37 }
 0x13e PF: > { %s13_s16 = sadd.s32 1, %s1094_s16   ;;  %s1247_s12 = smov %s1082_s13 }
 0x13f   : > { %p10_p12 = scmp.ge.s32.totalorder %s13_s16, 4   ;;  %s1248_s13 = smov %s1152_s20 }
 0x140   : > { %s1249_s14 = smov %s1090_s15  ;;  %s1250_s15 = smov %s1252_s17 }
 0x141   :  { %12 = sbr.rel (!%p10_p12) target bundleno = 3 (0x3), region = 104 }

// kernel: _lambda_.13
= control target key start
LH: loop header
LB: loop body
LE: loop exit
PB: predicated region body
PF: predicated region fallthrough
CT: control target
= control target key end

     0   :  { %s1270_s12 = smov 0   ;;  %s1272_s13 = smov 0   ;;  %s1424_s0 = inlined_call_operand.vmem [shape: bf16[16,2048], index: 0, kind: input, shape index: {}]   ;;  %s1425_s1 = inlined_call_operand.vmem [shape: bf16[2048,256], index: 1, kind: input, shape index: {}]   ;;  %s1426_s2 = inlined_call_operand.vmem [shape: f32[1,256], index: 2, kind: input, shape index: {}]   ;;  %s1427_s3 = inlined_call_operand.vmem [shape: f32[16,256], index: 3, kind: output, shape index: {}]  }
   0x1   :  { %s1274_s14 = smov 0   ;;  %s1276_s15 = smov 0  }
   0x2   :  { %s1278_s16 = smov 0  }
   0x3 LB: > { %s25_s17 = sadd.s32 1, %s1243_s15  ;;  %p48_p1 = scmp.ne.s32.totalorder %s1235_s13, %s1231_s12  ;;  %s1247_s16 = sphi %s1278_s16, %s13_s16   ;;  %s1243_s15 = sphi %s1276_s15, %s1431_s15   ;;  %s1239_s14 = sphi %s1274_s14, %s1430_s14   ;;  %s1235_s13 = sphi %s1272_s13, %s1429_s13   ;;  %s1231_s12 = sphi %s1270_s12, %s1428_s12  }
   0x4   : > { %p26_p0 = scmp.ge.s32.totalorder %s25_s17, 4  ;;  %p49_p2 = scmp.eq.s32.totalorder %s1247_s16, 0 }
   0x5   : > { %s41_s19 = sadd.s32 1, %s1235_s13  ;;  %p977_p5 = scmp.ge.s32.totalorder %s1247_s16, 4 }
   0x6   : > { %s1433_s17 = smov (%p26_p0, %s25_s17), 0  ;;  %p50_p3 = por %p49_p2, %p48_p1 }
   0x7   : > { %s37_s18 = ssub.s32 %s1243_s15, %s1433_s17  ;;  %164 = sbr.rel (%p977_p5) target bundleno = 21 (0x15), region = 20 }
   0x8   : > { %p39_p4 = scmp.eq.s32.totalorder %s37_s18, 0 }
   0xa   : > { %s1305_s20 = scalar_select %p39_p4, %s1235_s13, %s41_s19  }
   0xe   : > { %167 = sbr.rel (!%p50_p3) target bundleno = 21 (0x15), region = 24  ;;  %s169_s21 = sand.u32 (%p50_p3), 1, %s1235_s13  }
   0xf   : > { %s1060_s22 = sshll.u32 (%p50_p3), %s1243_s15, 4  ;;  %s978_s23 = sshll.u32 (%p50_p3), %s169_s21, 5 }
  0x10   : > { %s177_s26 = scalar_lea.vmem (%p50_p3), %s1424_s0, %s1060_s22  ;;  %s171_s27 = scalar_lea.vmem (%p50_p3), [#allocation3], %s978_s23 }
  0x11   : > { %v190_v0 = vld [vmem:[%s177_s26] sm:$0xff] (%p50_p3)  ;;  %v192_v1 = vld [vmem:[%s177_s26 + $0x8] sm:$0xff] (%p50_p3) }
  0x12   : > { %v194_v2 = vld [vmem:[%s177_s26 + $0x40] sm:$0xff] (%p50_p3)  ;;  %191 = vst [vmem:[%s171_s27] sm:$0xff] (%p50_p3), %v190_v0  ;;  %193 = vst [vmem:[%s171_s27 + $0x8] sm:$0xff] (%p50_p3), %v192_v1  ;;  %v196_v3 = vld [vmem:[%s177_s26 + $0x48] sm:$0xff] (%p50_p3) }
  0x13   : > { %195 = vst [vmem:[%s171_s27 + $0x10] sm:$0xff] (%p50_p3), %v194_v2  ;;  %197 = vst [vmem:[%s171_s27 + $0x18] sm:$0xff] (%p50_p3), %v196_v3 }
  0x15 PF: > { %p981_p6 = scmp.ge.s32.totalorder %s1247_s16, 1  ;;  %p217_p7 = scmp.lt.s32.totalorder %s1247_s16, 5 }
  0x17   : > { %p218_p8 = pnand %p981_p6, %p217_p7 }
  0x18   : > { %s224_s28 = sand.u32 (!%p218_p8), 1, %s1231_s12   ;;  %s983_s29 = sshll.u32 (!%p218_p8), %s1239_s14, 6 }
  0x19   : > { %221 = sbr.rel (%p218_p8) target bundleno = 338 (0x152), region = 51  ;;  %s982_s30 = sshll.u32 (!%p218_p8), %s224_s28, 5 }
  0x1a   : > { %p270_p9 = scmp.lt.s32.totalorder (!%p218_p8), %s983_s29, 255  ;;  %s1322_s8 = scalar_lea.vmem (!%p218_p8), [#allocation3], %s982_s30 }
  0x1b   : > { %p986_p10 = scmp.ne.s32.totalorder (!%p218_p8), %s1239_s14, 0 }
  0x20   : > { %s1435_s29 = smov (!%p270_p9, %s983_s29), 255  ;;  %300 = sbr.rel (%p986_p10) target bundleno = 39 (0x27), region = 59 }
  0x21   : > { %s1061_s4 = sshll.u32 %s1435_s29, 3  ;;  %v1249_v4 = vmov (!%p986_p10), 0.0  }
  0x22   : > { %s1320_s7 = scalar_lea.vmem %s1425_s1, %s1061_s4  ;;  %301 = vst [vmem:[#allocation2] sm:$0xff] (!%p986_p10), %v1249_v4  ;;  %302 = vst [vmem:[#allocation2 + $0x8] sm:$0xff] (!%p986_p10), %v1249_v4 }
  0x23   : > { %303 = vst [vmem:[#allocation2 + $0x10] sm:$0xff] (!%p986_p10), %v1249_v4  ;;  %304 = vst [vmem:[#allocation2 + $0x18] sm:$0xff] (!%p986_p10), %v1249_v4 }
  0x27 PF: > { %v1107_v5 = vld [vmem:[%s1320_s7 + $0x4] ss:$8 sps:$4 sm:$0xff]   ;;  %v1111_v7 = vld [vmem:[%s1320_s7] ss:$8 sps:$4 sm:$0xff]   ;;  %v1113_v9 = vld [vmem:[%s1320_s7 + $0x14] ss:$8 sps:$4 sm:$0xff]  }
  0x28   : > { %v1109_v6 = vld [vmem:[%s1320_s7 + $0x104] ss:$8 sps:$4 sm:$0xff]   ;;  %717 = vmatprep.subr.bf16.mxu1 %v1107_v5  ;;  %v1112_v8 = vld [vmem:[%s1320_s7 + $0x100] ss:$8 sps:$4 sm:$0xff]   ;;  %v1115_v10 = vld [vmem:[%s1320_s7 + $0x114] ss:$8 sps:$4 sm:$0xff]  }
  0x29   : > { %760 = vmatprep.subr.bf16.mxu0 %v1109_v6  ;;  %718 = vmatpush1.bf16.msra.mxu1 %v1111_v7  ;;  %v1117_v11 = vld [vmem:[%s1320_s7 + $0x10] ss:$8 sps:$4 sm:$0xff]   ;;  %v1119_v13 = vld [vmem:[%s1320_s7 + $0x24] ss:$8 sps:$4 sm:$0xff]   ;;  %v1123_v15 = vld [vmem:[%s1320_s7 + $0x20] ss:$8 sps:$4 sm:$0xff]  }
  0x2a   : > { %761 = vmatpush1.bf16.msra.mxu0 %v1112_v8  ;;  %719 = vmatprep.subr.bf16.mxu1 %v1113_v9  ;;  %v1118_v12 = vld [vmem:[%s1320_s7 + $0x110] ss:$8 sps:$4 sm:$0xff]   ;;  %v1121_v14 = vld [vmem:[%s1320_s7 + $0x124] ss:$8 sps:$4 sm:$0xff]   ;;  %v1124_v16 = vld [vmem:[%s1320_s7 + $0x120] ss:$8 sps:$4 sm:$0xff]  }
  0x2b   : > { %762 = vmatprep.subr.bf16.mxu0 %v1115_v10  ;;  %v1125_v17 = vld [vmem:[%s1320_s7 + $0x34] ss:$8 sps:$4 sm:$0xff]   ;;  %v1129_v19 = vld [vmem:[%s1320_s7 + $0x30] ss:$8 sps:$4 sm:$0xff]   ;;  %v1131_v21 = vld [vmem:[%s1320_s7 + $0x44] ss:$8 sps:$4 sm:$0xff]  }
  0x2c   : > { %v1127_v18 = vld [vmem:[%s1320_s7 + $0x134] ss:$8 sps:$4 sm:$0xff]   ;;  %v1130_v20 = vld [vmem:[%s1320_s7 + $0x130] ss:$8 sps:$4 sm:$0xff]   ;;  %v1133_v22 = vld [vmem:[%s1320_s7 + $0x144] ss:$8 sps:$4 sm:$0xff]  }
  0x2d   : > { %720 = vmatpush1.bf16.msra.mxu1 %v1117_v11  ;;  %v1135_v23 = vld [vmem:[%s1320_s7 + $0x40] ss:$8 sps:$4 sm:$0xff]   ;;  %v1137_v25 = vld [vmem:[%s1320_s7 + $0x54] ss:$8 sps:$4 sm:$0xff]   ;;  %v1141_v27 = vld [vmem:[%s1320_s7 + $0x50] ss:$8 sps:$4 sm:$0xff]  }
  0x2e   : > { %763 = vmatpush1.bf16.msra.mxu0 %v1118_v12  ;;  %721 = vmatprep.subr.bf16.mxu1 %v1119_v13  ;;  %v1136_v24 = vld [vmem:[%s1320_s7 + $0x140] ss:$8 sps:$4 sm:$0xff]   ;;  %v1139_v26 = vld [vmem:[%s1320_s7 + $0x154] ss:$8 sps:$4 sm:$0xff]   ;;  %v1142_v28 = vld [vmem:[%s1320_s7 + $0x150] ss:$8 sps:$4 sm:$0xff]  }
  0x2f   : > { %764 = vmatprep.subr.bf16.mxu0 %v1121_v14  ;;  %v1143_v29 = vld [vmem:[%s1320_s7 + $0x64] ss:$8 sps:$4 sm:$0xff]   ;;  %v1147_v31 = vld [vmem:[%s1320_s7 + $0x60] ss:$8 sps:$4 sm:$0xff]   ;;  %v1149_v33 = vld [vmem:[%s1320_s7 + $0x74] ss:$8 sps:$4 sm:$0xff]  }
  0x30   : > { %v1145_v30 = vld [vmem:[%s1320_s7 + $0x164] ss:$8 sps:$4 sm:$0xff]   ;;  %v1148_v32 = vld [vmem:[%s1320_s7 + $0x160] ss:$8 sps:$4 sm:$0xff]   ;;  %v1151_v34 = vld [vmem:[%s1320_s7 + $0x174] ss:$8 sps:$4 sm:$0xff]  }
  0x31   : > { %722 = vmatpush1.bf16.msra.mxu1 %v1123_v15  ;;  %v1153_v35 = vld [vmem:[%s1320_s7 + $0x70] ss:$8 sps:$4 sm:$0xff]   ;;  %v1155_v37 = vld [vmem:[%s1320_s7 + $0x84] ss:$8 sps:$4 sm:$0xff]   ;;  %v1159_v39 = vld [vmem:[%s1320_s7 + $0x80] ss:$8 sps:$4 sm:$0xff]  }
  0x32   : > { %765 = vmatpush1.bf16.msra.mxu0 %v1124_v16  ;;  %723 = vmatprep.subr.bf16.mxu1 %v1125_v17  ;;  %v1154_v36 = vld [vmem:[%s1320_s7 + $0x170] ss:$8 sps:$4 sm:$0xff]   ;;  %v1157_v38 = vld [vmem:[%s1320_s7 + $0x184] ss:$8 sps:$4 sm:$0xff]   ;;  %v1160_v40 = vld [vmem:[%s1320_s7 + $0x180] ss:$8 sps:$4 sm:$0xff]  }
  0x33   : > { %766 = vmatprep.subr.bf16.mxu0 %v1127_v18  ;;  %v1161_v41 = vld [vmem:[%s1320_s7 + $0x94] ss:$8 sps:$4 sm:$0xff]   ;;  %v1165_v43 = vld [vmem:[%s1320_s7 + $0x90] ss:$8 sps:$4 sm:$0xff]   ;;  %v1167_v45 = vld [vmem:[%s1320_s7 + $0xa4] ss:$8 sps:$4 sm:$0xff]  }
  0x34   : > { %v1163_v42 = vld [vmem:[%s1320_s7 + $0x194] ss:$8 sps:$4 sm:$0xff]   ;;  %v1166_v44 = vld [vmem:[%s1320_s7 + $0x190] ss:$8 sps:$4 sm:$0xff]   ;;  %v1169_v46 = vld [vmem:[%s1320_s7 + $0x1a4] ss:$8 sps:$4 sm:$0xff]  }
  0x35   : > { %724 = vmatpush1.bf16.msra.mxu1 %v1129_v19  ;;  %v1171_v47 = vld [vmem:[%s1320_s7 + $0xa0] ss:$8 sps:$4 sm:$0xff]   ;;  %v1173_v49 = vld [vmem:[%s1320_s7 + $0xb4] ss:$8 sps:$4 sm:$0xff]   ;;  %v1177_v51 = vld [vmem:[%s1320_s7 + $0xb0] ss:$8 sps:$4 sm:$0xff]  }
  0x36   : > { %767 = vmatpush1.bf16.msra.mxu0 %v1130_v20  ;;  %725 = vmatprep.subr.bf16.mxu1 %v1131_v21  ;;  %v1172_v48 = vld [vmem:[%s1320_s7 + $0x1a0] ss:$8 sps:$4 sm:$0xff]   ;;  %v1175_v50 = vld [vmem:[%s1320_s7 + $0x1b4] ss:$8 sps:$4 sm:$0xff]   ;;  %v1178_v53 = vld [vmem:[%s1320_s7 + $0x1b0] ss:$8 sps:$4 sm:$0xff]  }
  0x37   : > { %768 = vmatprep.subr.bf16.mxu0 %v1133_v22  ;;  %v1205_v52 = vld [vmem:[%s1322_s8 + $0x4] ss:$16 sps:$4 sm:$0xff]   ;;  %v1208_v56 = vld [vmem:[%s1322_s8 + $0xc] ss:$16 sps:$4 sm:$0xff]   ;;  %v1183_v57 = vld [vmem:[%s1320_s7 + $0xc0] ss:$8 sps:$4 sm:$0xff]  }
  0x38   : > { %v1179_v54 = vld [vmem:[%s1320_s7 + $0xc4] ss:$8 sps:$4 sm:$0xff]   ;;  %749 = vmatprep.mubr.bf16.mxu1 %v1205_v52  ;;  %792 = vmatprep.mubr.bf16.mxu0 %v1208_v56  ;;  %v1184_v58 = vld [vmem:[%s1320_s7 + $0x1c0] ss:$8 sps:$4 sm:$0xff]   ;;  %v1185_v59 = vld [vmem:[%s1320_s7 + $0xd4] ss:$8 sps:$4 sm:$0xff]  }
  0x39   : > { %726 = vmatpush1.bf16.msra.mxu1 %v1135_v23  ;;  %v1181_v55 = vld [vmem:[%s1320_s7 + $0x1c4] ss:$8 sps:$4 sm:$0xff]   ;;  %v1187_v60 = vld [vmem:[%s1320_s7 + $0x1d4] ss:$8 sps:$4 sm:$0xff]   ;;  %v1189_v61 = vld [vmem:[%s1320_s7 + $0xd0] ss:$8 sps:$4 sm:$0xff]  }
  0x3a   : > { %769 = vmatpush1.bf16.msra.mxu0 %v1136_v24  ;;  %727 = vmatprep.subr.bf16.mxu1 %v1137_v25  ;;  %v1190_v62 = vld [vmem:[%s1320_s7 + $0x1d0] ss:$8 sps:$4 sm:$0xff]   ;;  %v1191_v63 = vld [vmem:[%s1320_s7 + $0xe4] ss:$8 sps:$4 sm:$0xff]   ;;  %v1195_v1 = vld [vmem:[%s1320_s7 + $0xe0] ss:$8 sps:$4 sm:$0xff]  }
  0x3b   : > { %770 = vmatprep.subr.bf16.mxu0 %v1139_v26  ;;  %v1193_v0 = vld [vmem:[%s1320_s7 + $0x1e4] ss:$8 sps:$4 sm:$0xff]   ;;  %v1196_v2 = vld [vmem:[%s1320_s7 + $0x1e0] ss:$8 sps:$4 sm:$0xff]   ;;  %v1197_v3 = vld [vmem:[%s1320_s7 + $0xf4] ss:$8 sps:$4 sm:$0xff]  }
  0x3c   : > { %v1199_v4 = vld [vmem:[%s1320_s7 + $0x1f4] ss:$8 sps:$4 sm:$0xff]   ;;  %v1201_v5 = vld [vmem:[%s1320_s7 + $0xf0] ss:$8 sps:$4 sm:$0xff]   ;;  %v305_v10 = vld [vmem:[#allocation2] sm:$0xff]  ;;  %p1055_p11 = scmp.ne.s32.totalorder %s1239_s14, 3 }
  0x3d   : > { %728 = vmatpush1.bf16.msra.mxu1 %v1141_v27  ;;  %v1202_v6 = vld [vmem:[%s1320_s7 + $0x1f0] ss:$8 sps:$4 sm:$0xff]   ;;  %v306_v14 = vld [vmem:[#allocation2 + $0x8] sm:$0xff] }
  0x3e   : > { %771 = vmatpush1.bf16.msra.mxu0 %v1142_v28  ;;  %729 = vmatprep.subr.bf16.mxu1 %v1143_v29  ;;  %v1203_v7 = vld [vmem:[%s1322_s8] ss:$16 sps:$4 sm:$0xff]   ;;  %v1206_v8 = vld [vmem:[%s1322_s8 + $0x8] ss:$16 sps:$4 sm:$0xff]   ;;  %v821_v29 = vlaneseq (!%p1055_p11) }
  0x3f   : > { %772 = vmatprep.subr.bf16.mxu0 %v1145_v30  ;;  %v307_v18 = vld [vmem:[#allocation2 + $0x10] sm:$0xff]  ;;  %v308_v23 = vld [vmem:[#allocation2 + $0x18] sm:$0xff] }
  0x40   : > { %v822_v30 = vshrl.u32 (!%p1055_p11), %v821_v29, 7 }
  0x41   : > { %730 = vmatpush1.bf16.msra.mxu1 %v1147_v31  ;;  %v819_v31 = vld [vmem:[%s1426_s2] sm:$0x3] (!%p1055_p11) }
  0x42   : > { %773 = vmatpush1.bf16.msra.mxu0 %v1148_v32  ;;  %731 = vmatprep.subr.bf16.mxu1 %v1149_v33  ;;  %v823_v33 = vsub.s32 (!%p1055_p11), 0, %v822_v30 }
  0x43   : > { %774 = vmatprep.subr.bf16.mxu0 %v1151_v34  ;;  %v827_v34 = vsub.s32 (!%p1055_p11), 1, %v822_v30 }
  0x45   : > { %732 = vmatpush1.bf16.msra.mxu1 %v1153_v35 }
  0x46   : > { %775 = vmatpush1.bf16.msra.mxu0 %v1154_v36  ;;  %733 = vmatprep.subr.bf16.mxu1 %v1155_v37 }
  0x47   : > { %776 = vmatprep.subr.bf16.mxu0 %v1157_v38  ;;  %v824_v38 = vrot.slane (!%p1055_p11), %v819_v31, %v823_v33 }
  0x49   : > { %734 = vmatpush1.bf16.msra.mxu1 %v1159_v39  ;;  %v828_v39 = vrot.slane (!%p1055_p11), %v819_v31, %v827_v34 }
  0x4a   : > { %777 = vmatpush1.bf16.msra.mxu0 %v1160_v40  ;;  %735 = vmatprep.subr.bf16.mxu1 %v1161_v41 }
  0x4b   : > { %778 = vmatprep.subr.bf16.mxu0 %v1163_v42 }
  0x4d   : > { %736 = vmatpush1.bf16.msra.mxu1 %v1165_v43 }
  0x4e   : > { %779 = vmatpush1.bf16.msra.mxu0 %v1166_v44  ;;  %737 = vmatprep.subr.bf16.mxu1 %v1167_v45 }
  0x4f   : > { %780 = vmatprep.subr.bf16.mxu0 %v1169_v46 }
  0x51   : > { %738 = vmatpush1.bf16.msra.mxu1 %v1171_v47 }
  0x52   : > { %781 = vmatpush1.bf16.msra.mxu0 %v1172_v48  ;;  %739 = vmatprep.subr.bf16.mxu1 %v1173_v49 }
  0x53   : > { %782 = vmatprep.subr.bf16.mxu0 %v1175_v50 }
  0x55   : > { %740 = vmatpush1.bf16.msra.mxu1 %v1177_v51 }
  0x56   : > { %783 = vmatpush1.bf16.msra.mxu0 %v1178_v53  ;;  %741 = vmatprep.subr.bf16.mxu1 %v1179_v54 }
  0x57   : > { %784 = vmatprep.subr.bf16.mxu0 %v1181_v55 }
  0x59   : > { %742 = vmatpush1.bf16.msra.mxu1 %v1183_v57 }
  0x5a   : > { %785 = vmatpush1.bf16.msra.mxu0 %v1184_v58  ;;  %743 = vmatprep.subr.bf16.mxu1 %v1185_v59 }
  0x5b   : > { %786 = vmatprep.subr.bf16.mxu0 %v1187_v60 }
  0x5d   : > { %744 = vmatpush1.bf16.msra.mxu1 %v1189_v61 }
  0x5e   : > { %787 = vmatpush1.bf16.msra.mxu0 %v1190_v62  ;;  %745 = vmatprep.subr.bf16.mxu1 %v1191_v63 }
  0x5f   : > { %788 = vmatprep.subr.bf16.mxu0 %v1193_v0 }
  0x61   : > { %746 = vmatpush1.bf16.msra.mxu1 %v1195_v1 }
  0x62   : > { %789 = vmatpush1.bf16.msra.mxu0 %v1196_v2  ;;  %747 = vmatprep.subr.bf16.mxu1 %v1197_v3 }
  0x63   : > { %790 = vmatprep.subr.bf16.mxu0 %v1199_v4 }
  0x65   : > { %748 = vmatpush1.bf16.msra.mxu1 %v1201_v5 }
  0x66   : > { %791 = vmatpush1.bf16.msra.mxu0 %v1202_v6 }
  0x68   : > { %750 = vmatmul.mubr.bf16.vlgmr.msra.gmra.mrb[0].mxu1 %v1203_v7 }
  0x69   : > { %793 = vmatmul.mubr.bf16.vlgmr.msra.gmra.mrb[0].mxu0 %v1206_v8 }
 0x13b   : > { %v751_v9 = vpop.f32.mrb[0].mxu1 }
 0x13c   : > { %v794_v11 = vpop.f32.mrb[0].mxu0  ;;  %v753_v13 = vpop.f32.mrb[1].mxu1 }
 0x13d   : > { %v795_v12 = vadd.f32 %v794_v11, %v751_v9  ;;  %v796_v15 = vpop.f32.mrb[1].mxu0  ;;  %v755_v17 = vpop.f32.mrb[2].mxu1 }
 0x13e   : > { %v797_v16 = vadd.f32 %v796_v15, %v753_v13  ;;  %v798_v19 = vpop.f32.mrb[2].mxu0  ;;  %v757_v22 = vpop.f32.mrb[3].mxu1  ;;  %814 = sbr.rel (%p1055_p11) target bundleno = 338 (0x152), region = 63 }
 0x13f   : > { %v803_v20 = vadd.f32 %v795_v12, %v305_v10  ;;  %v799_v21 = vadd.f32 %v798_v19, %v755_v17  ;;  %v800_v24 = vpop.f32.mrb[3].mxu0 }
 0x140   : > { %v804_v25 = vadd.f32 %v797_v16, %v306_v14  ;;  %v801_v26 = vadd.f32 %v800_v24, %v757_v22 }
 0x141   : > { %807 = vst [vmem:[#allocation2] sm:$0xff] %v803_v20  ;;  %v805_v27 = vadd.f32 %v799_v21, %v307_v18 }
 0x142   : > { %808 = vst [vmem:[#allocation2 + $0x8] sm:$0xff] %v804_v25  ;;  %v806_v28 = vadd.f32 %v801_v26, %v308_v23 }
 0x143   : > { %809 = vst [vmem:[#allocation2 + $0x10] sm:$0xff] %v805_v27 }
 0x144   : > { %810 = vst [vmem:[#allocation2 + $0x18] sm:$0xff] %v806_v28 }
 0x148   : > { %v815_v32 = vld [vmem:[#allocation2] sm:$0xff] }
 0x149   : > { %v816_v35 = vld [vmem:[#allocation2 + $0x8] sm:$0xff]  ;;  %v831_v40 = vadd.f32 %v824_v38, %v815_v32 }
 0x14a   : > { %v817_v36 = vld [vmem:[#allocation2 + $0x10] sm:$0xff]  ;;  %v832_v41 = vadd.f32 %v828_v39, %v816_v35 }
 0x14b   : > { %v818_v37 = vld [vmem:[#allocation2 + $0x18] sm:$0xff]  ;;  %v833_v42 = vadd.f32 %v824_v38, %v817_v36  ;;  %vm835_vm0 = vcmp.ge.f32.partialorder %v831_v40, 0.0  ;;  %v839_v44 = vmul.f32 0.2, %v831_v40 }
 0x14c   : > { %v834_v43 = vadd.f32 %v828_v39, %v818_v37  ;;  %vm836_vm1 = vcmp.ge.f32.partialorder %v832_v41, 0.0  ;;  %v840_v45 = vmul.f32 0.2, %v832_v41 }
 0x14d   : > { %vm837_vm2 = vcmp.ge.f32.partialorder %v833_v42, 0.0  ;;  %v841_v46 = vmul.f32 0.2, %v833_v42  ;;  %v843_v48 = vsel %vm835_vm0, %v831_v40, %v839_v44 }
 0x14e   : > { %vm838_vm3 = vcmp.ge.f32.partialorder %v834_v43, 0.0  ;;  %v842_v47 = vmul.f32 0.2, %v834_v43  ;;  %v844_v49 = vsel %vm836_vm1, %v832_v41, %v840_v45  ;;  %847 = vst [vmem:[%s1427_s3] sm:$0xff] %v843_v48 }
 0x14f   : > { %848 = vst [vmem:[%s1427_s3 + $0x8] sm:$0xff] %v844_v49  ;;  %v845_v50 = vsel %vm837_vm2, %v833_v42, %v841_v46 }
 0x150   : > { %v846_v51 = vsel %vm838_vm3, %v834_v43, %v842_v47  ;;  %849 = vst [vmem:[%s1427_s3 + $0x10] sm:$0xff] %v845_v50 }
 0x151   : > { %850 = vst [vmem:[%s1427_s3 + $0x18] sm:$0xff] %v846_v51 }
 0x152 PF: > { %s13_s16 = sadd.s32 1, %s1247_s16   ;;  %s1428_s12 = smov %s1235_s13 }
 0x153   : > { %p10_p12 = scmp.ge.s32.totalorder %s13_s16, 6   ;;  %s1429_s13 = smov %s1305_s20 }
 0x154   : > { %s1430_s14 = smov %s1243_s15  ;;  %s1431_s15 = smov %s1433_s17 }
 0x155   :  { %12 = sbr.rel (!%p10_p12) target bundleno = 3 (0x3), region = 104 }

// kernel: _lambda_.14
= control target key start
LH: loop header
LB: loop body
LE: loop exit
PB: predicated region body
PF: predicated region fallthrough
CT: control target
= control target key end

     0   :  { %s1044_s12 = smov 0   ;;  %s1046_s13 = smov 0   ;;  %s1160_s0 = inlined_call_operand.vmem [shape: bf16[32,2304], index: 0, kind: input, shape index: {}]   ;;  %s1161_s1 = inlined_call_operand.vmem [shape: bf16[2304,128], index: 1, kind: input, shape index: {}]   ;;  %s1162_s2 = inlined_call_operand.vmem [shape: f32[1,128], index: 2, kind: input, shape index: {}]   ;;  %s1163_s3 = inlined_call_operand.vmem [shape: f32[32,128], index: 3, kind: output, shape index: {}]  }
   0x1   :  { %s1048_s14 = smov 0   ;;  %s1050_s15 = smov 0  }
   0x2   :  { %s1052_s16 = smov 0  }
   0x3 LB: > { %s25_s17 = sadd.s32 1, %s1017_s15  ;;  %p48_p1 = scmp.ne.s32.totalorder %s1009_s13, %s1005_s12  ;;  %s1021_s16 = sphi %s1052_s16, %s13_s16   ;;  %s1017_s15 = sphi %s1050_s15, %s1167_s15   ;;  %s1013_s14 = sphi %s1048_s14, %s1166_s14   ;;  %s1009_s13 = sphi %s1046_s13, %s1165_s13   ;;  %s1005_s12 = sphi %s1044_s12, %s1164_s12  }
   0x4   : > { %p26_p0 = scmp.ge.s32.totalorder %s25_s17, 6  ;;  %p49_p2 = scmp.eq.s32.totalorder %s1021_s16, 0 }
   0x5   : > { %s41_s19 = sadd.s32 1, %s1009_s13  ;;  %p800_p5 = scmp.ge.s32.totalorder %s1021_s16, 6 }
   0x6   : > { %s1169_s17 = smov (%p26_p0, %s25_s17), 0  ;;  %p50_p3 = por %p49_p2, %p48_p1 }
   0x7   : > { %s37_s18 = ssub.s32 %s1017_s15, %s1169_s17  ;;  %162 = sbr.rel (%p800_p5) target bundleno = 23 (0x17), region = 20 }
   0x8   : > { %p39_p4 = scmp.eq.s32.totalorder %s37_s18, 0 }
   0xa   : > { %s1079_s20 = scalar_select %p39_p4, %s1009_s13, %s41_s19  }
   0xe   : > { %165 = sbr.rel (!%p50_p3) target bundleno = 23 (0x17), region = 24  ;;  %s167_s21 = sand.u32 (%p50_p3), 1, %s1009_s13  }
   0xf   : > { %s849_s22 = smul.u32 (%p50_p3), 12, %s1017_s15 }
  0x10   : > { %s908_s23 = smul.u32 (%p50_p3), 48, %s167_s21 }
  0x11   : > { %s175_s26 = scalar_lea.vmem (%p50_p3), %s1160_s0, %s849_s22 }
  0x12   : > { %v190_v0 = vld [vmem:[%s175_s26] sm:$0xff] (%p50_p3)  ;;  %v192_v1 = vld [vmem:[%s175_s26 + $0x48] sm:$0xff] (%p50_p3)  ;;  %v194_v2 = vld [vmem:[%s175_s26 + $0x90] sm:$0xff] (%p50_p3)  ;;  %s169_s27 = scalar_lea.vmem (%p50_p3), [#allocation3], %s908_s23 }
  0x13   : > { %191 = vst [vmem:[%s169_s27] sm:$0xff] (%p50_p3), %v190_v0  ;;  %193 = vst [vmem:[%s169_s27 + $0xc] sm:$0xff] (%p50_p3), %v192_v1  ;;  %v196_v3 = vld [vmem:[%s175_s26 + $0xd8] sm:$0xff] (%p50_p3)  ;;  %v802_v4 = vld [vmem:[%s175_s26 + $0x8] sm:$0xf] (%p50_p3) }
  0x14   : > { %195 = vst [vmem:[%s169_s27 + $0x18] sm:$0xff] (%p50_p3), %v194_v2  ;;  %v804_v5 = vld [vmem:[%s175_s26 + $0x50] sm:$0xf] (%p50_p3)  ;;  %197 = vst [vmem:[%s169_s27 + $0x24] sm:$0xff] (%p50_p3), %v196_v3  ;;  %v806_v6 = vld [vmem:[%s175_s26 + $0x98] sm:$0xf] (%p50_p3) }
  0x15   : > { %803 = vst [vmem:[%s169_s27 + $0x8] sm:$0xf] %v802_v4  ;;  %805 = vst [vmem:[%s169_s27 + $0x14] sm:$0xf] %v804_v5  ;;  %v808_v7 = vld [vmem:[%s175_s26 + $0xe0] sm:$0xf] }
  0x16   : > { %807 = vst [vmem:[%s169_s27 + $0x20] sm:$0xf] %v806_v6  ;;  %809 = vst [vmem:[%s169_s27 + $0x2c] sm:$0xf] %v808_v7 }
  0x17 PF: > { %p810_p6 = scmp.ge.s32.totalorder %s1021_s16, 1  ;;  %p229_p7 = scmp.lt.s32.totalorder %s1021_s16, 7 }
  0x19   : > { %p230_p8 = pnand %p810_p6, %p229_p7 }
  0x1a   : > { %s236_s28 = sand.u32 (!%p230_p8), 1, %s1005_s12   ;;  %s275_s29 = smul.u32 (!%p230_p8), 48, %s1013_s14 }
  0x1b   : > { %233 = sbr.rel (%p230_p8) target bundleno = 317 (0x13d), region = 54  ;;  %p812_p10 = scmp.ne.s32.totalorder (!%p230_p8), %s1013_s14, 0 }
  0x1c   : > { %s909_s30 = smul.u32 (!%p230_p8), 48, %s236_s28  ;;  %p276_p9 = scmp.lt.s32.totalorder (!%p230_p8), %s275_s29, 287 }
  0x1e   : > { %s1096_s8 = scalar_lea.vmem (!%p230_p8), [#allocation3], %s909_s30 }
  0x22   : > { %s1171_s29 = smov (!%p276_p9, %s275_s29), 287  ;;  %300 = sbr.rel (%p812_p10) target bundleno = 41 (0x29), region = 62 }
  0x23   : > { %s811_s4 = sshll.u32 %s1171_s29, 2  ;;  %v1023_v8 = vmov (!%p812_p10), 0.0  }
  0x24   : > { %s1094_s7 = scalar_lea.vmem %s1161_s1, %s811_s4  ;;  %301 = vst [vmem:[#allocation2] sm:$0xff] (!%p812_p10), %v1023_v8  ;;  %302 = vst [vmem:[#allocation2 + $0x8] sm:$0xff] (!%p812_p10), %v1023_v8 }
  0x25   : > { %303 = vst [vmem:[#allocation2 + $0x10] sm:$0xff] (!%p812_p10), %v1023_v8  ;;  %304 = vst [vmem:[#allocation2 + $0x18] sm:$0xff] (!%p812_p10), %v1023_v8 }
  0x29 PF: > { %v951_v9 = vld [vmem:[%s1094_s7 + $0x40] sm:$0xff]   ;;  %v954_v12 = vld [vmem:[%s1094_s7 + $0x48] sm:$0xff]   ;;  %v957_v15 = vld [vmem:[%s1094_s7 + $0x50] sm:$0xff]   ;;  %p843_p11 = scmp.ne.s32.totalorder %s1013_s14, 5 }
  0x2a   : > { %v952_v10 = vld [vmem:[%s1094_s7] sm:$0xff]   ;;  %850 = vmatprep.subr.bf16.mxu0 %v951_v9  ;;  %v955_v13 = vld [vmem:[%s1094_s7 + $0x8] sm:$0xff]   ;;  %v958_v16 = vld [vmem:[%s1094_s7 + $0x10] sm:$0xff]  }
  0x2b   : > { %v953_v11 = vld [vmem:[%s1094_s7 + $0x80] sm:$0xff]   ;;  %851 = vmatpush3.bf16.msra.mxu0 %v952_v10  ;;  %v956_v14 = vld [vmem:[%s1094_s7 + $0x88] sm:$0xff]   ;;  %v959_v17 = vld [vmem:[%s1094_s7 + $0x90] sm:$0xff]  }
  0x2c   : > { %888 = vmatprep.subr.bf16.mxu1 %v953_v11  ;;  %852 = vmatprep.subr.bf16.mxu0 %v954_v12  ;;  %v960_v18 = vld [vmem:[%s1094_s7 + $0x58] sm:$0xff]   ;;  %v963_v21 = vld [vmem:[%s1094_s7 + $0x60] sm:$0xff]   ;;  %v966_v24 = vld [vmem:[%s1094_s7 + $0x68] sm:$0xff]  }
  0x2d   : > { %889 = vmatpush3.bf16.msra.mxu1 %v953_v11  ;;  %v961_v19 = vld [vmem:[%s1094_s7 + $0x18] sm:$0xff]   ;;  %v965_v22 = vld [vmem:[%s1094_s7 + $0xa0] sm:$0xff]   ;;  %v968_v25 = vld [vmem:[%s1094_s7 + $0xa8] sm:$0xff]  }
  0x2e   : > { %890 = vmatprep.subr.bf16.mxu1 %v956_v14  ;;  %v962_v20 = vld [vmem:[%s1094_s7 + $0x98] sm:$0xff]   ;;  %v964_v23 = vld [vmem:[%s1094_s7 + $0x20] sm:$0xff]   ;;  %v967_v26 = vld [vmem:[%s1094_s7 + $0x28] sm:$0xff]  }
  0x2f   : > { %853 = vmatpush3.bf16.msra.mxu0 %v955_v13  ;;  %v969_v27 = vld [vmem:[%s1094_s7 + $0x70] sm:$0xff]   ;;  %v972_v30 = vld [vmem:[%s1094_s7 + $0x78] sm:$0xff]   ;;  %v305_v45 = vld [vmem:[#allocation2] sm:$0xff] }
  0x30   : > { %854 = vmatprep.subr.bf16.mxu0 %v957_v15  ;;  %v970_v28 = vld [vmem:[%s1094_s7 + $0x30] sm:$0xff]   ;;  %v974_v31 = vld [vmem:[%s1094_s7 + $0xb8] sm:$0xff]   ;;  %v306_v50 = vld [vmem:[#allocation2 + $0x8] sm:$0xff] }
  0x31   : > { %891 = vmatpush3.bf16.msra.mxu1 %v956_v14  ;;  %v971_v29 = vld [vmem:[%s1094_s7 + $0xb0] sm:$0xff]   ;;  %v973_v34 = vld [vmem:[%s1094_s7 + $0x38] sm:$0xff]   ;;  %v844_v4 = vld [vmem:[%s1162_s2] ss:$0 sm:$0xff] (!%p843_p11) }
  0x32   : > { %892 = vmatprep.subr.bf16.mxu1 %v959_v17  ;;  %v977_v32 = vld [vmem:[%s1096_s8 + $0x4] ss:$12 sps:$4 sm:$0xff]   ;;  %v978_v33 = vld [vmem:[%s1096_s8 + $0x8] ss:$12 sps:$4 sm:$0xff]   ;;  %v975_v35 = vld [vmem:[%s1096_s8] ss:$12 sps:$4 sm:$0xff]  }
  0x33   : > { %855 = vmatpush3.bf16.msra.mxu0 %v958_v16  ;;  %573 = vmatprep.mubr.bf16.mxu0 %v977_v32  ;;  %v980_v36 = vld [vmem:[%s1096_s8 + $0x1c] ss:$12 sps:$4 sm:$0xff]   ;;  %v979_v37 = vld [vmem:[%s1096_s8 + $0x20] ss:$12 sps:$4 sm:$0xff]   ;;  %v982_v38 = vld [vmem:[%s1096_s8 + $0x18] ss:$12 sps:$4 sm:$0xff]  }
  0x34   : > { %856 = vmatprep.subr.bf16.mxu0 %v960_v18  ;;  %904 = vmatprep.mubr.bf16.mxu1 %v978_v33  ;;  %v307_v59 = vld [vmem:[#allocation2 + $0x10] sm:$0xff]  ;;  %v308_v63 = vld [vmem:[#allocation2 + $0x18] sm:$0xff] }
  0x35   : > { %893 = vmatpush3.bf16.msra.mxu1 %v959_v17 }
  0x36   : > { %894 = vmatprep.subr.bf16.mxu1 %v962_v20 }
  0x37   : > { %857 = vmatpush3.bf16.msra.mxu0 %v961_v19 }
  0x38   : > { %858 = vmatprep.subr.bf16.mxu0 %v963_v21 }
  0x39   : > { %895 = vmatpush3.bf16.msra.mxu1 %v962_v20 }
  0x3a   : > { %896 = vmatprep.subr.bf16.mxu1 %v965_v22 }
  0x3b   : > { %859 = vmatpush3.bf16.msra.mxu0 %v964_v23 }
  0x3c   : > { %860 = vmatprep.subr.bf16.mxu0 %v966_v24 }
  0x3d   : > { %897 = vmatpush3.bf16.msra.mxu1 %v965_v22 }
  0x3e   : > { %898 = vmatprep.subr.bf16.mxu1 %v968_v25 }
  0x3f   : > { %861 = vmatpush3.bf16.msra.mxu0 %v967_v26 }
  0x40   : > { %862 = vmatprep.subr.bf16.mxu0 %v969_v27 }
  0x41   : > { %899 = vmatpush3.bf16.msra.mxu1 %v968_v25 }
  0x42   : > { %900 = vmatprep.subr.bf16.mxu1 %v971_v29 }
  0x43   : > { %863 = vmatpush3.bf16.msra.mxu0 %v970_v28 }
  0x44   : > { %864 = vmatprep.subr.bf16.mxu0 %v972_v30 }
  0x45   : > { %901 = vmatpush3.bf16.msra.mxu1 %v971_v29 }
  0x46   : > { %902 = vmatprep.subr.bf16.mxu1 %v974_v31 }
  0x47   : > { %865 = vmatpush3.bf16.msra.mxu0 %v973_v34 }
  0x49   : > { %903 = vmatpush3.bf16.msra.mxu1 %v974_v31 }
  0x4a   : > { %574 = vmatmul.mubr.bf16.vlgmr.msra.gmra.mrb[0].mxu0 %v975_v35 }
  0x4b   : > { %581 = vmatprep.mubr.bf16.mxu0 %v980_v36 }
  0x4c   : > { %905 = vmatmul.mubr.bf16.vlgmr.msra.gmra.mrb[0].mxu1 %v979_v37 }
  0x52   : > { %582 = vmatmul.mubr.bf16.gmra.mrb[4].mxu0 %v982_v38 }
 0x11d   : > { %v866_v39 = vpop.f32.mrb[0].mxu0 }
 0x11e   : > { %v867_v40 = vpop.f32.mrb[1].mxu0 }
 0x11f   : > { %v868_v41 = vadd.f32 %v867_v40, %v866_v39  ;;  %v869_v42 = vpop.f32.mrb[2].mxu0  ;;  %v906_v43 = vpop.f32.mrb[0].mxu1 }
 0x120   : > { %v870_v44 = vpop.f32.mrb[3].mxu0  ;;  %v624_v46 = vpop.f32.mrb[1].mxu1 }
 0x121   : > { %v871_v47 = vadd.f32 %v870_v44, %v869_v42  ;;  %v625_v48 = vadd.f32 %v868_v41, %v624_v46  ;;  %v907_v49 = vpop.f32.mrb[2].mxu1 }
 0x122   : > { %v627_v51 = vpop.f32.mrb[3].mxu1 }
 0x123   : > { %v639_v52 = vadd.f32 %v625_v48, %v305_v45  ;;  %v628_v53 = vadd.f32 %v871_v47, %v627_v51 }
 0x125   : > { %643 = vst [vmem:[#allocation2] sm:$0xff] %v639_v52  ;;  %v640_v54 = vadd.f32 %v628_v53, %v306_v50  ;;  %v872_v55 = vpop.f32.mrb[4].mxu0 }
 0x126   : > { %v873_v56 = vpop.f32.mrb[5].mxu0 }
 0x127   : > { %644 = vst [vmem:[#allocation2 + $0x8] sm:$0xff] %v640_v54  ;;  %v874_v57 = vadd.f32 %v873_v56, %v872_v55  ;;  %v875_v58 = vpop.f32.mrb[6].mxu0 }
 0x128   : > { %v876_v60 = vpop.f32.mrb[7].mxu0 }
 0x129   : > { %v633_v61 = vadd.f32 %v906_v43, %v874_v57  ;;  %v877_v62 = vadd.f32 %v876_v60, %v875_v58  ;;  %650 = sbr.rel (%p843_p11) target bundleno = 317 (0x13d), region = 66 }
 0x12b   : > { %v641_v0 = vadd.f32 %v633_v61, %v307_v59  ;;  %v636_v1 = vadd.f32 %v907_v49, %v877_v62 }
 0x12c   : > { %v651_v3 = vld [vmem:[#allocation2] sm:$0xff] (!%p843_p11) }
 0x12d   : > { %645 = vst [vmem:[#allocation2 + $0x10] sm:$0xff] %v641_v0  ;;  %v642_v2 = vadd.f32 %v636_v1, %v308_v63  ;;  %v662_v6 = vadd.f32 (!%p843_p11), %v844_v4, %v651_v3 }
 0x12e   : > { %v652_v5 = vld [vmem:[#allocation2 + $0x8] sm:$0xff] (!%p843_p11) }
 0x12f   : > { %646 = vst [vmem:[#allocation2 + $0x18] sm:$0xff] %v642_v2  ;;  %v663_v7 = vadd.f32 (!%p843_p11), %v844_v4, %v652_v5  ;;  %vm666_vm0 = vcmp.ge.f32.partialorder (!%p843_p11), %v662_v6, 0.0  ;;  %v670_v12 = vmul.f32 (!%p843_p11), 0.2, %v662_v6 }
 0x131   : > { %vm667_vm1 = vcmp.ge.f32.partialorder %v663_v7, 0.0  ;;  %v671_v13 = vmul.f32 0.2, %v663_v7  ;;  %v674_v16 = vsel %vm666_vm0, %v662_v6, %v670_v12 }
 0x132   : > { %678 = vst [vmem:[%s1163_s3] sm:$0xff] %v674_v16 }
 0x133   : > { %v675_v17 = vsel %vm667_vm1, %v663_v7, %v671_v13 }
 0x134   : > { %v653_v8 = vld [vmem:[#allocation2 + $0x10] sm:$0xff]  ;;  %679 = vst [vmem:[%s1163_s3 + $0x8] sm:$0xff] %v675_v17 }
 0x135   : > { %v664_v10 = vadd.f32 %v844_v4, %v653_v8 }
 0x136   : > { %v654_v9 = vld [vmem:[#allocation2 + $0x18] sm:$0xff] }
 0x137   : > { %v665_v11 = vadd.f32 %v844_v4, %v654_v9  ;;  %vm668_vm2 = vcmp.ge.f32.partialorder %v664_v10, 0.0  ;;  %v672_v14 = vmul.f32 0.2, %v664_v10 }
 0x139   : > { %vm669_vm3 = vcmp.ge.f32.partialorder %v665_v11, 0.0  ;;  %v673_v15 = vmul.f32 0.2, %v665_v11  ;;  %v676_v18 = vsel %vm668_vm2, %v664_v10, %v672_v14 }
 0x13a   : > { %680 = vst [vmem:[%s1163_s3 + $0x10] sm:$0xff] %v676_v18 }
 0x13b   : > { %v677_v19 = vsel %vm669_vm3, %v665_v11, %v673_v15 }
 0x13c   : > { %681 = vst [vmem:[%s1163_s3 + $0x18] sm:$0xff] %v677_v19 }
 0x13d PF: > { %s13_s16 = sadd.s32 1, %s1021_s16   ;;  %s1164_s12 = smov %s1009_s13 }
 0x13e   : > { %p10_p12 = scmp.ge.s32.totalorder %s13_s16, 8   ;;  %s1165_s13 = smov %s1079_s20 }
 0x13f   : > { %s1166_s14 = smov %s1017_s15  ;;  %s1167_s15 = smov %s1169_s17 }
 0x140   :  { %12 = sbr.rel (!%p10_p12) target bundleno = 3 (0x3), region = 113 }

// kernel: _lambda_.15
= control target key start
LH: loop header
LB: loop body
LE: loop exit
PB: predicated region body
PF: predicated region fallthrough
CT: control target
= control target key end

     0   :  { %s1548_s12 = smov 0   ;;  %s1550_s13 = smov 0   ;;  %s1804_s0 = inlined_call_operand.vmem [shape: bf16[128,1152], index: 0, kind: input, shape index: {}]   ;;  %s1805_s1 = inlined_call_operand.vmem [shape: bf16[1152,128], index: 1, kind: input, shape index: {}]   ;;  %s1806_s2 = inlined_call_operand.vmem [shape: f32[1,128], index: 2, kind: input, shape index: {}]   ;;  %s1807_s3 = inlined_call_operand.vmem [shape: f32[128,128], index: 3, kind: output, shape index: {}]  }
   0x1   :  { %s1552_s14 = smov 0   ;;  %s1554_s15 = smov 0  }
   0x2   :  { %s1556_s16 = smov 0  }
   0x3 LB: > { %s25_s17 = sadd.s32 1, %s1521_s15  ;;  %p48_p1 = scmp.ne.s32.totalorder %s1513_s13, %s1509_s12  ;;  %s1525_s16 = sphi %s1556_s16, %s13_s16   ;;  %s1521_s15 = sphi %s1554_s15, %s1811_s15   ;;  %s1517_s14 = sphi %s1552_s14, %s1810_s14   ;;  %s1513_s13 = sphi %s1550_s13, %s1809_s13   ;;  %s1509_s12 = sphi %s1548_s12, %s1808_s12  }
   0x4   : > { %p26_p0 = scmp.ge.s32.totalorder %s25_s17, 3  ;;  %p49_p2 = scmp.eq.s32.totalorder %s1525_s16, 0 }
   0x5   : > { %s41_s19 = sadd.s32 1, %s1513_s13  ;;  %p1184_p5 = scmp.ge.s32.totalorder %s1525_s16, 3 }
   0x6   : > { %s1813_s17 = smov (%p26_p0, %s25_s17), 0  ;;  %p50_p3 = por %p49_p2, %p48_p1 }
   0x7   : > { %s37_s18 = ssub.s32 %s1521_s15, %s1813_s17  ;;  %162 = sbr.rel (%p1184_p5) target bundleno = 37 (0x25), region = 20 }
   0x8   : > { %p39_p4 = scmp.eq.s32.totalorder %s37_s18, 0 }
   0xa   : > { %s1583_s20 = scalar_select %p39_p4, %s1513_s13, %s41_s19  }
   0xe   : > { %165 = sbr.rel (!%p50_p3) target bundleno = 37 (0x25), region = 24  ;;  %s167_s21 = sand.u32 (%p50_p3), 1, %s1513_s13  }
   0xf   : > { %s1275_s22 = smul.u32 (%p50_p3), 12, %s1521_s15 }
  0x10   : > { %s1388_s23 = smul.u32 (%p50_p3), 192, %s167_s21 }
  0x11   : > { %s1591_s26 = scalar_lea.vmem (%p50_p3), %s1804_s0, %s1275_s22 }
  0x12   : > { %v190_v0 = vld [vmem:[%s1591_s26] sm:$0xff] (%p50_p3)  ;;  %v194_v2 = vld [vmem:[%s1591_s26 + $0x48] sm:$0xff] (%p50_p3)  ;;  %s1596_s27 = scalar_lea.vmem (%p50_p3), [#allocation3], %s1388_s23  ;;  %v198_v4 = vld [vmem:[%s1591_s26 + $0x90] sm:$0xff] (%p50_p3) }
  0x13   : > { %v192_v1 = vld [vmem:[%s1591_s26 + $0x24] sm:$0xff] (%p50_p3)  ;;  %191 = vst [vmem:[%s1596_s27] sm:$0xff] (%p50_p3), %v190_v0  ;;  %195 = vst [vmem:[%s1596_s27 + $0x18] sm:$0xff] (%p50_p3), %v194_v2  ;;  %v196_v3 = vld [vmem:[%s1591_s26 + $0x6c] sm:$0xff] (%p50_p3) }
  0x14   : > { %193 = vst [vmem:[%s1596_s27 + $0xc] sm:$0xff] (%p50_p3), %v192_v1  ;;  %v200_v5 = vld [vmem:[%s1591_s26 + $0xb4] sm:$0xff] (%p50_p3)  ;;  %197 = vst [vmem:[%s1596_s27 + $0x24] sm:$0xff] (%p50_p3), %v196_v3  ;;  %v204_v7 = vld [vmem:[%s1591_s26 + $0xfc] sm:$0xff] (%p50_p3) }
  0x15   : > { %199 = vst [vmem:[%s1596_s27 + $0x30] sm:$0xff] %v198_v4  ;;  %201 = vst [vmem:[%s1596_s27 + $0x3c] sm:$0xff] %v200_v5  ;;  %v202_v6 = vld [vmem:[%s1591_s26 + $0xd8] sm:$0xff]  ;;  %v206_v8 = vld [vmem:[%s1591_s26 + $0x120] sm:$0xff] }
  0x16   : > { %203 = vst [vmem:[%s1596_s27 + $0x48] sm:$0xff] %v202_v6  ;;  %205 = vst [vmem:[%s1596_s27 + $0x54] sm:$0xff] %v204_v7  ;;  %v208_v9 = vld [vmem:[%s1591_s26 + $0x144] sm:$0xff]  ;;  %v212_v11 = vld [vmem:[%s1591_s26 + $0x18c] sm:$0xff] }
  0x17   : > { %207 = vst [vmem:[%s1596_s27 + $0x60] sm:$0xff] %v206_v8  ;;  %v210_v10 = vld [vmem:[%s1591_s26 + $0x168] sm:$0xff]  ;;  %209 = vst [vmem:[%s1596_s27 + $0x6c] sm:$0xff] %v208_v9  ;;  %v214_v12 = vld [vmem:[%s1591_s26 + $0x1b0] sm:$0xff] }
  0x18   : > { %211 = vst [vmem:[%s1596_s27 + $0x78] sm:$0xff] %v210_v10  ;;  %213 = vst [vmem:[%s1596_s27 + $0x84] sm:$0xff] %v212_v11  ;;  %v216_v13 = vld [vmem:[%s1591_s26 + $0x1d4] sm:$0xff]  ;;  %v220_v15 = vld [vmem:[%s1591_s26 + $0x21c] sm:$0xff] }
  0x19   : > { %v218_v14 = vld [vmem:[%s1591_s26 + $0x1f8] sm:$0xff]  ;;  %215 = vst [vmem:[%s1596_s27 + $0x90] sm:$0xff] %v214_v12  ;;  %217 = vst [vmem:[%s1596_s27 + $0x9c] sm:$0xff] %v216_v13  ;;  %v1186_v16 = vld [vmem:[%s1591_s26 + $0x8] sm:$0xf] }
  0x1a   : > { %219 = vst [vmem:[%s1596_s27 + $0xa8] sm:$0xff] %v218_v14  ;;  %v1188_v17 = vld [vmem:[%s1591_s26 + $0x2c] sm:$0xf]  ;;  %221 = vst [vmem:[%s1596_s27 + $0xb4] sm:$0xff] %v220_v15  ;;  %v1190_v18 = vld [vmem:[%s1591_s26 + $0x50] sm:$0xf] }
  0x1b   : > { %1187 = vst [vmem:[%s1596_s27 + $0x8] sm:$0xf] %v1186_v16  ;;  %1189 = vst [vmem:[%s1596_s27 + $0x14] sm:$0xf] %v1188_v17  ;;  %v1192_v19 = vld [vmem:[%s1591_s26 + $0x74] sm:$0xf] }
  0x1c   : > { %v1194_v20 = vld [vmem:[%s1591_s26 + $0x98] sm:$0xf]  ;;  %1191 = vst [vmem:[%s1596_s27 + $0x20] sm:$0xf] %v1190_v18  ;;  %1193 = vst [vmem:[%s1596_s27 + $0x2c] sm:$0xf] %v1192_v19 }
  0x1d   : > { %1195 = vst [vmem:[%s1596_s27 + $0x38] sm:$0xf] %v1194_v20  ;;  %v1196_v21 = vld [vmem:[%s1591_s26 + $0xbc] sm:$0xf]  ;;  %v1198_v22 = vld [vmem:[%s1591_s26 + $0xe0] sm:$0xf] }
  0x1e   : > { %v1200_v23 = vld [vmem:[%s1591_s26 + $0x104] sm:$0xf]  ;;  %1197 = vst [vmem:[%s1596_s27 + $0x44] sm:$0xf] %v1196_v21  ;;  %1199 = vst [vmem:[%s1596_s27 + $0x50] sm:$0xf] %v1198_v22 }
  0x1f   : > { %1201 = vst [vmem:[%s1596_s27 + $0x5c] sm:$0xf] %v1200_v23  ;;  %v1202_v24 = vld [vmem:[%s1591_s26 + $0x128] sm:$0xf]  ;;  %v1204_v25 = vld [vmem:[%s1591_s26 + $0x14c] sm:$0xf] }
  0x20   : > { %v1206_v26 = vld [vmem:[%s1591_s26 + $0x170] sm:$0xf]  ;;  %1203 = vst [vmem:[%s1596_s27 + $0x68] sm:$0xf] %v1202_v24  ;;  %1205 = vst [vmem:[%s1596_s27 + $0x74] sm:$0xf] %v1204_v25 }
  0x21   : > { %1207 = vst [vmem:[%s1596_s27 + $0x80] sm:$0xf] %v1206_v26  ;;  %v1208_v27 = vld [vmem:[%s1591_s26 + $0x194] sm:$0xf]  ;;  %v1210_v28 = vld [vmem:[%s1591_s26 + $0x1b8] sm:$0xf] }
  0x22   : > { %v1212_v29 = vld [vmem:[%s1591_s26 + $0x1dc] sm:$0xf]  ;;  %1209 = vst [vmem:[%s1596_s27 + $0x8c] sm:$0xf] %v1208_v27  ;;  %1211 = vst [vmem:[%s1596_s27 + $0x98] sm:$0xf] %v1210_v28 }
  0x23   : > { %1213 = vst [vmem:[%s1596_s27 + $0xa4] sm:$0xf] %v1212_v29  ;;  %v1214_v30 = vld [vmem:[%s1591_s26 + $0x200] sm:$0xf]  ;;  %v1216_v31 = vld [vmem:[%s1591_s26 + $0x224] sm:$0xf] }
  0x24   : > { %1215 = vst [vmem:[%s1596_s27 + $0xb0] sm:$0xf] %v1214_v30  ;;  %1217 = vst [vmem:[%s1596_s27 + $0xbc] sm:$0xf] %v1216_v31 }
  0x25 PF: > { %p1218_p6 = scmp.ge.s32.totalorder %s1525_s16, 1  ;;  %p277_p7 = scmp.lt.s32.totalorder %s1525_s16, 4 }
  0x27   : > { %p278_p8 = pnand %p1218_p6, %p277_p7 }
  0x28   : > { %s284_s28 = sand.u32 (!%p278_p8), 1, %s1509_s12   ;;  %s323_s29 = smul.u32 (!%p278_p8), 48, %s1517_s14 }
  0x29   : > { %281 = sbr.rel (%p278_p8) target bundleno = 382 (0x17e), region = 54  ;;  %p1220_p10 = scmp.ne.s32.totalorder (!%p278_p8), %s1517_s14, 0 }
  0x2a   : > { %s1389_s30 = smul.u32 (!%p278_p8), 192, %s284_s28  ;;  %p324_p9 = scmp.lt.s32.totalorder (!%p278_p8), %s323_s29, 143 }
  0x2c   : > { %s1668_s8 = scalar_lea.vmem (!%p278_p8), [#allocation3], %s1389_s30 }
  0x30   : > { %s1815_s29 = smov (!%p324_p9, %s323_s29), 143  ;;  %348 = sbr.rel (%p1220_p10) target bundleno = 58 (0x3a), region = 62 }
  0x31   : > { %s1219_s4 = sshll.u32 %s1815_s29, 2  ;;  %v1527_v32 = vmov (!%p1220_p10), 0.0  }
  0x32   : > { %s1666_s7 = scalar_lea.vmem %s1805_s1, %s1219_s4  ;;  %349 = vst [vmem:[#allocation2] sm:$0xff] (!%p1220_p10), %v1527_v32  ;;  %350 = vst [vmem:[#allocation2 + $0x8] sm:$0xff] (!%p1220_p10), %v1527_v32 }
  0x33   : > { %351 = vst [vmem:[#allocation2 + $0x10] sm:$0xff] (!%p1220_p10), %v1527_v32  ;;  %352 = vst [vmem:[#allocation2 + $0x18] sm:$0xff] (!%p1220_p10), %v1527_v32 }
  0x34   : > { %353 = vst [vmem:[#allocation2 + $0x20] sm:$0xff] (!%p1220_p10), %v1527_v32  ;;  %354 = vst [vmem:[#allocation2 + $0x28] sm:$0xff] (!%p1220_p10), %v1527_v32 }
  0x35   : > { %355 = vst [vmem:[#allocation2 + $0x30] sm:$0xff] (!%p1220_p10), %v1527_v32  ;;  %356 = vst [vmem:[#allocation2 + $0x38] sm:$0xff] (!%p1220_p10), %v1527_v32 }
  0x36   : > { %357 = vst [vmem:[#allocation2 + $0x40] sm:$0xff] (!%p1220_p10), %v1527_v32  ;;  %358 = vst [vmem:[#allocation2 + $0x48] sm:$0xff] (!%p1220_p10), %v1527_v32 }
  0x37   : > { %359 = vst [vmem:[#allocation2 + $0x50] sm:$0xff] %v1527_v32  ;;  %360 = vst [vmem:[#allocation2 + $0x58] sm:$0xff] %v1527_v32 }
  0x38   : > { %361 = vst [vmem:[#allocation2 + $0x60] sm:$0xff] %v1527_v32  ;;  %362 = vst [vmem:[#allocation2 + $0x68] sm:$0xff] %v1527_v32 }
  0x39   : > { %363 = vst [vmem:[#allocation2 + $0x70] sm:$0xff] %v1527_v32  ;;  %364 = vst [vmem:[#allocation2 + $0x78] sm:$0xff] %v1527_v32 }
  0x3a PF: > { %v1431_v33 = vld [vmem:[%s1666_s7 + $0x40] sm:$0xff]   ;;  %v1434_v36 = vld [vmem:[%s1666_s7 + $0x48] sm:$0xff]   ;;  %v1437_v39 = vld [vmem:[%s1666_s7 + $0x50] sm:$0xff]   ;;  %p1269_p11 = scmp.ne.s32.totalorder %s1517_s14, 2 }
  0x3b   : > { %v1432_v34 = vld [vmem:[%s1666_s7] sm:$0xff]   ;;  %1276 = vmatprep.subr.bf16.mxu0 %v1431_v33  ;;  %v1435_v37 = vld [vmem:[%s1666_s7 + $0x8] sm:$0xff]   ;;  %v1438_v40 = vld [vmem:[%s1666_s7 + $0x10] sm:$0xff]  }
  0x3c   : > { %v1433_v35 = vld [vmem:[%s1666_s7 + $0x80] sm:$0xff]   ;;  %1277 = vmatpush3.bf16.msra.mxu0 %v1432_v34  ;;  %v1436_v38 = vld [vmem:[%s1666_s7 + $0x88] sm:$0xff]   ;;  %v1439_v41 = vld [vmem:[%s1666_s7 + $0x90] sm:$0xff]  }
  0x3d   : > { %1356 = vmatprep.subr.bf16.mxu1 %v1433_v35  ;;  %1278 = vmatprep.subr.bf16.mxu0 %v1434_v36  ;;  %v1440_v42 = vld [vmem:[%s1666_s7 + $0x58] sm:$0xff]   ;;  %v1443_v45 = vld [vmem:[%s1666_s7 + $0x60] sm:$0xff]   ;;  %v1446_v48 = vld [vmem:[%s1666_s7 + $0x68] sm:$0xff]  }
  0x3e   : > { %1357 = vmatpush3.bf16.msra.mxu1 %v1433_v35  ;;  %v1441_v43 = vld [vmem:[%s1666_s7 + $0x18] sm:$0xff]   ;;  %v1445_v46 = vld [vmem:[%s1666_s7 + $0xa0] sm:$0xff]   ;;  %v1448_v49 = vld [vmem:[%s1666_s7 + $0xa8] sm:$0xff]  }
  0x3f   : > { %1358 = vmatprep.subr.bf16.mxu1 %v1436_v38  ;;  %v1442_v44 = vld [vmem:[%s1666_s7 + $0x98] sm:$0xff]   ;;  %v1444_v47 = vld [vmem:[%s1666_s7 + $0x20] sm:$0xff]   ;;  %v1447_v50 = vld [vmem:[%s1666_s7 + $0x28] sm:$0xff]  }
  0x40   : > { %1279 = vmatpush3.bf16.msra.mxu0 %v1435_v37  ;;  %v1449_v51 = vld [vmem:[%s1666_s7 + $0x70] sm:$0xff]   ;;  %v1452_v54 = vld [vmem:[%s1666_s7 + $0x78] sm:$0xff]   ;;  %v1455_v59 = vld [vmem:[%s1668_s8] ss:$12 sps:$4 sm:$0xff]  }
  0x41   : > { %1280 = vmatprep.subr.bf16.mxu0 %v1437_v39  ;;  %v1450_v52 = vld [vmem:[%s1666_s7 + $0x30] sm:$0xff]   ;;  %v1454_v55 = vld [vmem:[%s1666_s7 + $0xb8] sm:$0xff]   ;;  %v1459_v61 = vld [vmem:[%s1668_s8 + $0x20] ss:$12 sps:$4 sm:$0xff]  }
  0x42   : > { %1359 = vmatpush3.bf16.msra.mxu1 %v1436_v38  ;;  %v1451_v53 = vld [vmem:[%s1666_s7 + $0xb0] sm:$0xff]   ;;  %v1453_v58 = vld [vmem:[%s1666_s7 + $0x38] sm:$0xff]   ;;  %v1475_v5 = vld [vmem:[%s1668_s8 + $0x80] ss:$12 sps:$4 sm:$0xff]  }
  0x43   : > { %1360 = vmatprep.subr.bf16.mxu1 %v1439_v41  ;;  %v1457_v56 = vld [vmem:[%s1668_s8 + $0x4] ss:$12 sps:$4 sm:$0xff]   ;;  %v1458_v57 = vld [vmem:[%s1668_s8 + $0x8] ss:$12 sps:$4 sm:$0xff]   ;;  %v1468_v4 = vld [vmem:[%s1668_s8 + $0x4c] ss:$12 sps:$4 sm:$0xff]  }
  0x44   : > { %1281 = vmatpush3.bf16.msra.mxu0 %v1438_v40  ;;  %765 = vmatprep.mubr.bf16.mxu0 %v1457_v56  ;;  %v1460_v60 = vld [vmem:[%s1668_s8 + $0x1c] ss:$12 sps:$4 sm:$0xff]   ;;  %v1466_v62 = vld [vmem:[%s1668_s8 + $0x38] ss:$12 sps:$4 sm:$0xff]   ;;  %v1463_v0 = vld [vmem:[%s1668_s8 + $0x34] ss:$12 sps:$4 sm:$0xff]  }
  0x45   : > { %1282 = vmatprep.subr.bf16.mxu0 %v1440_v42  ;;  %1372 = vmatprep.mubr.bf16.mxu1 %v1458_v57  ;;  %v1462_v63 = vld [vmem:[%s1668_s8 + $0x18] ss:$12 sps:$4 sm:$0xff]   ;;  %v1467_v1 = vld [vmem:[%s1668_s8 + $0x50] ss:$12 sps:$4 sm:$0xff]   ;;  %v1474_v2 = vld [vmem:[%s1668_s8 + $0x68] ss:$12 sps:$4 sm:$0xff]  }
  0x46   : > { %1361 = vmatpush3.bf16.msra.mxu1 %v1439_v41  ;;  %v1465_v3 = vld [vmem:[%s1668_s8 + $0x30] ss:$12 sps:$4 sm:$0xff]   ;;  %v1482_v6 = vld [vmem:[%s1668_s8 + $0x98] ss:$12 sps:$4 sm:$0xff]   ;;  %v1470_v7 = vld [vmem:[%s1668_s8 + $0x48] ss:$12 sps:$4 sm:$0xff]  }
  0x47   : > { %1362 = vmatprep.subr.bf16.mxu1 %v1442_v44  ;;  %v1471_v8 = vld [vmem:[%s1668_s8 + $0x64] ss:$12 sps:$4 sm:$0xff]   ;;  %v1473_v10 = vld [vmem:[%s1668_s8 + $0x60] ss:$12 sps:$4 sm:$0xff]   ;;  %v1476_v11 = vld [vmem:[%s1668_s8 + $0x7c] ss:$12 sps:$4 sm:$0xff]  }
  0x48   : > { %1283 = vmatpush3.bf16.msra.mxu0 %v1441_v43  ;;  %v1483_v9 = vld [vmem:[%s1668_s8 + $0xb0] ss:$12 sps:$4 sm:$0xff]   ;;  %v1478_v12 = vld [vmem:[%s1668_s8 + $0x78] ss:$12 sps:$4 sm:$0xff]   ;;  %v1479_v13 = vld [vmem:[%s1668_s8 + $0x94] ss:$12 sps:$4 sm:$0xff]  }
  0x49   : > { %1284 = vmatprep.subr.bf16.mxu0 %v1443_v45  ;;  %v1481_v14 = vld [vmem:[%s1668_s8 + $0x90] ss:$12 sps:$4 sm:$0xff]   ;;  %v1484_v15 = vld [vmem:[%s1668_s8 + $0xac] ss:$12 sps:$4 sm:$0xff]   ;;  %v1486_v16 = vld [vmem:[%s1668_s8 + $0xa8] ss:$12 sps:$4 sm:$0xff]  }
  0x4a   : > { %1363 = vmatpush3.bf16.msra.mxu1 %v1442_v44  ;;  %v365_v23 = vld [vmem:[#allocation2] sm:$0xff]  ;;  %v366_v28 = vld [vmem:[#allocation2 + $0x8] sm:$0xff]  ;;  %v367_v38 = vld [vmem:[#allocation2 + $0x10] sm:$0xff] }
  0x4b   : > { %1364 = vmatprep.subr.bf16.mxu1 %v1445_v46  ;;  %v368_v44 = vld [vmem:[#allocation2 + $0x18] sm:$0xff] }
  0x4c   : > { %1285 = vmatpush3.bf16.msra.mxu0 %v1444_v47 }
  0x4d   : > { %1286 = vmatprep.subr.bf16.mxu0 %v1446_v48 }
  0x4e   : > { %1365 = vmatpush3.bf16.msra.mxu1 %v1445_v46 }
  0x4f   : > { %1366 = vmatprep.subr.bf16.mxu1 %v1448_v49 }
  0x50   : > { %1287 = vmatpush3.bf16.msra.mxu0 %v1447_v50 }
  0x51   : > { %1288 = vmatprep.subr.bf16.mxu0 %v1449_v51 }
  0x52   : > { %1367 = vmatpush3.bf16.msra.mxu1 %v1448_v49 }
  0x53   : > { %1368 = vmatprep.subr.bf16.mxu1 %v1451_v53 }
  0x54   : > { %1289 = vmatpush3.bf16.msra.mxu0 %v1450_v52 }
  0x55   : > { %1290 = vmatprep.subr.bf16.mxu0 %v1452_v54 }
  0x56   : > { %1369 = vmatpush3.bf16.msra.mxu1 %v1451_v53 }
  0x57   : > { %1370 = vmatprep.subr.bf16.mxu1 %v1454_v55 }
  0x58   : > { %1291 = vmatpush3.bf16.msra.mxu0 %v1453_v58 }
  0x5a   : > { %1371 = vmatpush3.bf16.msra.mxu1 %v1454_v55  ;;  %v369_v55 = vld [vmem:[#allocation2 + $0x20] sm:$0xff] }
  0x5b   : > { %766 = vmatmul.mubr.bf16.vlgmr.msra.gmra.mrb[0].mxu0 %v1455_v59 }
  0x5c   : > { %773 = vmatprep.mubr.bf16.mxu0 %v1460_v60  ;;  %v370_v60 = vld [vmem:[#allocation2 + $0x28] sm:$0xff] }
  0x5d   : > { %1373 = vmatmul.mubr.bf16.vlgmr.msra.gmra.mrb[0].mxu1 %v1459_v61 }
  0x5e   : > { %1376 = vmatprep.mubr.bf16.mxu1 %v1466_v62 }
  0x63   : > { %774 = vmatmul.mubr.bf16.gmra.mrb[4].mxu0 %v1462_v63 }
  0x64   : > { %781 = vmatprep.mubr.bf16.mxu0 %v1463_v0 }
  0x65   : > { %1377 = vmatmul.mubr.bf16.gmra.mrb[4].mxu1 %v1467_v1 }
  0x66   : > { %1380 = vmatprep.mubr.bf16.mxu1 %v1474_v2 }
  0x6b   : > { %782 = vmatmul.mubr.bf16.gmra.mrb[8].mxu0 %v1465_v3 }
  0x6c   : > { %789 = vmatprep.mubr.bf16.mxu0 %v1468_v4 }
  0x6d   : > { %1381 = vmatmul.mubr.bf16.gmra.mrb[8].mxu1 %v1475_v5 }
  0x6e   : > { %1384 = vmatprep.mubr.bf16.mxu1 %v1482_v6  ;;  %v371_v6 = vld [vmem:[#allocation2 + $0x30] sm:$0xff] }
  0x73   : > { %790 = vmatmul.mubr.bf16.gmra.mrb[12].mxu0 %v1470_v7 }
  0x74   : > { %797 = vmatprep.mubr.bf16.mxu0 %v1471_v8 }
  0x75   : > { %1385 = vmatmul.mubr.bf16.gmra.mrb[12].mxu1 %v1483_v9 }
  0x7b   : > { %798 = vmatmul.mubr.bf16.gmra.mrb[16].mxu0 %v1473_v10 }
  0x7c   : > { %805 = vmatprep.mubr.bf16.mxu0 %v1476_v11 }
  0x83   : > { %806 = vmatmul.mubr.bf16.gmra.mrb[20].mxu0 %v1478_v12  ;;  %v372_v12 = vld [vmem:[#allocation2 + $0x38] sm:$0xff] }
  0x84   : > { %813 = vmatprep.mubr.bf16.mxu0 %v1479_v13 }
  0x8b   : > { %814 = vmatmul.mubr.bf16.gmra.mrb[24].mxu0 %v1481_v14 }
  0x8c   : > { %821 = vmatprep.mubr.bf16.mxu0 %v1484_v15 }
  0x93   : > { %822 = vmatmul.mubr.bf16.gmra.mrb[28].mxu0 %v1486_v16 }
 0x12e   : > { %v1292_v17 = vpop.f32.mrb[0].mxu0 }
 0x12f   : > { %v1293_v18 = vpop.f32.mrb[1].mxu0 }
 0x130   : > { %v1294_v19 = vadd.f32 %v1293_v18, %v1292_v17  ;;  %v1295_v20 = vpop.f32.mrb[2].mxu0  ;;  %v1374_v21 = vpop.f32.mrb[0].mxu1 }
 0x131   : > { %v1296_v22 = vpop.f32.mrb[3].mxu0  ;;  %v864_v24 = vpop.f32.mrb[1].mxu1 }
 0x132   : > { %v1297_v25 = vadd.f32 %v1296_v22, %v1295_v20  ;;  %v865_v26 = vadd.f32 %v1294_v19, %v864_v24  ;;  %v1375_v27 = vpop.f32.mrb[2].mxu1  ;;  %v373_v22 = vld [vmem:[#allocation2 + $0x40] sm:$0xff] }
 0x133   : > { %v867_v29 = vpop.f32.mrb[3].mxu1 }
 0x134   : > { %v927_v30 = vadd.f32 %v865_v26, %v365_v23  ;;  %v868_v31 = vadd.f32 %v1297_v25, %v867_v29  ;;  %v374_v25 = vld [vmem:[#allocation2 + $0x48] sm:$0xff] }
 0x136   : > { %943 = vst [vmem:[#allocation2] sm:$0xff] %v927_v30  ;;  %v928_v32 = vadd.f32 %v868_v31, %v366_v28  ;;  %v1298_v33 = vpop.f32.mrb[4].mxu0 }
 0x137   : > { %v1299_v34 = vpop.f32.mrb[5].mxu0 }
 0x138   : > { %944 = vst [vmem:[#allocation2 + $0x8] sm:$0xff] %v928_v32  ;;  %v1300_v35 = vadd.f32 %v1299_v34, %v1298_v33  ;;  %v1301_v36 = vpop.f32.mrb[6].mxu0  ;;  %v1378_v37 = vpop.f32.mrb[4].mxu1  ;;  %v375_v33 = vld [vmem:[#allocation2 + $0x50] sm:$0xff] }
 0x139   : > { %v1302_v39 = vpop.f32.mrb[7].mxu0  ;;  %v880_v40 = vpop.f32.mrb[5].mxu1 }
 0x13a   : > { %v873_v41 = vadd.f32 %v1374_v21, %v1300_v35  ;;  %v1303_v42 = vadd.f32 %v1302_v39, %v1301_v36  ;;  %v1379_v43 = vpop.f32.mrb[6].mxu1 }
 0x13b   : > { %v883_v45 = vpop.f32.mrb[7].mxu1 }
 0x13c   : > { %v929_v46 = vadd.f32 %v873_v41, %v367_v38  ;;  %v876_v47 = vadd.f32 %v1375_v27, %v1303_v42 }
 0x13e   : > { %945 = vst [vmem:[#allocation2 + $0x10] sm:$0xff] %v929_v46  ;;  %v930_v48 = vadd.f32 %v876_v47, %v368_v44  ;;  %v1304_v49 = vpop.f32.mrb[8].mxu0  ;;  %v377_v46 = vld [vmem:[#allocation2 + $0x60] sm:$0xff] }
 0x13f   : > { %v1305_v50 = vpop.f32.mrb[9].mxu0 }
 0x140   : > { %946 = vst [vmem:[#allocation2 + $0x18] sm:$0xff] %v930_v48  ;;  %v1306_v51 = vadd.f32 %v1305_v50, %v1304_v49  ;;  %v1307_v52 = vpop.f32.mrb[10].mxu0  ;;  %v1382_v53 = vpop.f32.mrb[8].mxu1  ;;  %v378_v49 = vld [vmem:[#allocation2 + $0x68] sm:$0xff] }
 0x141   : > { %v1308_v54 = vpop.f32.mrb[11].mxu0  ;;  %v896_v56 = vpop.f32.mrb[9].mxu1 }
 0x142   : > { %v1309_v57 = vadd.f32 %v1308_v54, %v1307_v52  ;;  %v881_v58 = vadd.f32 %v1306_v51, %v880_v40  ;;  %v1383_v59 = vpop.f32.mrb[10].mxu1 }
 0x143   : > { %v899_v61 = vpop.f32.mrb[11].mxu1 }
 0x144   : > { %v931_v62 = vadd.f32 %v881_v58, %v369_v55  ;;  %v884_v63 = vadd.f32 %v1309_v57, %v883_v45  ;;  %v379_v57 = vld [vmem:[#allocation2 + $0x70] sm:$0xff] }
 0x146   : > { %947 = vst [vmem:[#allocation2 + $0x20] sm:$0xff] %v931_v62  ;;  %v932_v0 = vadd.f32 %v884_v63, %v370_v60  ;;  %v1310_v1 = vpop.f32.mrb[12].mxu0 }
 0x147   : > { %v1311_v2 = vpop.f32.mrb[13].mxu0 }
 0x148   : > { %948 = vst [vmem:[#allocation2 + $0x28] sm:$0xff] %v932_v0  ;;  %v1312_v3 = vadd.f32 %v1311_v2, %v1310_v1  ;;  %v1313_v4 = vpop.f32.mrb[14].mxu0  ;;  %v1386_v5 = vpop.f32.mrb[12].mxu1  ;;  %v963_v1 = vld [vmem:[#allocation2] sm:$0xff] (!%p1269_p11) }
 0x149   : > { %v1314_v7 = vpop.f32.mrb[15].mxu0  ;;  %v912_v8 = vpop.f32.mrb[13].mxu1  ;;  %v1723_v2 = vld [vmem:[%s1806_s2] ss:$0 sm:$0xff] (!%p1269_p11) }
 0x14a   : > { %v889_v9 = vadd.f32 %v1378_v37, %v1312_v3  ;;  %v1315_v10 = vadd.f32 %v1314_v7, %v1313_v4  ;;  %v1387_v11 = vpop.f32.mrb[14].mxu1  ;;  %v376_v37 = vld [vmem:[#allocation2 + $0x58] sm:$0xff]  ;;  %v964_v3 = vld [vmem:[#allocation2 + $0x8] sm:$0xff] (!%p1269_p11)  ;;  %v986_v4 = vadd.f32 (!%p1269_p11), %v1723_v2, %v963_v1 }
 0x14b   : > { %v915_v13 = vpop.f32.mrb[15].mxu1  ;;  %v966_v7 = vld [vmem:[#allocation2 + $0x18] sm:$0xff] (!%p1269_p11) }
 0x14c   : > { %v933_v14 = vadd.f32 %v889_v9, %v371_v6  ;;  %v892_v15 = vadd.f32 %v1379_v43, %v1315_v10  ;;  %v965_v6 = vld [vmem:[#allocation2 + $0x10] sm:$0xff] (!%p1269_p11)  ;;  %v989_v10 = vadd.f32 (!%p1269_p11), %v1723_v2, %v966_v7  ;;  %vm1002_vm0 = vcmp.ge.f32.partialorder (!%p1269_p11), %v986_v4, 0.0 }
 0x14d   : > { %v988_v9 = vadd.f32 (!%p1269_p11), %v1723_v2, %v965_v6 }
 0x14e   : > { %949 = vst [vmem:[#allocation2 + $0x30] sm:$0xff] %v933_v14  ;;  %v934_v16 = vadd.f32 %v892_v15, %v372_v12  ;;  %v1316_v17 = vpop.f32.mrb[16].mxu0  ;;  %v1018_v15 = vmul.f32 (!%p1269_p11), 0.2, %v986_v4  ;;  %vm1005_vm3 = vcmp.ge.f32.partialorder (!%p1269_p11), %v989_v10, 0.0 }
 0x14f   : > { %v1317_v18 = vpop.f32.mrb[17].mxu0  ;;  %v968_v12 = vld [vmem:[#allocation2 + $0x28] sm:$0xff] (!%p1269_p11)  ;;  %vm1004_vm2 = vcmp.ge.f32.partialorder (!%p1269_p11), %v988_v9, 0.0 }
 0x150   : > { %950 = vst [vmem:[#allocation2 + $0x38] sm:$0xff] %v934_v16  ;;  %v1318_v19 = vadd.f32 %v1317_v18, %v1316_v17  ;;  %v1319_v20 = vpop.f32.mrb[18].mxu0  ;;  %v1020_v17 = vmul.f32 (!%p1269_p11), 0.2, %v988_v9  ;;  %v1021_v18 = vmul.f32 (!%p1269_p11), 0.2, %v989_v10 }
 0x151   : > { %v1320_v21 = vpop.f32.mrb[19].mxu0 }
 0x152   : > { %v1321_v23 = vadd.f32 %v1320_v21, %v1319_v20  ;;  %v897_v24 = vadd.f32 %v1318_v19, %v896_v56  ;;  %v1034_v19 = vsel (!%p1269_p11), %vm1002_vm0, %v986_v4, %v1018_v15 }
 0x153   : > { %1050 = vst [vmem:[%s1807_s3] sm:$0xff] (!%p1269_p11), %v1034_v19 }
 0x154   : > { %v935_v26 = vadd.f32 %v897_v24, %v373_v22  ;;  %v900_v27 = vadd.f32 %v1321_v23, %v899_v61  ;;  %v380_v61 = vld [vmem:[#allocation2 + $0x78] sm:$0xff]  ;;  %v1036_v24 = vsel (!%p1269_p11), %vm1004_vm2, %v988_v9, %v1020_v17 }
 0x155   : > { %1052 = vst [vmem:[%s1807_s3 + $0x10] sm:$0xff] (!%p1269_p11), %v1036_v24 }
 0x156   : > { %951 = vst [vmem:[#allocation2 + $0x40] sm:$0xff] %v935_v26  ;;  %v936_v28 = vadd.f32 %v900_v27, %v374_v25  ;;  %v1322_v29 = vpop.f32.mrb[20].mxu0  ;;  %v1037_v25 = vsel (!%p1269_p11), %vm1005_vm3, %v989_v10, %v1021_v18  ;;  %v991_v26 = vadd.f32 (!%p1269_p11), %v1723_v2, %v968_v12 }
 0x157   : > { %v1323_v30 = vpop.f32.mrb[21].mxu0  ;;  %v970_v14 = vld [vmem:[#allocation2 + $0x38] sm:$0xff] (!%p1269_p11)  ;;  %1053 = vst [vmem:[%s1807_s3 + $0x18] sm:$0xff] (!%p1269_p11), %v1037_v25 }
 0x158   : > { %952 = vst [vmem:[#allocation2 + $0x48] sm:$0xff] %v936_v28  ;;  %v1324_v31 = vadd.f32 %v1323_v30, %v1322_v29  ;;  %v1325_v32 = vpop.f32.mrb[22].mxu0  ;;  %vm1007_vm5 = vcmp.ge.f32.partialorder (!%p1269_p11), %v991_v26, 0.0 }
 0x159   : > { %v1326_v34 = vpop.f32.mrb[23].mxu0 }
 0x15a   : > { %v905_v35 = vadd.f32 %v1382_v53, %v1324_v31  ;;  %v1327_v36 = vadd.f32 %v1326_v34, %v1325_v32  ;;  %v993_v31 = vadd.f32 (!%p1269_p11), %v1723_v2, %v970_v14 }
 0x15c   : > { %v937_v38 = vadd.f32 %v905_v35, %v375_v33  ;;  %v908_v39 = vadd.f32 %v1383_v59, %v1327_v36  ;;  %vm1009_vm7 = vcmp.ge.f32.partialorder (!%p1269_p11), %v993_v31, 0.0 }
 0x15d   : > { %v971_v22 = vld [vmem:[#allocation2 + $0x40] sm:$0xff] (!%p1269_p11) }
 0x15e   : > { %953 = vst [vmem:[#allocation2 + $0x50] sm:$0xff] %v937_v38  ;;  %v938_v40 = vadd.f32 %v908_v39, %v376_v37  ;;  %v1328_v41 = vpop.f32.mrb[24].mxu0  ;;  %v994_v32 = vadd.f32 (!%p1269_p11), %v1723_v2, %v971_v22  ;;  %v1023_v37 = vmul.f32 (!%p1269_p11), 0.2, %v991_v26  ;;  %v1025_v39 = vmul.f32 (!%p1269_p11), 0.2, %v993_v31 }
 0x15f   : > { %v1329_v42 = vpop.f32.mrb[25].mxu0  ;;  %v972_v23 = vld [vmem:[#allocation2 + $0x48] sm:$0xff] (!%p1269_p11) }
 0x160   : > { %954 = vst [vmem:[#allocation2 + $0x58] sm:$0xff] %v938_v40  ;;  %v1330_v43 = vadd.f32 %v1329_v42, %v1328_v41  ;;  %v1331_v44 = vpop.f32.mrb[26].mxu0  ;;  %v995_v33 = vadd.f32 (!%p1269_p11), %v1723_v2, %v972_v23  ;;  %vm1010_vm8 = vcmp.ge.f32.partialorder (!%p1269_p11), %v994_v32, 0.0  ;;  %v1026_v40 = vmul.f32 (!%p1269_p11), 0.2, %v994_v32 }
 0x161   : > { %v1332_v45 = vpop.f32.mrb[27].mxu0  ;;  %v1039_v41 = vsel (!%p1269_p11), %vm1007_vm5, %v991_v26, %v1023_v37 }
 0x162   : > { %v1333_v47 = vadd.f32 %v1332_v45, %v1331_v44  ;;  %v913_v48 = vadd.f32 %v1330_v43, %v912_v8  ;;  %v967_v8 = vld [vmem:[#allocation2 + $0x20] sm:$0xff] (!%p1269_p11)  ;;  %vm1011_vm9 = vcmp.ge.f32.partialorder (!%p1269_p11), %v995_v33, 0.0  ;;  %v1027_v43 = vmul.f32 (!%p1269_p11), 0.2, %v995_v33  ;;  %1055 = vst [vmem:[%s1807_s3 + $0x28] sm:$0xff] (!%p1269_p11), %v1039_v41 }
 0x163   : > { %v1041_v44 = vsel (!%p1269_p11), %vm1009_vm7, %v993_v31, %v1025_v39  ;;  %v1042_v45 = vsel (!%p1269_p11), %vm1010_vm8, %v994_v32, %v1026_v40 }
 0x164   : > { %v939_v50 = vadd.f32 %v913_v48, %v377_v46  ;;  %v916_v51 = vadd.f32 %v1333_v47, %v915_v13  ;;  %v969_v13 = vld [vmem:[#allocation2 + $0x30] sm:$0xff] (!%p1269_p11)  ;;  %1057 = vst [vmem:[%s1807_s3 + $0x38] sm:$0xff] (!%p1269_p11), %v1041_v44  ;;  %1058 = vst [vmem:[%s1807_s3 + $0x40] sm:$0xff] (!%p1269_p11), %v1042_v45  ;;  %v1043_v48 = vsel (!%p1269_p11), %vm1011_vm9, %v995_v33, %v1027_v43 }
 0x165   : > { %v992_v27 = vadd.f32 (!%p1269_p11), %v1723_v2, %v969_v13  ;;  %v973_v28 = vld [vmem:[#allocation2 + $0x50] sm:$0xff] (!%p1269_p11)  ;;  %1059 = vst [vmem:[%s1807_s3 + $0x48] sm:$0xff] (!%p1269_p11), %v1043_v48 }
 0x166   : > { %955 = vst [vmem:[#allocation2 + $0x60] sm:$0xff] %v939_v50  ;;  %v940_v52 = vadd.f32 %v916_v51, %v378_v49  ;;  %v1334_v53 = vpop.f32.mrb[28].mxu0  ;;  %v996_v46 = vadd.f32 (!%p1269_p11), %v1723_v2, %v973_v28 }
 0x167   : > { %v1335_v54 = vpop.f32.mrb[29].mxu0  ;;  %v974_v29 = vld [vmem:[#allocation2 + $0x58] sm:$0xff] (!%p1269_p11)  ;;  %vm1008_vm6 = vcmp.ge.f32.partialorder (!%p1269_p11), %v992_v27, 0.0  ;;  %v1024_v38 = vmul.f32 (!%p1269_p11), 0.2, %v992_v27 }
 0x168   : > { %956 = vst [vmem:[#allocation2 + $0x68] sm:$0xff] %v940_v52  ;;  %v1336_v55 = vadd.f32 %v1335_v54, %v1334_v53  ;;  %v1337_v56 = vpop.f32.mrb[30].mxu0  ;;  %v997_v47 = vadd.f32 (!%p1269_p11), %v1723_v2, %v974_v29  ;;  %vm1012_vm10 = vcmp.ge.f32.partialorder (!%p1269_p11), %v996_v46, 0.0  ;;  %v1028_v53 = vmul.f32 (!%p1269_p11), 0.2, %v996_v46 }
 0x169   : > { %v1338_v58 = vpop.f32.mrb[31].mxu0  ;;  %v1040_v42 = vsel (!%p1269_p11), %vm1008_vm6, %v992_v27, %v1024_v38 }
 0x16a   : > { %v921_v59 = vadd.f32 %v1386_v5, %v1336_v55  ;;  %v1339_v60 = vadd.f32 %v1338_v58, %v1337_v56  ;;  %962 = sbr.rel (%p1269_p11) target bundleno = 382 (0x17e), region = 66  ;;  %v987_v5 = vadd.f32 (!%p1269_p11), %v1723_v2, %v964_v3  ;;  %1056 = vst [vmem:[%s1807_s3 + $0x30] sm:$0xff] (!%p1269_p11), %v1040_v42  ;;  %vm1013_vm11 = vcmp.ge.f32.partialorder (!%p1269_p11), %v997_v47, 0.0 }
 0x16b   : > { %v1029_v54 = vmul.f32 (!%p1269_p11), 0.2, %v997_v47 }
 0x16c   : > { %v941_v62 = vadd.f32 %v921_v59, %v379_v57  ;;  %v924_v63 = vadd.f32 %v1387_v11, %v1339_v60  ;;  %v990_v11 = vadd.f32 (!%p1269_p11), %v1723_v2, %v967_v8  ;;  %vm1003_vm1 = vcmp.ge.f32.partialorder (!%p1269_p11), %v987_v5, 0.0 }
 0x16d   : > { %v1019_v16 = vmul.f32 (!%p1269_p11), 0.2, %v987_v5  ;;  %v975_v34 = vld [vmem:[#allocation2 + $0x60] sm:$0xff] (!%p1269_p11)  ;;  %v1044_v57 = vsel (!%p1269_p11), %vm1012_vm10, %v996_v46, %v1028_v53  ;;  %v1045_v58 = vsel (!%p1269_p11), %vm1013_vm11, %v997_v47, %v1029_v54 }
 0x16e   : > { %957 = vst [vmem:[#allocation2 + $0x70] sm:$0xff] %v941_v62  ;;  %v942_v0 = vadd.f32 %v924_v63, %v380_v61  ;;  %vm1006_vm4 = vcmp.ge.f32.partialorder (!%p1269_p11), %v990_v11, 0.0  ;;  %v1022_v21 = vmul.f32 (!%p1269_p11), 0.2, %v990_v11  ;;  %v998_v49 = vadd.f32 (!%p1269_p11), %v1723_v2, %v975_v34  ;;  %1060 = vst [vmem:[%s1807_s3 + $0x50] sm:$0xff] (!%p1269_p11), %v1044_v57 }
 0x16f   : > { %v1035_v20 = vsel (!%p1269_p11), %vm1003_vm1, %v987_v5, %v1019_v16  ;;  %v976_v35 = vld [vmem:[#allocation2 + $0x68] sm:$0xff] (!%p1269_p11)  ;;  %1061 = vst [vmem:[%s1807_s3 + $0x58] sm:$0xff] (!%p1269_p11), %v1045_v58 }
 0x170   : > { %958 = vst [vmem:[#allocation2 + $0x78] sm:$0xff] %v942_v0  ;;  %1051 = vst [vmem:[%s1807_s3 + $0x8] sm:$0xff] (!%p1269_p11), %v1035_v20  ;;  %v1038_v30 = vsel (!%p1269_p11), %vm1006_vm4, %v990_v11, %v1022_v21  ;;  %v999_v50 = vadd.f32 (!%p1269_p11), %v1723_v2, %v976_v35  ;;  %vm1014_vm12 = vcmp.ge.f32.partialorder (!%p1269_p11), %v998_v49, 0.0  ;;  %v1030_v55 = vmul.f32 (!%p1269_p11), 0.2, %v998_v49 }
 0x171   : > { %1054 = vst [vmem:[%s1807_s3 + $0x20] sm:$0xff] %v1038_v30 }
 0x172   : > { %vm1015_vm13 = vcmp.ge.f32.partialorder %v999_v50, 0.0  ;;  %v1031_v56 = vmul.f32 0.2, %v999_v50  ;;  %v1046_v60 = vsel %vm1014_vm12, %v998_v49, %v1030_v55 }
 0x173   : > { %1062 = vst [vmem:[%s1807_s3 + $0x60] sm:$0xff] %v1046_v60 }
 0x174   : > { %v1047_v61 = vsel %vm1015_vm13, %v999_v50, %v1031_v56 }
 0x175   : > { %v977_v36 = vld [vmem:[#allocation2 + $0x70] sm:$0xff]  ;;  %1063 = vst [vmem:[%s1807_s3 + $0x68] sm:$0xff] %v1047_v61 }
 0x176   : > { %v1000_v51 = vadd.f32 %v1723_v2, %v977_v36 }
 0x177   : > { %v978_v52 = vld [vmem:[#allocation2 + $0x78] sm:$0xff] }
 0x178   : > { %vm1016_vm14 = vcmp.ge.f32.partialorder %v1000_v51, 0.0  ;;  %v1032_v59 = vmul.f32 0.2, %v1000_v51  ;;  %v1001_v62 = vadd.f32 %v1723_v2, %v978_v52 }
 0x17a   : > { %v1048_v63 = vsel %vm1016_vm14, %v1000_v51, %v1032_v59  ;;  %vm1017_vm15 = vcmp.ge.f32.partialorder %v1001_v62, 0.0  ;;  %v1033_v0 = vmul.f32 0.2, %v1001_v62 }
 0x17b   : > { %1064 = vst [vmem:[%s1807_s3 + $0x70] sm:$0xff] %v1048_v63 }
 0x17c   : > { %v1049_v1 = vsel %vm1017_vm15, %v1001_v62, %v1033_v0 }
 0x17d   : > { %1065 = vst [vmem:[%s1807_s3 + $0x78] sm:$0xff] %v1049_v1 }
 0x17e PF: > { %s13_s16 = sadd.s32 1, %s1525_s16   ;;  %s1808_s12 = smov %s1513_s13 }
 0x17f   : > { %p10_p12 = scmp.ge.s32.totalorder %s13_s16, 5   ;;  %s1809_s13 = smov %s1583_s20 }
 0x180   : > { %s1810_s14 = smov %s1521_s15  ;;  %s1811_s15 = smov %s1813_s17 }
 0x181   :  { %12 = sbr.rel (!%p10_p12) target bundleno = 3 (0x3), region = 113 }

// kernel: _lambda_.16
= control target key start
LH: loop header
LB: loop body
LE: loop exit
PB: predicated region body
PF: predicated region fallthrough
CT: control target
= control target key end

     0   :  { %s1513_s12 = smov 0   ;;  %s1515_s13 = smov 0   ;;  %s1774_s0 = inlined_call_operand.vmem [shape: bf16[512,640], index: 0, kind: input, shape index: {}]   ;;  %s1775_s1 = inlined_call_operand.vmem [shape: bf16[640,128], index: 1, kind: input, shape index: {}]   ;;  %s1776_s2 = inlined_call_operand.vmem [shape: f32[1,128], index: 2, kind: input, shape index: {}]   ;;  %s1777_s3 = inlined_call_operand.vmem [shape: f32[512,128], index: 3, kind: output, shape index: {}]  }
   0x1   :  { %s1517_s14 = smov 0   ;;  %s1519_s15 = smov 0  }
   0x2   :  { %s1521_s16 = smov 0   ;;  %s1523_s17 = smov 0  }
   0x3   :  { %s1525_s18 = smov 0  }
   0x4 LB: > { %s25_s19 = sadd.s32 1, %s1482_s16  ;;  %s32_s20 = sadd.s32 1, %s1486_s17  ;;  %s1490_s18 = sphi %s1525_s18, %s13_s18   ;;  %s1486_s17 = sphi %s1523_s17, %s1783_s17   ;;  %s1482_s16 = sphi %s1521_s16, %s1782_s16   ;;  %s1478_s15 = sphi %s1519_s15, %s1781_s15   ;;  %s1474_s14 = sphi %s1517_s14, %s1780_s14   ;;  %s1470_s13 = sphi %s1515_s13, %s1779_s13   ;;  %s1466_s12 = sphi %s1513_s12, %s1778_s12  }
   0x5   : > { %p26_p0 = scmp.ge.s32.totalorder %s25_s19, 5  ;;  %p48_p1 = scmp.ne.s32.totalorder %s1470_s13, %s1466_s12 }
   0x6   : > { %p49_p2 = scmp.eq.s32.totalorder %s1490_s18, 0  ;;  %s41_s24 = sadd.s32 1, %s1470_s13 }
   0x7   : > { %s1785_s19 = smov (%p26_p0, %s25_s19), 0  ;;  %s1787_s20 = smov (!%p26_p0, %s32_s20), %s1486_s17 }
   0x8   : > { %p50_p3 = por %p49_p2, %p48_p1  ;;  %p34_p4 = scmp.ge.s32.totalorder %s1787_s20, 2 }
   0x9   : > { %s37_s21 = ssub.s32 %s1482_s16, %s1785_s19  ;;  %p1226_p6 = scmp.ge.s32.totalorder %s1490_s18, 10 }
   0xa   : > { %s1789_s20 = smov (%p34_p4, %s1787_s20), 0 }
   0xb   : > { %s36_s22 = ssub.s32 %s1486_s17, %s1789_s20  ;;  %162 = sbr.rel (%p1226_p6) target bundleno = 46 (0x2e), region = 20 }
   0xc   : > { %s38_s23 = sor.u32 %s37_s21, %s36_s22 }
   0xd   : > { %p39_p5 = scmp.eq.s32.totalorder %s38_s23, 0 }
   0xf   : > { %s1564_s25 = scalar_select %p39_p5, %s1470_s13, %s41_s24  }
  0x12   : > { %165 = sbr.rel (!%p50_p3) target bundleno = 46 (0x2e), region = 24  ;;  %s167_s26 = sand.u32 (%p50_p3), 1, %s1470_s13  }
  0x13   : > { %s1354_s27 = smul.u32 (%p50_p3), 160, %s1486_s17  ;;  %s1227_s28 = sshll.u32 (%p50_p3), %s167_s26, 7 }
  0x14   : > { %s1578_s7 = scalar_lea.vmem (%p50_p3), [#allocation3], %s1227_s28 }
  0x15   : > { %s172_s29 = sadd.s32 (%p50_p3), %s1482_s16, %s1354_s27 }
  0x16   : > { %s1230_s30 = sshll.u32 (%p50_p3), %s172_s29, 2 }
  0x17   : > { %s1573_s6 = scalar_lea.vmem (%p50_p3), %s1774_s0, %s1230_s30 }
  0x18   : > { %v190_v0 = vld [vmem:[%s1573_s6] sm:$0xf] (%p50_p3)  ;;  %v192_v1 = vld [vmem:[%s1573_s6 + $0x14] sm:$0xf] (%p50_p3)  ;;  %v194_v2 = vld [vmem:[%s1573_s6 + $0x28] sm:$0xf] (%p50_p3) }
  0x19   : > { %191 = vst [vmem:[%s1578_s7] sm:$0xf] %v190_v0  ;;  %193 = vst [vmem:[%s1578_s7 + $0x4] sm:$0xf] %v192_v1  ;;  %v196_v3 = vld [vmem:[%s1573_s6 + $0x3c] sm:$0xf] }
  0x1a   : > { %195 = vst [vmem:[%s1578_s7 + $0x8] sm:$0xf] %v194_v2  ;;  %v198_v4 = vld [vmem:[%s1573_s6 + $0x50] sm:$0xf]  ;;  %v200_v5 = vld [vmem:[%s1573_s6 + $0x64] sm:$0xf] }
  0x1b   : > { %197 = vst [vmem:[%s1578_s7 + $0xc] sm:$0xf] %v196_v3  ;;  %199 = vst [vmem:[%s1578_s7 + $0x10] sm:$0xf] %v198_v4  ;;  %v202_v6 = vld [vmem:[%s1573_s6 + $0x78] sm:$0xf] }
  0x1c   : > { %201 = vst [vmem:[%s1578_s7 + $0x14] sm:$0xf] %v200_v5  ;;  %v204_v7 = vld [vmem:[%s1573_s6 + $0x8c] sm:$0xf]  ;;  %v206_v8 = vld [vmem:[%s1573_s6 + $0xa0] sm:$0xf] }
  0x1d   : > { %203 = vst [vmem:[%s1578_s7 + $0x18] sm:$0xf] %v202_v6  ;;  %205 = vst [vmem:[%s1578_s7 + $0x1c] sm:$0xf] %v204_v7  ;;  %v208_v9 = vld [vmem:[%s1573_s6 + $0xb4] sm:$0xf] }
  0x1e   : > { %207 = vst [vmem:[%s1578_s7 + $0x20] sm:$0xf] %v206_v8  ;;  %v210_v10 = vld [vmem:[%s1573_s6 + $0xc8] sm:$0xf]  ;;  %v212_v11 = vld [vmem:[%s1573_s6 + $0xdc] sm:$0xf] }
  0x1f   : > { %209 = vst [vmem:[%s1578_s7 + $0x24] sm:$0xf] %v208_v9  ;;  %211 = vst [vmem:[%s1578_s7 + $0x28] sm:$0xf] %v210_v10  ;;  %v214_v12 = vld [vmem:[%s1573_s6 + $0xf0] sm:$0xf] }
  0x20   : > { %213 = vst [vmem:[%s1578_s7 + $0x2c] sm:$0xf] %v212_v11  ;;  %v216_v13 = vld [vmem:[%s1573_s6 + $0x104] sm:$0xf]  ;;  %v218_v14 = vld [vmem:[%s1573_s6 + $0x118] sm:$0xf] }
  0x21   : > { %215 = vst [vmem:[%s1578_s7 + $0x30] sm:$0xf] %v214_v12  ;;  %217 = vst [vmem:[%s1578_s7 + $0x34] sm:$0xf] %v216_v13  ;;  %v220_v15 = vld [vmem:[%s1573_s6 + $0x12c] sm:$0xf] }
  0x22   : > { %219 = vst [vmem:[%s1578_s7 + $0x38] sm:$0xf] %v218_v14  ;;  %v222_v16 = vld [vmem:[%s1573_s6 + $0x140] sm:$0xf]  ;;  %v224_v17 = vld [vmem:[%s1573_s6 + $0x154] sm:$0xf] }
  0x23   : > { %221 = vst [vmem:[%s1578_s7 + $0x3c] sm:$0xf] %v220_v15  ;;  %223 = vst [vmem:[%s1578_s7 + $0x40] sm:$0xf] %v222_v16  ;;  %v226_v18 = vld [vmem:[%s1573_s6 + $0x168] sm:$0xf] }
  0x24   : > { %225 = vst [vmem:[%s1578_s7 + $0x44] sm:$0xf] %v224_v17  ;;  %v228_v19 = vld [vmem:[%s1573_s6 + $0x17c] sm:$0xf]  ;;  %v230_v20 = vld [vmem:[%s1573_s6 + $0x190] sm:$0xf] }
  0x25   : > { %227 = vst [vmem:[%s1578_s7 + $0x48] sm:$0xf] %v226_v18  ;;  %229 = vst [vmem:[%s1578_s7 + $0x4c] sm:$0xf] %v228_v19  ;;  %v232_v21 = vld [vmem:[%s1573_s6 + $0x1a4] sm:$0xf] }
  0x26   : > { %231 = vst [vmem:[%s1578_s7 + $0x50] sm:$0xf] %v230_v20  ;;  %v234_v22 = vld [vmem:[%s1573_s6 + $0x1b8] sm:$0xf]  ;;  %v236_v23 = vld [vmem:[%s1573_s6 + $0x1cc] sm:$0xf] }
  0x27   : > { %233 = vst [vmem:[%s1578_s7 + $0x54] sm:$0xf] %v232_v21  ;;  %235 = vst [vmem:[%s1578_s7 + $0x58] sm:$0xf] %v234_v22  ;;  %v238_v24 = vld [vmem:[%s1573_s6 + $0x1e0] sm:$0xf] }
  0x28   : > { %237 = vst [vmem:[%s1578_s7 + $0x5c] sm:$0xf] %v236_v23  ;;  %v240_v25 = vld [vmem:[%s1573_s6 + $0x1f4] sm:$0xf]  ;;  %v242_v26 = vld [vmem:[%s1573_s6 + $0x208] sm:$0xf] }
  0x29   : > { %239 = vst [vmem:[%s1578_s7 + $0x60] sm:$0xf] %v238_v24  ;;  %241 = vst [vmem:[%s1578_s7 + $0x64] sm:$0xf] %v240_v25  ;;  %v244_v27 = vld [vmem:[%s1573_s6 + $0x21c] sm:$0xf] }
  0x2a   : > { %243 = vst [vmem:[%s1578_s7 + $0x68] sm:$0xf] %v242_v26  ;;  %v246_v28 = vld [vmem:[%s1573_s6 + $0x230] sm:$0xf]  ;;  %v248_v29 = vld [vmem:[%s1573_s6 + $0x244] sm:$0xf] }
  0x2b   : > { %245 = vst [vmem:[%s1578_s7 + $0x6c] sm:$0xf] %v244_v27  ;;  %247 = vst [vmem:[%s1578_s7 + $0x70] sm:$0xf] %v246_v28  ;;  %v250_v30 = vld [vmem:[%s1573_s6 + $0x258] sm:$0xf] }
  0x2c   : > { %249 = vst [vmem:[%s1578_s7 + $0x74] sm:$0xf] %v248_v29  ;;  %v252_v31 = vld [vmem:[%s1573_s6 + $0x26c] sm:$0xf]  ;;  %251 = vst [vmem:[%s1578_s7 + $0x78] sm:$0xf] %v250_v30 }
  0x2d   : > { %253 = vst [vmem:[%s1578_s7 + $0x7c] sm:$0xf] %v252_v31 }
  0x2e PF: > { %p1231_p7 = scmp.ge.s32.totalorder %s1490_s18, 1  ;;  %p351_p8 = scmp.lt.s32.totalorder %s1490_s18, 11 }
  0x30   : > { %p352_p9 = pnand %p1231_p7, %p351_p8 }
  0x31   : > { %s358_s8 = sand.u32 (!%p352_p9), 1, %s1466_s12   ;;  %s1233_s9 = sshll.u32 (!%p352_p9), %s1474_s14, 4 }
  0x32   : > { %355 = sbr.rel (%p352_p9) target bundleno = 376 (0x178), region = 69  ;;  %s1232_s10 = sshll.u32 (!%p352_p9), %s358_s8, 7 }
  0x33   : > { %p397_p10 = scmp.lt.s32.totalorder (!%p352_p9), %s1233_s9, 79  ;;  %s1235_s11 = sshll.u32 (!%p352_p9), %s1478_s15, 5 }
  0x34   : > { %p409_p11 = scmp.lt.s32.totalorder (!%p352_p9), %s1235_s11, 63  ;;  %s1656_s12 = scalar_lea.vmem (!%p352_p9), [#allocation3], %s1232_s10 }
  0x35   : > { %p1237_p12 = scmp.ne.s32.totalorder (!%p352_p9), %s1474_s14, 0 }
  0x39   : > { %s1791_s9 = smov (!%p397_p10, %s1233_s9), 79  ;;  %s1793_s11 = smov (!%p409_p11, %s1235_s11), 63 }
  0x3a   : > { %s1234_s21 = sshll.u32 %s1791_s9, 2  ;;  %s1236_s26 = sshll.u32 %s1793_s11, 3  ;;  %v1492_v32 = vmov (!%p1237_p12), 0.0  }
  0x3b   : > { %s1649_s24 = scalar_lea.vmem %s1775_s1, %s1234_s21  ;;  %s1654_s29 = scalar_lea.vmem %s1777_s3, %s1236_s26  ;;  %422 = vst [vmem:[#allocation2] sm:$0xff] (!%p1237_p12), %v1492_v32  ;;  %423 = vst [vmem:[#allocation2 + $0x8] sm:$0xff] (!%p1237_p12), %v1492_v32 }
  0x3c   : > { %421 = sbr.rel (%p1237_p12) target bundleno = 75 (0x4b), region = 77  ;;  %424 = vst [vmem:[#allocation2 + $0x10] sm:$0xff] (!%p1237_p12), %v1492_v32  ;;  %425 = vst [vmem:[#allocation2 + $0x18] sm:$0xff] (!%p1237_p12), %v1492_v32 }
  0x3d   : > { %426 = vst [vmem:[#allocation2 + $0x20] sm:$0xff] (!%p1237_p12), %v1492_v32  ;;  %427 = vst [vmem:[#allocation2 + $0x28] sm:$0xff] (!%p1237_p12), %v1492_v32 }
  0x3e   : > { %428 = vst [vmem:[#allocation2 + $0x30] sm:$0xff] (!%p1237_p12), %v1492_v32  ;;  %429 = vst [vmem:[#allocation2 + $0x38] sm:$0xff] (!%p1237_p12), %v1492_v32 }
  0x3f   : > { %430 = vst [vmem:[#allocation2 + $0x40] sm:$0xff] (!%p1237_p12), %v1492_v32  ;;  %431 = vst [vmem:[#allocation2 + $0x48] sm:$0xff] (!%p1237_p12), %v1492_v32 }
  0x40   : > { %432 = vst [vmem:[#allocation2 + $0x50] sm:$0xff] (!%p1237_p12), %v1492_v32  ;;  %433 = vst [vmem:[#allocation2 + $0x58] sm:$0xff] (!%p1237_p12), %v1492_v32 }
  0x41   : > { %434 = vst [vmem:[#allocation2 + $0x60] sm:$0xff] (!%p1237_p12), %v1492_v32  ;;  %435 = vst [vmem:[#allocation2 + $0x68] sm:$0xff] (!%p1237_p12), %v1492_v32 }
  0x42   : > { %436 = vst [vmem:[#allocation2 + $0x70] sm:$0xff] (!%p1237_p12), %v1492_v32  ;;  %437 = vst [vmem:[#allocation2 + $0x78] sm:$0xff] (!%p1237_p12), %v1492_v32 }
  0x43   : > { %438 = vst [vmem:[#allocation2 + $0x80] sm:$0xff] %v1492_v32  ;;  %439 = vst [vmem:[#allocation2 + $0x88] sm:$0xff] %v1492_v32 }
  0x44   : > { %440 = vst [vmem:[#allocation2 + $0x90] sm:$0xff] %v1492_v32  ;;  %441 = vst [vmem:[#allocation2 + $0x98] sm:$0xff] %v1492_v32 }
  0x45   : > { %442 = vst [vmem:[#allocation2 + $0xa0] sm:$0xff] %v1492_v32  ;;  %443 = vst [vmem:[#allocation2 + $0xa8] sm:$0xff] %v1492_v32 }
  0x46   : > { %444 = vst [vmem:[#allocation2 + $0xb0] sm:$0xff] %v1492_v32  ;;  %445 = vst [vmem:[#allocation2 + $0xb8] sm:$0xff] %v1492_v32 }
  0x47   : > { %446 = vst [vmem:[#allocation2 + $0xc0] sm:$0xff] %v1492_v32  ;;  %447 = vst [vmem:[#allocation2 + $0xc8] sm:$0xff] %v1492_v32 }
  0x48   : > { %448 = vst [vmem:[#allocation2 + $0xd0] sm:$0xff] %v1492_v32  ;;  %449 = vst [vmem:[#allocation2 + $0xd8] sm:$0xff] %v1492_v32 }
  0x49   : > { %450 = vst [vmem:[#allocation2 + $0xe0] sm:$0xff] %v1492_v32  ;;  %451 = vst [vmem:[#allocation2 + $0xe8] sm:$0xff] %v1492_v32 }
  0x4a   : > { %452 = vst [vmem:[#allocation2 + $0xf0] sm:$0xff] %v1492_v32  ;;  %453 = vst [vmem:[#allocation2 + $0xf8] sm:$0xff] %v1492_v32 }
  0x4b PF: > { %v1412_v33 = vld [vmem:[%s1649_s24] sm:$0xff]   ;;  %v1413_v34 = vld [vmem:[%s1649_s24 + $0x8] sm:$0xff]   ;;  %v1414_v35 = vld [vmem:[%s1649_s24 + $0x10] sm:$0xff]   ;;  %p1262_p13 = scmp.ne.s32.totalorder %s1474_s14, 4 }
  0x4c   : > { %1290 = vmatprep.subr.bf16.mxu0 %v1412_v33  ;;  %1338 = vmatprep.subr.bf16.mxu1 %v1412_v33  ;;  %v1415_v36 = vld [vmem:[%s1649_s24 + $0x18] sm:$0xff]   ;;  %v1420_v37 = vld [vmem:[%s1656_s12] sm:$0xff]   ;;  %v1417_v40 = vld [vmem:[%s1649_s24 + $0x28] sm:$0xff]  }
  0x4d   : > { %1291 = vmatpush3.bf16.msra.mxu0 %v1412_v33  ;;  %1346 = vmatpush3.bf16.msra.mxu1 %v1412_v33  ;;  %v1421_v38 = vld [vmem:[%s1656_s12 + $0x40] sm:$0xff]   ;;  %v1418_v41 = vld [vmem:[%s1649_s24 + $0x30] sm:$0xff]   ;;  %v1419_v42 = vld [vmem:[%s1649_s24 + $0x38] sm:$0xff]  }
  0x4e   : > { %1292 = vmatprep.subr.bf16.mxu0 %v1413_v34  ;;  %1339 = vmatprep.subr.bf16.mxu1 %v1413_v34  ;;  %v1416_v39 = vld [vmem:[%s1649_s24 + $0x20] sm:$0xff]   ;;  %v1422_v43 = vld [vmem:[%s1656_s12 + $0x8] sm:$0xff]   ;;  %v1424_v45 = vld [vmem:[%s1656_s12 + $0x10] sm:$0xff]  }
  0x4f   : > { %1306 = vmatprep.mubr.bf16.mxu0 %v1420_v37  ;;  %1322 = vmatprep.mubr.bf16.mxu1 %v1421_v38  ;;  %v1423_v44 = vld [vmem:[%s1656_s12 + $0x48] sm:$0xff]   ;;  %v1425_v46 = vld [vmem:[%s1656_s12 + $0x50] sm:$0xff]   ;;  %v1426_v47 = vld [vmem:[%s1656_s12 + $0x18] sm:$0xff]  }
  0x50   : > { %v1427_v48 = vld [vmem:[%s1656_s12 + $0x58] sm:$0xff]   ;;  %v1428_v49 = vld [vmem:[%s1656_s12 + $0x20] sm:$0xff]   ;;  %v1430_v51 = vld [vmem:[%s1656_s12 + $0x28] sm:$0xff]  }
  0x51   : > { %1293 = vmatpush3.bf16.msra.mxu0 %v1413_v34  ;;  %1347 = vmatpush3.bf16.msra.mxu1 %v1413_v34  ;;  %v1429_v50 = vld [vmem:[%s1656_s12 + $0x60] sm:$0xff]   ;;  %v1431_v52 = vld [vmem:[%s1656_s12 + $0x68] sm:$0xff]   ;;  %v1432_v53 = vld [vmem:[%s1656_s12 + $0x30] sm:$0xff]  }
  0x52   : > { %1294 = vmatprep.subr.bf16.mxu0 %v1414_v35  ;;  %1340 = vmatprep.subr.bf16.mxu1 %v1414_v35  ;;  %v1433_v54 = vld [vmem:[%s1656_s12 + $0x70] sm:$0xff]   ;;  %v1434_v55 = vld [vmem:[%s1656_s12 + $0x38] sm:$0xff]   ;;  %v454_v59 = vld [vmem:[#allocation2] sm:$0xff] }
  0x53   : > { %v1435_v56 = vld [vmem:[%s1656_s12 + $0x78] sm:$0xff]   ;;  %v456_v57 = vld [vmem:[#allocation2 + $0x10] sm:$0xff]  ;;  %v470_v60 = vld [vmem:[#allocation2 + $0x80] sm:$0xff] }
  0x54   : > { %v472_v58 = vld [vmem:[#allocation2 + $0x90] sm:$0xff]  ;;  %v457_v63 = vld [vmem:[#allocation2 + $0x18] sm:$0xff]  ;;  %v455_v5 = vld [vmem:[#allocation2 + $0x8] sm:$0xff] }
  0x55   : > { %1295 = vmatpush3.bf16.msra.mxu0 %v1414_v35  ;;  %1348 = vmatpush3.bf16.msra.mxu1 %v1414_v35  ;;  %v473_v0 = vld [vmem:[#allocation2 + $0x98] sm:$0xff]  ;;  %v471_v6 = vld [vmem:[#allocation2 + $0x88] sm:$0xff]  ;;  %v460_v17 = vld [vmem:[#allocation2 + $0x30] sm:$0xff] }
  0x56   : > { %1296 = vmatprep.subr.bf16.mxu0 %v1415_v36  ;;  %1341 = vmatprep.subr.bf16.mxu1 %v1415_v36  ;;  %v476_v18 = vld [vmem:[#allocation2 + $0xb0] sm:$0xff]  ;;  %v458_v19 = vld [vmem:[#allocation2 + $0x20] sm:$0xff]  ;;  %v461_v23 = vld [vmem:[#allocation2 + $0x38] sm:$0xff] }
  0x57   : > { %v474_v20 = vld [vmem:[#allocation2 + $0xa0] sm:$0xff]  ;;  %v477_v24 = vld [vmem:[#allocation2 + $0xb8] sm:$0xff]  ;;  %v459_v29 = vld [vmem:[#allocation2 + $0x28] sm:$0xff] }
  0x58   : > { %v475_v30 = vld [vmem:[#allocation2 + $0xa8] sm:$0xff] }
  0x59   : > { %1297 = vmatpush3.bf16.msra.mxu0 %v1415_v36  ;;  %1349 = vmatpush3.bf16.msra.mxu1 %v1415_v36 }
  0x5a   : > { %1298 = vmatprep.subr.bf16.mxu0 %v1416_v39  ;;  %1342 = vmatprep.subr.bf16.mxu1 %v1416_v39 }
  0x5d   : > { %1299 = vmatpush3.bf16.msra.mxu0 %v1416_v39  ;;  %1350 = vmatpush3.bf16.msra.mxu1 %v1416_v39 }
  0x5e   : > { %1300 = vmatprep.subr.bf16.mxu0 %v1417_v40  ;;  %1343 = vmatprep.subr.bf16.mxu1 %v1417_v40 }
  0x61   : > { %1301 = vmatpush3.bf16.msra.mxu0 %v1417_v40  ;;  %1351 = vmatpush3.bf16.msra.mxu1 %v1417_v40 }
  0x62   : > { %1302 = vmatprep.subr.bf16.mxu0 %v1418_v41  ;;  %1344 = vmatprep.subr.bf16.mxu1 %v1418_v41 }
  0x65   : > { %1303 = vmatpush3.bf16.msra.mxu0 %v1418_v41  ;;  %1352 = vmatpush3.bf16.msra.mxu1 %v1418_v41  ;;  %v464_v41 = vld [vmem:[#allocation2 + $0x50] sm:$0xff] }
  0x66   : > { %1304 = vmatprep.subr.bf16.mxu0 %v1419_v42  ;;  %1345 = vmatprep.subr.bf16.mxu1 %v1419_v42 }
  0x69   : > { %1305 = vmatpush3.bf16.msra.mxu0 %v1419_v42  ;;  %1353 = vmatpush3.bf16.msra.mxu1 %v1419_v42  ;;  %v480_v42 = vld [vmem:[#allocation2 + $0xd0] sm:$0xff] }
  0x6c   : > { %1307 = vmatmul.mubr.bf16.vlgmr.msra.gmra.mrb[0].mxu0 %v1422_v43  ;;  %1323 = vmatmul.mubr.bf16.vlgmr.msra.gmra.mrb[0].mxu1 %v1423_v44  ;;  %v462_v43 = vld [vmem:[#allocation2 + $0x40] sm:$0xff] }
  0x6d   : > { %1310 = vmatprep.mubr.bf16.mxu0 %v1424_v45  ;;  %1326 = vmatprep.mubr.bf16.mxu1 %v1425_v46  ;;  %v478_v44 = vld [vmem:[#allocation2 + $0xc0] sm:$0xff] }
  0x74   : > { %1311 = vmatmul.mubr.bf16.gmra.mrb[4].mxu0 %v1426_v47  ;;  %1327 = vmatmul.mubr.bf16.gmra.mrb[4].mxu1 %v1427_v48  ;;  %v465_v47 = vld [vmem:[#allocation2 + $0x58] sm:$0xff] }
  0x75   : > { %1314 = vmatprep.mubr.bf16.mxu0 %v1428_v49  ;;  %1330 = vmatprep.mubr.bf16.mxu1 %v1429_v50  ;;  %v481_v48 = vld [vmem:[#allocation2 + $0xd8] sm:$0xff] }
  0x7c   : > { %1315 = vmatmul.mubr.bf16.gmra.mrb[8].mxu0 %v1430_v51  ;;  %1331 = vmatmul.mubr.bf16.gmra.mrb[8].mxu1 %v1431_v52 }
  0x7d   : > { %1318 = vmatprep.mubr.bf16.mxu0 %v1432_v53  ;;  %1334 = vmatprep.mubr.bf16.mxu1 %v1433_v54  ;;  %v463_v53 = vld [vmem:[#allocation2 + $0x48] sm:$0xff] }
  0x7e   : > { %v479_v54 = vld [vmem:[#allocation2 + $0xc8] sm:$0xff] }
  0x84   : > { %1319 = vmatmul.mubr.bf16.gmra.mrb[12].mxu0 %v1434_v55  ;;  %1335 = vmatmul.mubr.bf16.gmra.mrb[12].mxu1 %v1435_v56 }
 0x13f   : > { %v1308_v61 = vpop.f32.mrb[0].mxu0  ;;  %v1324_v62 = vpop.f32.mrb[0].mxu1 }
 0x140   : > { %v841_v1 = vadd.f32 %v1308_v61, %v456_v57  ;;  %v857_v2 = vadd.f32 %v1324_v62, %v472_v58  ;;  %v712_v3 = vpop.f32.mrb[1].mxu0  ;;  %v776_v4 = vpop.f32.mrb[1].mxu1 }
 0x141   : > { %v839_v7 = vadd.f32 %v712_v3, %v454_v59  ;;  %v855_v8 = vadd.f32 %v776_v4, %v470_v60  ;;  %v1309_v9 = vpop.f32.mrb[2].mxu0  ;;  %v1325_v10 = vpop.f32.mrb[2].mxu1  ;;  %v466_v3 = vld [vmem:[#allocation2 + $0x60] sm:$0xff] }
 0x142   : > { %873 = vst [vmem:[#allocation2 + $0x10] sm:$0xff] %v841_v1  ;;  %889 = vst [vmem:[#allocation2 + $0x90] sm:$0xff] %v857_v2  ;;  %v842_v11 = vadd.f32 %v1309_v9, %v457_v63  ;;  %v858_v12 = vadd.f32 %v1325_v10, %v473_v0  ;;  %v715_v13 = vpop.f32.mrb[3].mxu0  ;;  %v779_v14 = vpop.f32.mrb[3].mxu1  ;;  %v468_v1 = vld [vmem:[#allocation2 + $0x70] sm:$0xff]  ;;  %v482_v4 = vld [vmem:[#allocation2 + $0xe0] sm:$0xff] }
 0x143   : > { %871 = vst [vmem:[#allocation2] sm:$0xff] %v839_v7  ;;  %887 = vst [vmem:[#allocation2 + $0x80] sm:$0xff] %v855_v8  ;;  %v840_v15 = vadd.f32 %v715_v13, %v455_v5  ;;  %v856_v16 = vadd.f32 %v779_v14, %v471_v6  ;;  %v484_v2 = vld [vmem:[#allocation2 + $0xf0] sm:$0xff]  ;;  %v469_v7 = vld [vmem:[#allocation2 + $0x78] sm:$0xff] }
 0x144   : > { %874 = vst [vmem:[#allocation2 + $0x18] sm:$0xff] %v842_v11  ;;  %890 = vst [vmem:[#allocation2 + $0x98] sm:$0xff] %v858_v12  ;;  %v485_v8 = vld [vmem:[#allocation2 + $0xf8] sm:$0xff]  ;;  %v467_v13 = vld [vmem:[#allocation2 + $0x68] sm:$0xff] }
 0x145   : > { %872 = vst [vmem:[#allocation2 + $0x8] sm:$0xff] %v840_v15  ;;  %888 = vst [vmem:[#allocation2 + $0x88] sm:$0xff] %v856_v16  ;;  %v483_v14 = vld [vmem:[#allocation2 + $0xe8] sm:$0xff] }
 0x147   : > { %v1312_v21 = vpop.f32.mrb[4].mxu0  ;;  %v1328_v22 = vpop.f32.mrb[4].mxu1 }
 0x148   : > { %v845_v25 = vadd.f32 %v1312_v21, %v460_v17  ;;  %v861_v26 = vadd.f32 %v1328_v22, %v476_v18  ;;  %v728_v27 = vpop.f32.mrb[5].mxu0  ;;  %v792_v28 = vpop.f32.mrb[5].mxu1 }
 0x149   : > { %v843_v31 = vadd.f32 %v728_v27, %v458_v19  ;;  %v859_v32 = vadd.f32 %v792_v28, %v474_v20  ;;  %v1313_v33 = vpop.f32.mrb[6].mxu0  ;;  %v1329_v34 = vpop.f32.mrb[6].mxu1 }
 0x14a   : > { %877 = vst [vmem:[#allocation2 + $0x30] sm:$0xff] %v845_v25  ;;  %893 = vst [vmem:[#allocation2 + $0xb0] sm:$0xff] %v861_v26  ;;  %v846_v35 = vadd.f32 %v1313_v33, %v461_v23  ;;  %v862_v36 = vadd.f32 %v1329_v34, %v477_v24  ;;  %v731_v37 = vpop.f32.mrb[7].mxu0  ;;  %v795_v38 = vpop.f32.mrb[7].mxu1  ;;  %v907_v25 = vld [vmem:[#allocation2] sm:$0xff] (!%p1262_p13) }
 0x14b   : > { %875 = vst [vmem:[#allocation2 + $0x20] sm:$0xff] %v843_v31  ;;  %891 = vst [vmem:[#allocation2 + $0xa0] sm:$0xff] %v859_v32  ;;  %v844_v39 = vadd.f32 %v731_v37, %v459_v29  ;;  %v860_v40 = vadd.f32 %v795_v38, %v475_v30  ;;  %v1687_v26 = vld [vmem:[%s1776_s2] ss:$0 sm:$0xff] (!%p1262_p13)  ;;  %v909_v30 = vld [vmem:[#allocation2 + $0x10] sm:$0xff] (!%p1262_p13) }
 0x14c   : > { %878 = vst [vmem:[#allocation2 + $0x38] sm:$0xff] %v846_v35  ;;  %894 = vst [vmem:[#allocation2 + $0xb8] sm:$0xff] %v862_v36  ;;  %v908_v27 = vld [vmem:[#allocation2 + $0x8] sm:$0xff] (!%p1262_p13)  ;;  %v946_v28 = vadd.f32 (!%p1262_p13), %v1687_v26, %v907_v25  ;;  %v910_v31 = vld [vmem:[#allocation2 + $0x18] sm:$0xff] (!%p1262_p13)  ;;  %v948_v33 = vadd.f32 (!%p1262_p13), %v1687_v26, %v909_v30 }
 0x14d   : > { %876 = vst [vmem:[#allocation2 + $0x28] sm:$0xff] %v844_v39  ;;  %892 = vst [vmem:[#allocation2 + $0xa8] sm:$0xff] %v860_v40  ;;  %v947_v29 = vadd.f32 (!%p1262_p13), %v1687_v26, %v908_v27  ;;  %v949_v34 = vadd.f32 (!%p1262_p13), %v1687_v26, %v910_v31 }
 0x14e   : > { %vm978_vm0 = vcmp.ge.f32.partialorder (!%p1262_p13), %v946_v28, 0.0  ;;  %v1010_v39 = vmul.f32 (!%p1262_p13), 0.2, %v946_v28  ;;  %vm980_vm2 = vcmp.ge.f32.partialorder (!%p1262_p13), %v948_v33, 0.0 }
 0x14f   : > { %v1316_v45 = vpop.f32.mrb[8].mxu0  ;;  %v1332_v46 = vpop.f32.mrb[8].mxu1  ;;  %vm979_vm1 = vcmp.ge.f32.partialorder (!%p1262_p13), %v947_v29, 0.0  ;;  %v1011_v40 = vmul.f32 (!%p1262_p13), 0.2, %v947_v29  ;;  %vm981_vm3 = vcmp.ge.f32.partialorder (!%p1262_p13), %v949_v34, 0.0 }
 0x150   : > { %v849_v49 = vadd.f32 %v1316_v45, %v464_v41  ;;  %v865_v50 = vadd.f32 %v1332_v46, %v480_v42  ;;  %v744_v51 = vpop.f32.mrb[9].mxu0  ;;  %v808_v52 = vpop.f32.mrb[9].mxu1  ;;  %v1012_v41 = vmul.f32 (!%p1262_p13), 0.2, %v948_v33  ;;  %v1013_v42 = vmul.f32 (!%p1262_p13), 0.2, %v949_v34 }
 0x151   : > { %v847_v55 = vadd.f32 %v744_v51, %v462_v43  ;;  %v863_v56 = vadd.f32 %v808_v52, %v478_v44  ;;  %v1317_v57 = vpop.f32.mrb[10].mxu0  ;;  %v1333_v58 = vpop.f32.mrb[10].mxu1  ;;  %v913_v37 = vld [vmem:[#allocation2 + $0x30] sm:$0xff] (!%p1262_p13)  ;;  %v1042_v43 = vsel (!%p1262_p13), %vm978_vm0, %v946_v28, %v1010_v39  ;;  %v1043_v44 = vsel (!%p1262_p13), %vm979_vm1, %v947_v29, %v1011_v40 }
 0x152   : > { %881 = vst [vmem:[#allocation2 + $0x50] sm:$0xff] %v849_v49  ;;  %897 = vst [vmem:[#allocation2 + $0xd0] sm:$0xff] %v865_v50  ;;  %v850_v59 = vadd.f32 %v1317_v57, %v465_v47  ;;  %v866_v60 = vadd.f32 %v1333_v58, %v481_v48  ;;  %v747_v61 = vpop.f32.mrb[11].mxu0  ;;  %v811_v62 = vpop.f32.mrb[11].mxu1  ;;  %v911_v32 = vld [vmem:[#allocation2 + $0x20] sm:$0xff] (!%p1262_p13)  ;;  %v1044_v48 = vsel (!%p1262_p13), %vm980_vm2, %v948_v33, %v1012_v41 }
 0x153   : > { %879 = vst [vmem:[#allocation2 + $0x40] sm:$0xff] %v847_v55  ;;  %895 = vst [vmem:[#allocation2 + $0xc0] sm:$0xff] %v863_v56  ;;  %v848_v63 = vadd.f32 %v747_v61, %v463_v53  ;;  %v864_v0 = vadd.f32 %v811_v62, %v479_v54  ;;  %v950_v35 = vadd.f32 (!%p1262_p13), %v1687_v26, %v911_v32  ;;  %v914_v38 = vld [vmem:[#allocation2 + $0x38] sm:$0xff] (!%p1262_p13)  ;;  %v927_v29 = vld [vmem:[#allocation2 + $0xa0] sm:$0xff] (!%p1262_p13) }
 0x154   : > { %882 = vst [vmem:[#allocation2 + $0x58] sm:$0xff] %v850_v59  ;;  %898 = vst [vmem:[#allocation2 + $0xd8] sm:$0xff] %v866_v60  ;;  %v912_v36 = vld [vmem:[#allocation2 + $0x28] sm:$0xff] (!%p1262_p13)  ;;  %v1045_v49 = vsel (!%p1262_p13), %vm981_vm3, %v949_v34, %v1013_v42  ;;  %v952_v51 = vadd.f32 (!%p1262_p13), %v1687_v26, %v913_v37  ;;  %v953_v55 = vadd.f32 (!%p1262_p13), %v1687_v26, %v914_v38 }
 0x155   : > { %880 = vst [vmem:[#allocation2 + $0x48] sm:$0xff] %v848_v63  ;;  %896 = vst [vmem:[#allocation2 + $0xc8] sm:$0xff] %v864_v0  ;;  %vm982_vm4 = vcmp.ge.f32.partialorder (!%p1262_p13), %v950_v35, 0.0  ;;  %v1014_v45 = vmul.f32 (!%p1262_p13), 0.2, %v950_v35  ;;  %v951_v50 = vadd.f32 (!%p1262_p13), %v1687_v26, %v912_v36  ;;  %v928_v30 = vld [vmem:[#allocation2 + $0xa8] sm:$0xff] (!%p1262_p13) }
 0x156   : > { %1074 = vst [vmem:[%s1654_s29] sm:$0xff] (!%p1262_p13), %v1042_v43  ;;  %1075 = vst [vmem:[%s1654_s29 + $0x8] sm:$0xff] (!%p1262_p13), %v1043_v44  ;;  %vm984_vm6 = vcmp.ge.f32.partialorder (!%p1262_p13), %v952_v51, 0.0  ;;  %v1016_v62 = vmul.f32 (!%p1262_p13), 0.2, %v952_v51  ;;  %vm985_vm7 = vcmp.ge.f32.partialorder (!%p1262_p13), %v953_v55, 0.0  ;;  %v930_v36 = vld [vmem:[#allocation2 + $0xb8] sm:$0xff] (!%p1262_p13) }
 0x157   : > { %v1320_v5 = vpop.f32.mrb[12].mxu0  ;;  %v1336_v6 = vpop.f32.mrb[12].mxu1  ;;  %906 = sbr.rel (%p1262_p13) target bundleno = 376 (0x178), region = 81  ;;  %1076 = vst [vmem:[%s1654_s29 + $0x10] sm:$0xff] (!%p1262_p13), %v1044_v48  ;;  %1077 = vst [vmem:[%s1654_s29 + $0x18] sm:$0xff] (!%p1262_p13), %v1045_v49  ;;  %v1046_v54 = vsel (!%p1262_p13), %vm982_vm4, %v950_v35, %v1014_v45  ;;  %vm983_vm5 = vcmp.ge.f32.partialorder (!%p1262_p13), %v951_v50, 0.0  ;;  %v967_v48 = vadd.f32 (!%p1262_p13), %v1687_v26, %v928_v30 }
 0x158   : > { %v853_v9 = vadd.f32 %v1320_v5, %v468_v1  ;;  %v869_v10 = vadd.f32 %v1336_v6, %v484_v2  ;;  %v760_v11 = vpop.f32.mrb[13].mxu0  ;;  %v824_v12 = vpop.f32.mrb[13].mxu1  ;;  %1078 = vst [vmem:[%s1654_s29 + $0x20] sm:$0xff] (!%p1262_p13), %v1046_v54  ;;  %v1015_v61 = vmul.f32 (!%p1262_p13), 0.2, %v951_v50  ;;  %v1048_v2 = vsel (!%p1262_p13), %vm984_vm6, %v952_v51, %v1016_v62  ;;  %v929_v35 = vld [vmem:[#allocation2 + $0xb0] sm:$0xff] (!%p1262_p13) }
 0x159   : > { %v851_v15 = vadd.f32 %v760_v11, %v466_v3  ;;  %v867_v16 = vadd.f32 %v824_v12, %v482_v4  ;;  %v1321_v17 = vpop.f32.mrb[14].mxu0  ;;  %v1337_v18 = vpop.f32.mrb[14].mxu1  ;;  %v917_v52 = vld [vmem:[#allocation2 + $0x50] sm:$0xff] (!%p1262_p13)  ;;  %v1017_v63 = vmul.f32 (!%p1262_p13), 0.2, %v953_v55  ;;  %1080 = vst [vmem:[%s1654_s29 + $0x30] sm:$0xff] (!%p1262_p13), %v1048_v2 }
 0x15a   : > { %885 = vst [vmem:[#allocation2 + $0x70] sm:$0xff] %v853_v9  ;;  %901 = vst [vmem:[#allocation2 + $0xf0] sm:$0xff] %v869_v10  ;;  %v854_v19 = vadd.f32 %v1321_v17, %v469_v7  ;;  %v870_v20 = vadd.f32 %v1337_v18, %v485_v8  ;;  %v763_v21 = vpop.f32.mrb[15].mxu0  ;;  %v827_v22 = vpop.f32.mrb[15].mxu1  ;;  %v915_v46 = vld [vmem:[#allocation2 + $0x40] sm:$0xff] (!%p1262_p13)  ;;  %v1047_v1 = vsel (!%p1262_p13), %vm983_vm5, %v951_v50, %v1015_v61  ;;  %v933_v50 = vld [vmem:[#allocation2 + $0xd0] sm:$0xff] (!%p1262_p13) }
 0x15b   : > { %883 = vst [vmem:[#allocation2 + $0x60] sm:$0xff] %v851_v15  ;;  %899 = vst [vmem:[#allocation2 + $0xe0] sm:$0xff] %v867_v16  ;;  %v852_v23 = vadd.f32 %v763_v21, %v467_v13  ;;  %v868_v24 = vadd.f32 %v827_v22, %v483_v14  ;;  %v918_v53 = vld [vmem:[#allocation2 + $0x58] sm:$0xff] (!%p1262_p13)  ;;  %v954_v56 = vadd.f32 (!%p1262_p13), %v1687_v26, %v915_v46  ;;  %v923_v9 = vld [vmem:[#allocation2 + $0x80] sm:$0xff] (!%p1262_p13)  ;;  %vm999_vm5 = vcmp.ge.f32.partialorder (!%p1262_p13), %v967_v48, 0.0 }
 0x15c   : > { %886 = vst [vmem:[#allocation2 + $0x78] sm:$0xff] %v854_v19  ;;  %902 = vst [vmem:[#allocation2 + $0xf8] sm:$0xff] %v870_v20  ;;  %v916_v47 = vld [vmem:[#allocation2 + $0x48] sm:$0xff] (!%p1262_p13)  ;;  %v1049_v4 = vsel (!%p1262_p13), %vm985_vm7, %v953_v55, %v1017_v63  ;;  %v956_v6 = vadd.f32 (!%p1262_p13), %v1687_v26, %v917_v52  ;;  %v957_v7 = vadd.f32 (!%p1262_p13), %v1687_v26, %v918_v53  ;;  %v925_v15 = vld [vmem:[#allocation2 + $0x90] sm:$0xff] (!%p1262_p13) }
 0x15d   : > { %884 = vst [vmem:[#allocation2 + $0x68] sm:$0xff] %v852_v23  ;;  %900 = vst [vmem:[#allocation2 + $0xe8] sm:$0xff] %v868_v24  ;;  %v955_v57 = vadd.f32 (!%p1262_p13), %v1687_v26, %v916_v47  ;;  %vm986_vm8 = vcmp.ge.f32.partialorder (!%p1262_p13), %v954_v56, 0.0  ;;  %v1018_v0 = vmul.f32 (!%p1262_p13), 0.2, %v954_v56  ;;  %v924_v14 = vld [vmem:[#allocation2 + $0x88] sm:$0xff] (!%p1262_p13)  ;;  %v962_v28 = vadd.f32 (!%p1262_p13), %v1687_v26, %v923_v9 }
 0x15e   : > { %1079 = vst [vmem:[%s1654_s29 + $0x28] sm:$0xff] %v1047_v1  ;;  %1081 = vst [vmem:[%s1654_s29 + $0x38] sm:$0xff] %v1049_v4  ;;  %v926_v16 = vld [vmem:[#allocation2 + $0x98] sm:$0xff]  ;;  %vm988_vm10 = vcmp.ge.f32.partialorder %v956_v6, 0.0  ;;  %v1020_v17 = vmul.f32 0.2, %v956_v6  ;;  %v963_v32 = vadd.f32 %v1687_v26, %v924_v14  ;;  %v964_v33 = vadd.f32 %v1687_v26, %v925_v15 }
 0x15f   : > { %vm987_vm9 = vcmp.ge.f32.partialorder %v955_v57, 0.0  ;;  %v1019_v3 = vmul.f32 0.2, %v955_v57  ;;  %v1050_v5 = vsel %vm986_vm8, %v954_v56, %v1018_v0  ;;  %vm989_vm11 = vcmp.ge.f32.partialorder %v957_v7, 0.0  ;;  %v931_v37 = vld [vmem:[#allocation2 + $0xc0] sm:$0xff]  ;;  %v932_v49 = vld [vmem:[#allocation2 + $0xc8] sm:$0xff] }
 0x160   : > { %1082 = vst [vmem:[%s1654_s29 + $0x40] sm:$0xff] %v1050_v5  ;;  %v1021_v18 = vmul.f32 0.2, %v957_v7  ;;  %v1052_v21 = vsel %vm988_vm10, %v956_v6, %v1020_v17  ;;  %v965_v34 = vadd.f32 %v1687_v26, %v926_v16  ;;  %vm994_vm0 = vcmp.ge.f32.partialorder %v962_v28, 0.0  ;;  %v934_v55 = vld [vmem:[#allocation2 + $0xd8] sm:$0xff] }
 0x161   : > { %v921_v60 = vld [vmem:[#allocation2 + $0x70] sm:$0xff]  ;;  %v1051_v10 = vsel %vm987_vm9, %v955_v57, %v1019_v3  ;;  %1084 = vst [vmem:[%s1654_s29 + $0x50] sm:$0xff] %v1052_v21  ;;  %v1026_v39 = vmul.f32 0.2, %v962_v28  ;;  %vm995_vm1 = vcmp.ge.f32.partialorder %v963_v32, 0.0  ;;  %vm996_vm2 = vcmp.ge.f32.partialorder %v964_v33, 0.0 }
 0x162   : > { %v919_v58 = vld [vmem:[#allocation2 + $0x60] sm:$0xff]  ;;  %v960_v13 = vadd.f32 %v1687_v26, %v921_v60  ;;  %1083 = vst [vmem:[%s1654_s29 + $0x48] sm:$0xff] %v1051_v10  ;;  %v1053_v22 = vsel %vm989_vm11, %v957_v7, %v1021_v18  ;;  %v1027_v40 = vmul.f32 0.2, %v963_v32  ;;  %v1028_v41 = vmul.f32 0.2, %v964_v33 }
 0x163   : > { %v922_v8 = vld [vmem:[#allocation2 + $0x78] sm:$0xff]  ;;  %v958_v11 = vadd.f32 %v1687_v26, %v919_v58  ;;  %1085 = vst [vmem:[%s1654_s29 + $0x58] sm:$0xff] %v1053_v22  ;;  %v1058_v43 = vsel %vm994_vm0, %v962_v28, %v1026_v39  ;;  %vm997_vm3 = vcmp.ge.f32.partialorder %v965_v34, 0.0  ;;  %v1029_v44 = vmul.f32 0.2, %v965_v34  ;;  %v935_v56 = vld [vmem:[#allocation2 + $0xe0] sm:$0xff] }
 0x164   : > { %v920_v59 = vld [vmem:[#allocation2 + $0x68] sm:$0xff]  ;;  %vm992_vm14 = vcmp.ge.f32.partialorder %v960_v13, 0.0  ;;  %v1024_v23 = vmul.f32 0.2, %v960_v13  ;;  %v961_v27 = vadd.f32 %v1687_v26, %v922_v8  ;;  %1090 = vst [vmem:[%s1654_s29 + $0x80] sm:$0xff] %v1058_v43  ;;  %v1059_v45 = vsel %vm995_vm1, %v963_v32, %v1027_v40  ;;  %v937_v9 = vld [vmem:[#allocation2 + $0xf0] sm:$0xff] }
 0x165   : > { %v959_v12 = vadd.f32 %v1687_v26, %v920_v59  ;;  %vm990_vm12 = vcmp.ge.f32.partialorder %v958_v11, 0.0  ;;  %v1022_v19 = vmul.f32 0.2, %v958_v11  ;;  %v1060_v46 = vsel %vm996_vm2, %v964_v33, %v1028_v41  ;;  %1091 = vst [vmem:[%s1654_s29 + $0x88] sm:$0xff] %v1059_v45  ;;  %v936_v57 = vld [vmem:[#allocation2 + $0xe8] sm:$0xff]  ;;  %v938_v10 = vld [vmem:[#allocation2 + $0xf8] sm:$0xff] }
 0x166   : > { %v1056_v31 = vsel %vm992_vm14, %v960_v13, %v1024_v23  ;;  %vm993_vm15 = vcmp.ge.f32.partialorder %v961_v27, 0.0  ;;  %v1025_v38 = vmul.f32 0.2, %v961_v27  ;;  %v966_v47 = vadd.f32 %v1687_v26, %v927_v29  ;;  %1092 = vst [vmem:[%s1654_s29 + $0x90] sm:$0xff] %v1060_v46 }
 0x167   : > { %vm991_vm13 = vcmp.ge.f32.partialorder %v959_v12, 0.0  ;;  %v1023_v20 = vmul.f32 0.2, %v959_v12  ;;  %v1054_v24 = vsel %vm990_vm12, %v958_v11, %v1022_v19  ;;  %1088 = vst [vmem:[%s1654_s29 + $0x70] sm:$0xff] %v1056_v31  ;;  %v1061_v51 = vsel %vm997_vm3, %v965_v34, %v1029_v44 }
 0x168   : > { %1086 = vst [vmem:[%s1654_s29 + $0x60] sm:$0xff] %v1054_v24  ;;  %v1057_v42 = vsel %vm993_vm15, %v961_v27, %v1025_v38  ;;  %v968_v52 = vadd.f32 %v1687_v26, %v929_v35  ;;  %v969_v53 = vadd.f32 %v1687_v26, %v930_v36  ;;  %v970_v54 = vadd.f32 %v1687_v26, %v931_v37 }
 0x169   : > { %v1055_v25 = vsel %vm991_vm13, %v959_v12, %v1023_v20  ;;  %1089 = vst [vmem:[%s1654_s29 + $0x78] sm:$0xff] %v1057_v42  ;;  %1093 = vst [vmem:[%s1654_s29 + $0x98] sm:$0xff] %v1061_v51  ;;  %vm998_vm4 = vcmp.ge.f32.partialorder %v966_v47, 0.0  ;;  %v1030_v58 = vmul.f32 0.2, %v966_v47  ;;  %v971_v3 = vadd.f32 %v1687_v26, %v932_v49 }
 0x16a   : > { %1087 = vst [vmem:[%s1654_s29 + $0x68] sm:$0xff] %v1055_v25  ;;  %v1031_v59 = vmul.f32 0.2, %v967_v48  ;;  %vm1000_vm6 = vcmp.ge.f32.partialorder %v968_v52, 0.0  ;;  %v1032_v60 = vmul.f32 0.2, %v968_v52  ;;  %v972_v4 = vadd.f32 %v1687_v26, %v933_v50 }
 0x16b   : > { %vm1001_vm7 = vcmp.ge.f32.partialorder %v969_v53, 0.0  ;;  %v1033_v61 = vmul.f32 0.2, %v969_v53  ;;  %v1062_v62 = vsel %vm998_vm4, %v966_v47, %v1030_v58  ;;  %vm1002_vm8 = vcmp.ge.f32.partialorder %v970_v54, 0.0 }
 0x16c   : > { %v1063_v63 = vsel %vm999_vm5, %v967_v48, %v1031_v59  ;;  %v1034_v0 = vmul.f32 0.2, %v970_v54  ;;  %1094 = vst [vmem:[%s1654_s29 + $0xa0] sm:$0xff] %v1062_v62  ;;  %v1064_v1 = vsel %vm1000_vm6, %v968_v52, %v1032_v60  ;;  %v973_v6 = vadd.f32 %v1687_v26, %v934_v55 }
 0x16d   : > { %1095 = vst [vmem:[%s1654_s29 + $0xa8] sm:$0xff] %v1063_v63  ;;  %v1065_v2 = vsel %vm1001_vm7, %v969_v53, %v1033_v61  ;;  %1096 = vst [vmem:[%s1654_s29 + $0xb0] sm:$0xff] %v1064_v1  ;;  %v974_v7 = vadd.f32 %v1687_v26, %v935_v56  ;;  %v975_v8 = vadd.f32 %v1687_v26, %v936_v57  ;;  %vm1003_vm9 = vcmp.ge.f32.partialorder %v971_v3, 0.0 }
 0x16e   : > { %1097 = vst [vmem:[%s1654_s29 + $0xb8] sm:$0xff] %v1065_v2  ;;  %v1066_v5 = vsel %vm1002_vm8, %v970_v54, %v1034_v0  ;;  %v1035_v11 = vmul.f32 0.2, %v971_v3  ;;  %vm1004_vm10 = vcmp.ge.f32.partialorder %v972_v4, 0.0  ;;  %v1036_v12 = vmul.f32 0.2, %v972_v4 }
 0x16f   : > { %1098 = vst [vmem:[%s1654_s29 + $0xc0] sm:$0xff] %v1066_v5  ;;  %vm1005_vm11 = vcmp.ge.f32.partialorder %v973_v6, 0.0  ;;  %v1037_v13 = vmul.f32 0.2, %v973_v6  ;;  %vm1006_vm12 = vcmp.ge.f32.partialorder %v974_v7, 0.0  ;;  %vm1007_vm13 = vcmp.ge.f32.partialorder %v975_v8, 0.0 }
 0x170   : > { %v1038_v14 = vmul.f32 0.2, %v974_v7  ;;  %v1067_v15 = vsel %vm1003_vm9, %v971_v3, %v1035_v11  ;;  %v1068_v16 = vsel %vm1004_vm10, %v972_v4, %v1036_v12  ;;  %v1039_v17 = vmul.f32 0.2, %v975_v8 }
 0x171   : > { %1099 = vst [vmem:[%s1654_s29 + $0xc8] sm:$0xff] %v1067_v15  ;;  %1100 = vst [vmem:[%s1654_s29 + $0xd0] sm:$0xff] %v1068_v16  ;;  %v1069_v18 = vsel %vm1005_vm11, %v973_v6, %v1037_v13  ;;  %v976_v20 = vadd.f32 %v1687_v26, %v937_v9  ;;  %v977_v21 = vadd.f32 %v1687_v26, %v938_v10 }
 0x172   : > { %v1070_v19 = vsel %vm1006_vm12, %v974_v7, %v1038_v14  ;;  %1101 = vst [vmem:[%s1654_s29 + $0xd8] sm:$0xff] %v1069_v18  ;;  %v1071_v22 = vsel %vm1007_vm13, %v975_v8, %v1039_v17 }
 0x173   : > { %1102 = vst [vmem:[%s1654_s29 + $0xe0] sm:$0xff] %v1070_v19  ;;  %1103 = vst [vmem:[%s1654_s29 + $0xe8] sm:$0xff] %v1071_v22  ;;  %vm1008_vm14 = vcmp.ge.f32.partialorder %v976_v20, 0.0  ;;  %v1040_v23 = vmul.f32 0.2, %v976_v20  ;;  %vm1009_vm15 = vcmp.ge.f32.partialorder %v977_v21, 0.0 }
 0x174   : > { %v1041_v24 = vmul.f32 0.2, %v977_v21 }
 0x175   : > { %v1072_v25 = vsel %vm1008_vm14, %v976_v20, %v1040_v23 }
 0x176   : > { %v1073_v27 = vsel %vm1009_vm15, %v977_v21, %v1041_v24  ;;  %1104 = vst [vmem:[%s1654_s29 + $0xf0] sm:$0xff] %v1072_v25 }
 0x177   : > { %1105 = vst [vmem:[%s1654_s29 + $0xf8] sm:$0xff] %v1073_v27 }
 0x178 PF: > { %s13_s18 = sadd.s32 1, %s1490_s18   ;;  %s1778_s12 = smov %s1470_s13 }
 0x179   : > { %p10_p0 = scmp.ge.s32.totalorder %s13_s18, 12   ;;  %s1779_s13 = smov %s1564_s25 }
 0x17a   : > { %s1780_s14 = smov %s1482_s16  ;;  %s1781_s15 = smov %s1486_s17 }
 0x17b   : > { %s1782_s16 = smov %s1785_s19  ;;  %s1783_s17 = smov %s1789_s20 }
 0x17c   :  { %12 = sbr.rel (!%p10_p0) target bundleno = 4 (0x4), region = 122 }

// kernel: _lambda_.17
= control target key start
LH: loop header
LB: loop body
LE: loop exit
PB: predicated region body
PF: predicated region fallthrough
CT: control target
= control target key end

     0   :  { %s1993_s12 = smov 0   ;;  %s1995_s13 = smov 0   ;;  %s2262_s0 = inlined_call_operand.vmem [shape: bf16[512,384], index: 0, kind: input, shape index: {}]   ;;  %s2263_s1 = inlined_call_operand.vmem [shape: bf16[384,128], index: 1, kind: input, shape index: {}]   ;;  %s2264_s2 = inlined_call_operand.vmem [shape: f32[1,128], index: 2, kind: input, shape index: {}]   ;;  %s2265_s3 = inlined_call_operand.vmem [shape: f32[512,128], index: 3, kind: output, shape index: {}]  }
   0x1   :  { %s1997_s14 = smov 0  }
   0x2 LB: > { %s32_s15 = sadd.s32 1, %s1967_s13  ;;  %p1556_p0 = scmp.ge.s32.totalorder %s1971_s14, 1  ;;  %s1971_s14 = sphi %s1997_s14, %s13_s14   ;;  %s1967_s13 = sphi %s1995_s13, %s2267_s13   ;;  %s1963_s12 = sphi %s1993_s12, %s2266_s12  }
   0x3   : > { %p34_p1 = scmp.ge.s32.totalorder %s32_s15, 2  ;;  %p191_p2 = scmp.lt.s32.totalorder %s1971_s14, 3 }
   0x5   : > { %s2269_s15 = smov (%p34_p1, %s32_s15), 0  ;;  %p192_p3 = pnand %p1556_p0, %p191_p2 }
   0x6   : > { %v1861_v0 = vld [vmem:[%s2263_s1 + $0x40] sm:$0xff] (!%p192_p3)   ;;  %s1557_s18 = sshll.u32 (!%p192_p3), %s1963_s12, 5  ;;  %v1863_v2 = vld [vmem:[%s2263_s1 + $0x48] sm:$0xff] (!%p192_p3)   ;;  %v1865_v4 = vld [vmem:[%s2263_s1 + $0x50] sm:$0xff] (!%p192_p3)  }
   0x7   : > { %195 = sbr.rel (%p192_p3) target bundleno = 354 (0x162), region = 32  ;;  %v1862_v1 = vld [vmem:[%s2263_s1] sm:$0xff] (!%p192_p3)   ;;  %1636 = vmatprep.subr.bf16.mxu0 (!%p192_p3), %v1861_v0  ;;  %1820 = vmatprep.subr.bf16.mxu1 (!%p192_p3), %v1861_v0  ;;  %p236_p4 = scmp.lt.s32.totalorder (!%p192_p3), %s1557_s18, 63  ;;  %v1864_v3 = vld [vmem:[%s2263_s1 + $0x8] sm:$0xff] (!%p192_p3)   ;;  %v1866_v5 = vld [vmem:[%s2263_s1 + $0x10] sm:$0xff] (!%p192_p3)  }
   0x8   : > { %1637 = vmatpush3.bf16.msra.mxu0 (!%p192_p3), %v1862_v1  ;;  %1828 = vmatpush3.bf16.msra.mxu1 (!%p192_p3), %v1862_v1  ;;  %v1867_v6 = vld [vmem:[%s2263_s1 + $0x58] sm:$0xff] (!%p192_p3)   ;;  %v1869_v8 = vld [vmem:[%s2263_s1 + $0x60] sm:$0xff] (!%p192_p3)   ;;  %v1871_v10 = vld [vmem:[%s2263_s1 + $0x68] sm:$0xff] (!%p192_p3)  }
   0x9   : > { %1638 = vmatprep.subr.bf16.mxu0 (!%p192_p3), %v1863_v2  ;;  %1821 = vmatprep.subr.bf16.mxu1 (!%p192_p3), %v1863_v2  ;;  %v1868_v7 = vld [vmem:[%s2263_s1 + $0x18] sm:$0xff] (!%p192_p3)   ;;  %v1870_v9 = vld [vmem:[%s2263_s1 + $0x20] sm:$0xff] (!%p192_p3)   ;;  %v1872_v13 = vld [vmem:[%s2263_s1 + $0x28] sm:$0xff] (!%p192_p3)  }
   0xa   : > { %v1873_v14 = vld [vmem:[%s2263_s1 + $0x70] sm:$0xff] (!%p192_p3)   ;;  %v1875_v16 = vld [vmem:[%s2263_s1 + $0x78] sm:$0xff] (!%p192_p3)   ;;  %v1883_v18 = vld [vmem:[%s2263_s1 + $0x80] sm:$0xff] (!%p192_p3)  }
   0xb   : > { %v1874_v15 = vld [vmem:[%s2263_s1 + $0x30] sm:$0xff] (!%p192_p3)   ;;  %v1876_v17 = vld [vmem:[%s2263_s1 + $0x38] sm:$0xff] (!%p192_p3)   ;;  %v1884_v22 = vld [vmem:[%s2263_s1 + $0x88] sm:$0xff] (!%p192_p3)  }
   0xc   : > { %1639 = vmatpush3.bf16.msra.mxu0 (!%p192_p3), %v1864_v3  ;;  %1829 = vmatpush3.bf16.msra.mxu1 (!%p192_p3), %v1864_v3  ;;  %v1891_v25 = vld [vmem:[%s2263_s1 + $0x90] sm:$0xff] (!%p192_p3)   ;;  %v1892_v27 = vld [vmem:[%s2263_s1 + $0x98] sm:$0xff] (!%p192_p3)   ;;  %v1899_v30 = vld [vmem:[%s2263_s1 + $0xa0] sm:$0xff] (!%p192_p3)  }
   0xd   : > { %1640 = vmatprep.subr.bf16.mxu0 (!%p192_p3), %v1865_v4  ;;  %1822 = vmatprep.subr.bf16.mxu1 (!%p192_p3), %v1865_v4  ;;  %v1900_v33 = vld [vmem:[%s2263_s1 + $0xa8] sm:$0xff] (!%p192_p3)   ;;  %v1907_v36 = vld [vmem:[%s2263_s1 + $0xb0] sm:$0xff] (!%p192_p3)   ;;  %v1908_v40 = vld [vmem:[%s2263_s1 + $0xb8] sm:$0xff] (!%p192_p3)  }
   0xe   : > { %s2271_s18 = smov (!%p236_p4, %s1557_s18), 63 }
   0xf   : > { %s1836_s4 = smul.u32 12, %s2271_s18  ;;  %s1560_s25 = sshll.u32 %s2271_s18, 3 }
  0x10   : > { %1641 = vmatpush3.bf16.msra.mxu0 %v1866_v5  ;;  %1830 = vmatpush3.bf16.msra.mxu1 %v1866_v5  ;;  %s2172_s28 = scalar_lea.vmem %s2265_s3, %s1560_s25 }
  0x11   : > { %1642 = vmatprep.subr.bf16.mxu0 %v1867_v6  ;;  %1823 = vmatprep.subr.bf16.mxu1 %v1867_v6  ;;  %s2044_s11 = scalar_lea.vmem %s2262_s0, %s1836_s4 }
  0x12   : > { %v1879_v11 = vld [vmem:[%s2044_s11 + $0x4] ss:$12 sps:$4 sm:$0xff]   ;;  %v1877_v19 = vld [vmem:[%s2044_s11] ss:$12 sps:$4 sm:$0xff]   ;;  %v1885_v21 = vld [vmem:[%s2044_s11 + $0x1c] ss:$12 sps:$4 sm:$0xff]  }
  0x13   : > { %v1882_v12 = vld [vmem:[%s2044_s11 + $0x124] ss:$12 sps:$4 sm:$0xff]   ;;  %880 = vmatprep.mubr.bf16.mxu0 %v1879_v11  ;;  %v1880_v20 = vld [vmem:[%s2044_s11 + $0x120] ss:$12 sps:$4 sm:$0xff]   ;;  %v1887_v23 = vld [vmem:[%s2044_s11 + $0x13c] ss:$12 sps:$4 sm:$0xff]  }
  0x14   : > { %1643 = vmatpush3.bf16.msra.mxu0 %v1868_v7  ;;  %1831 = vmatpush3.bf16.msra.mxu1 %v1868_v7  ;;  %v1889_v24 = vld [vmem:[%s2044_s11 + $0x18] ss:$12 sps:$4 sm:$0xff]   ;;  %v1893_v28 = vld [vmem:[%s2044_s11 + $0x34] ss:$12 sps:$4 sm:$0xff]   ;;  %v1897_v31 = vld [vmem:[%s2044_s11 + $0x30] ss:$12 sps:$4 sm:$0xff]  }
  0x15   : > { %1644 = vmatprep.subr.bf16.mxu0 %v1869_v8  ;;  %1824 = vmatprep.subr.bf16.mxu1 %v1869_v8  ;;  %v1890_v26 = vld [vmem:[%s2044_s11 + $0x138] ss:$12 sps:$4 sm:$0xff]   ;;  %v1895_v29 = vld [vmem:[%s2044_s11 + $0x154] ss:$12 sps:$4 sm:$0xff]   ;;  %v1898_v32 = vld [vmem:[%s2044_s11 + $0x150] ss:$12 sps:$4 sm:$0xff]  }
  0x16   : > { %976 = vmatprep.mubr.bf16.mxu1 %v1882_v12  ;;  %v1901_v34 = vld [vmem:[%s2044_s11 + $0x4c] ss:$12 sps:$4 sm:$0xff]   ;;  %v1905_v37 = vld [vmem:[%s2044_s11 + $0x48] ss:$12 sps:$4 sm:$0xff]   ;;  %v1909_v39 = vld [vmem:[%s2044_s11 + $0x64] ss:$12 sps:$4 sm:$0xff]  }
  0x17   : > { %v1903_v35 = vld [vmem:[%s2044_s11 + $0x16c] ss:$12 sps:$4 sm:$0xff]   ;;  %v1906_v38 = vld [vmem:[%s2044_s11 + $0x168] ss:$12 sps:$4 sm:$0xff]   ;;  %v1918_v47 = vld [vmem:[%s2044_s11 + $0x50] ss:$12 sps:$4 sm:$0xff]  }
  0x18   : > { %1645 = vmatpush3.bf16.msra.mxu0 %v1870_v9  ;;  %1832 = vmatpush3.bf16.msra.mxu1 %v1870_v9  ;;  %v1911_v41 = vld [vmem:[%s2044_s11 + $0x8] ss:$12 sps:$4 sm:$0xff]   ;;  %v1912_v42 = vld [vmem:[%s2044_s11 + $0x60] ss:$12 sps:$4 sm:$0xff]   ;;  %v1916_v45 = vld [vmem:[%s2044_s11 + $0x38] ss:$12 sps:$4 sm:$0xff]  }
  0x19   : > { %1646 = vmatprep.subr.bf16.mxu0 %v1871_v10  ;;  %1825 = vmatprep.subr.bf16.mxu1 %v1871_v10  ;;  %v1913_v43 = vld [vmem:[%s2044_s11 + $0x20] ss:$12 sps:$4 sm:$0xff]   ;;  %v1914_v44 = vld [vmem:[%s2044_s11 + $0x7c] ss:$12 sps:$4 sm:$0xff]   ;;  %v1917_v46 = vld [vmem:[%s2044_s11 + $0x78] ss:$12 sps:$4 sm:$0xff]  }
  0x1a   : > { %v1919_v48 = vld [vmem:[%s2044_s11 + $0x94] ss:$12 sps:$4 sm:$0xff]   ;;  %v1922_v50 = vld [vmem:[%s2044_s11 + $0x90] ss:$12 sps:$4 sm:$0xff]   ;;  %v1924_v52 = vld [vmem:[%s2044_s11 + $0xac] ss:$12 sps:$4 sm:$0xff]  }
  0x1b   : > { %v1921_v49 = vld [vmem:[%s2044_s11 + $0x68] ss:$12 sps:$4 sm:$0xff]   ;;  %v1923_v51 = vld [vmem:[%s2044_s11 + $0x80] ss:$12 sps:$4 sm:$0xff]   ;;  %v1926_v53 = vld [vmem:[%s2044_s11 + $0x98] ss:$12 sps:$4 sm:$0xff]  }
  0x1c   : > { %1647 = vmatpush3.bf16.msra.mxu0 %v1872_v13  ;;  %1833 = vmatpush3.bf16.msra.mxu1 %v1872_v13  ;;  %v1927_v54 = vld [vmem:[%s2044_s11 + $0xa8] ss:$12 sps:$4 sm:$0xff]   ;;  %v1928_v55 = vld [vmem:[%s2044_s11 + $0xb0] ss:$12 sps:$4 sm:$0xff]   ;;  %v1932_v58 = vld [vmem:[%s2044_s11 + $0xc0] ss:$12 sps:$4 sm:$0xff]  }
  0x1d   : > { %1648 = vmatprep.subr.bf16.mxu0 %v1873_v14  ;;  %1826 = vmatprep.subr.bf16.mxu1 %v1873_v14  ;;  %v1929_v56 = vld [vmem:[%s2044_s11 + $0xc4] ss:$12 sps:$4 sm:$0xff]   ;;  %v1931_v57 = vld [vmem:[%s2044_s11 + $0xc8] ss:$12 sps:$4 sm:$0xff]   ;;  %v1933_v59 = vld [vmem:[%s2044_s11 + $0xe0] ss:$12 sps:$4 sm:$0xff]  }
  0x1e   : > { %v1934_v60 = vld [vmem:[%s2044_s11 + $0xdc] ss:$12 sps:$4 sm:$0xff]   ;;  %v1936_v61 = vld [vmem:[%s2044_s11 + $0xf8] ss:$12 sps:$4 sm:$0xff]   ;;  %v1939_v0 = vld [vmem:[%s2044_s11 + $0xf4] ss:$12 sps:$4 sm:$0xff]  }
  0x1f   : > { %v1937_v62 = vld [vmem:[%s2044_s11 + $0xd8] ss:$12 sps:$4 sm:$0xff]   ;;  %v1938_v63 = vld [vmem:[%s2044_s11 + $0x110] ss:$12 sps:$4 sm:$0xff]   ;;  %v1941_v1 = vld [vmem:[%s2044_s11 + $0x128] ss:$12 sps:$4 sm:$0xff]  }
  0x20   : > { %1649 = vmatpush3.bf16.msra.mxu0 %v1874_v15  ;;  %1834 = vmatpush3.bf16.msra.mxu1 %v1874_v15  ;;  %v1942_v2 = vld [vmem:[%s2044_s11 + $0xf0] ss:$12 sps:$4 sm:$0xff]   ;;  %v1943_v3 = vld [vmem:[%s2044_s11 + $0x140] ss:$12 sps:$4 sm:$0xff]   ;;  %v1946_v5 = vld [vmem:[%s2044_s11 + $0x158] ss:$12 sps:$4 sm:$0xff]  }
  0x21   : > { %1650 = vmatprep.subr.bf16.mxu0 %v1875_v16  ;;  %1827 = vmatprep.subr.bf16.mxu1 %v1875_v16  ;;  %v1944_v4 = vld [vmem:[%s2044_s11 + $0x10c] ss:$12 sps:$4 sm:$0xff]   ;;  %v1947_v6 = vld [vmem:[%s2044_s11 + $0x108] ss:$12 sps:$4 sm:$0xff]   ;;  %v1948_v7 = vld [vmem:[%s2044_s11 + $0x170] ss:$12 sps:$4 sm:$0xff]  }
  0x24   : > { %1651 = vmatpush3.bf16.msra.mxu0 %v1876_v17  ;;  %1835 = vmatpush3.bf16.msra.mxu1 %v1876_v17 }
  0x25   : > { %1772 = vmatprep.subr.bf16.mxu1 %v1883_v18 }
  0x27   : > { %881 = vmatmul.mubr.bf16.vlgmr.msra.gmra.mrb[0].mxu0 %v1877_v19  ;;  %977 = vmatmul.mubr.bf16.vlgmr.msra.gmra.mrb[0].mxu1 %v1880_v20 }
  0x28   : > { %1773 = vmatpush3.bf16.msra.mxu1 %v1883_v18  ;;  %888 = vmatprep.mubr.bf16.mxu0 %v1885_v21 }
  0x29   : > { %1774 = vmatprep.subr.bf16.mxu1 %v1884_v22  ;;  %984 = vmatprep.mubr.bf16.mxu1 %v1887_v23 }
  0x2c   : > { %1775 = vmatpush3.bf16.msra.mxu1 %v1884_v22 }
  0x2d   : > { %1776 = vmatprep.subr.bf16.mxu1 %v1891_v25 }
  0x2f   : > { %889 = vmatmul.mubr.bf16.gmra.mrb[4].mxu0 %v1889_v24  ;;  %985 = vmatmul.mubr.bf16.gmra.mrb[4].mxu1 %v1890_v26 }
  0x30   : > { %1777 = vmatpush3.bf16.msra.mxu1 %v1891_v25  ;;  %896 = vmatprep.mubr.bf16.mxu0 %v1893_v28 }
  0x31   : > { %1778 = vmatprep.subr.bf16.mxu1 %v1892_v27  ;;  %992 = vmatprep.mubr.bf16.mxu1 %v1895_v29 }
  0x34   : > { %1779 = vmatpush3.bf16.msra.mxu1 %v1892_v27 }
  0x35   : > { %1780 = vmatprep.subr.bf16.mxu1 %v1899_v30 }
  0x37   : > { %897 = vmatmul.mubr.bf16.gmra.mrb[8].mxu0 %v1897_v31  ;;  %993 = vmatmul.mubr.bf16.gmra.mrb[8].mxu1 %v1898_v32 }
  0x38   : > { %1781 = vmatpush3.bf16.msra.mxu1 %v1899_v30  ;;  %904 = vmatprep.mubr.bf16.mxu0 %v1901_v34 }
  0x39   : > { %1782 = vmatprep.subr.bf16.mxu1 %v1900_v33  ;;  %1000 = vmatprep.mubr.bf16.mxu1 %v1903_v35 }
  0x3c   : > { %1783 = vmatpush3.bf16.msra.mxu1 %v1900_v33 }
  0x3d   : > { %1784 = vmatprep.subr.bf16.mxu1 %v1907_v36 }
  0x3f   : > { %905 = vmatmul.mubr.bf16.gmra.mrb[12].mxu0 %v1905_v37  ;;  %1001 = vmatmul.mubr.bf16.gmra.mrb[12].mxu1 %v1906_v38 }
  0x40   : > { %1785 = vmatpush3.bf16.msra.mxu1 %v1907_v36  ;;  %912 = vmatprep.mubr.bf16.mxu0 %v1909_v39 }
  0x41   : > { %1786 = vmatprep.subr.bf16.mxu1 %v1908_v40  ;;  %1788 = vmatprep.mubr.bf16.mxu1 %v1911_v41 }
  0x44   : > { %1787 = vmatpush3.bf16.msra.mxu1 %v1908_v40 }
  0x47   : > { %913 = vmatmul.mubr.bf16.gmra.mrb[16].mxu0 %v1912_v42  ;;  %1789 = vmatmul.mubr.bf16.vlgmr.msra.gmra.mrb[16].mxu1 %v1913_v43 }
  0x48   : > { %920 = vmatprep.mubr.bf16.mxu0 %v1914_v44  ;;  %1792 = vmatprep.mubr.bf16.mxu1 %v1916_v45 }
  0x4f   : > { %921 = vmatmul.mubr.bf16.gmra.mrb[20].mxu0 %v1917_v46  ;;  %1793 = vmatmul.mubr.bf16.gmra.mrb[20].mxu1 %v1918_v47 }
  0x50   : > { %928 = vmatprep.mubr.bf16.mxu0 %v1919_v48  ;;  %1796 = vmatprep.mubr.bf16.mxu1 %v1921_v49 }
  0x57   : > { %929 = vmatmul.mubr.bf16.gmra.mrb[24].mxu0 %v1922_v50  ;;  %1797 = vmatmul.mubr.bf16.gmra.mrb[24].mxu1 %v1923_v51 }
  0x58   : > { %936 = vmatprep.mubr.bf16.mxu0 %v1924_v52  ;;  %1800 = vmatprep.mubr.bf16.mxu1 %v1926_v53 }
  0x5f   : > { %937 = vmatmul.mubr.bf16.gmra.mrb[28].mxu0 %v1927_v54  ;;  %1801 = vmatmul.mubr.bf16.gmra.mrb[28].mxu1 %v1928_v55 }
  0x60   : > { %944 = vmatprep.mubr.bf16.mxu0 %v1929_v56  ;;  %1804 = vmatprep.mubr.bf16.mxu1 %v1931_v57 }
  0x67   : > { %945 = vmatmul.mubr.bf16.gmra.mrb[32].mxu0 %v1932_v58  ;;  %1805 = vmatmul.mubr.bf16.gmra.mrb[32].mxu1 %v1933_v59  ;;  %v2160_v58 = vld [vmem:[%s2264_s2] ss:$0 sm:$0xff] }
  0x68   : > { %952 = vmatprep.mubr.bf16.mxu0 %v1934_v60  ;;  %1808 = vmatprep.mubr.bf16.mxu1 %v1936_v61 }
  0x6f   : > { %953 = vmatmul.mubr.bf16.gmra.mrb[36].mxu0 %v1937_v62  ;;  %1809 = vmatmul.mubr.bf16.gmra.mrb[36].mxu1 %v1938_v63 }
  0x70   : > { %960 = vmatprep.mubr.bf16.mxu0 %v1939_v0  ;;  %1812 = vmatprep.mubr.bf16.mxu1 %v1941_v1 }
  0x77   : > { %961 = vmatmul.mubr.bf16.gmra.mrb[40].mxu0 %v1942_v2  ;;  %1813 = vmatmul.mubr.bf16.gmra.mrb[40].mxu1 %v1943_v3 }
  0x78   : > { %968 = vmatprep.mubr.bf16.mxu0 %v1944_v4  ;;  %1816 = vmatprep.mubr.bf16.mxu1 %v1946_v5 }
  0x7f   : > { %969 = vmatmul.mubr.bf16.gmra.mrb[44].mxu0 %v1947_v6  ;;  %1817 = vmatmul.mubr.bf16.gmra.mrb[44].mxu1 %v1948_v7 }
  0xfa   : > { %v1652_v8 = vpop.f32.mrb[0].mxu0  ;;  %v1724_v9 = vpop.f32.mrb[0].mxu1 }
  0xfb   : > { %v1653_v10 = vpop.f32.mrb[1].mxu0  ;;  %v1725_v11 = vpop.f32.mrb[1].mxu1 }
  0xfc   : > { %v1654_v12 = vadd.f32 %v1653_v10, %v1652_v8  ;;  %v2139_v13 = vadd.f32 %v1725_v11, %v1724_v9  ;;  %v1655_v14 = vpop.f32.mrb[2].mxu0  ;;  %v1727_v15 = vpop.f32.mrb[2].mxu1 }
  0xfd   : > { %v1656_v16 = vpop.f32.mrb[3].mxu0  ;;  %v1728_v17 = vpop.f32.mrb[3].mxu1 }
  0xfe   : > { %v1657_v18 = vadd.f32 %v1656_v16, %v1655_v14  ;;  %v2141_v19 = vadd.f32 %v1728_v17, %v1727_v15 }
 0x102   : > { %v1658_v20 = vpop.f32.mrb[4].mxu0  ;;  %v1730_v21 = vpop.f32.mrb[4].mxu1 }
 0x103   : > { %v1659_v22 = vpop.f32.mrb[5].mxu0  ;;  %v1731_v23 = vpop.f32.mrb[5].mxu1 }
 0x104   : > { %v1660_v24 = vadd.f32 %v1659_v22, %v1658_v20  ;;  %v2143_v25 = vadd.f32 %v1731_v23, %v1730_v21  ;;  %v1661_v26 = vpop.f32.mrb[6].mxu0  ;;  %v1733_v27 = vpop.f32.mrb[6].mxu1 }
 0x105   : > { %v1662_v28 = vpop.f32.mrb[7].mxu0  ;;  %v1734_v29 = vpop.f32.mrb[7].mxu1 }
 0x106   : > { %v1663_v30 = vadd.f32 %v1662_v28, %v1661_v26  ;;  %v2145_v31 = vadd.f32 %v1734_v29, %v1733_v27 }
 0x10a   : > { %v1664_v32 = vpop.f32.mrb[8].mxu0  ;;  %v1736_v33 = vpop.f32.mrb[8].mxu1 }
 0x10b   : > { %v1665_v34 = vpop.f32.mrb[9].mxu0  ;;  %v1737_v35 = vpop.f32.mrb[9].mxu1 }
 0x10c   : > { %v1666_v36 = vadd.f32 %v1665_v34, %v1664_v32  ;;  %v2147_v37 = vadd.f32 %v1737_v35, %v1736_v33  ;;  %v1667_v38 = vpop.f32.mrb[10].mxu0  ;;  %v1739_v39 = vpop.f32.mrb[10].mxu1 }
 0x10d   : > { %v1668_v40 = vpop.f32.mrb[11].mxu0  ;;  %v1740_v41 = vpop.f32.mrb[11].mxu1 }
 0x10e   : > { %v2149_v42 = vadd.f32 %v1668_v40, %v1667_v38  ;;  %v2151_v43 = vadd.f32 %v1740_v41, %v1739_v39 }
 0x112   : > { %v1670_v44 = vpop.f32.mrb[12].mxu0  ;;  %v1742_v45 = vpop.f32.mrb[12].mxu1 }
 0x113   : > { %v1671_v46 = vpop.f32.mrb[13].mxu0  ;;  %v1743_v47 = vpop.f32.mrb[13].mxu1 }
 0x114   : > { %v1672_v48 = vadd.f32 %v1671_v46, %v1670_v44  ;;  %v2153_v49 = vadd.f32 %v1743_v47, %v1742_v45  ;;  %v1673_v50 = vpop.f32.mrb[14].mxu0  ;;  %v1745_v51 = vpop.f32.mrb[14].mxu1 }
 0x115   : > { %v1674_v52 = vpop.f32.mrb[15].mxu0  ;;  %v1746_v53 = vpop.f32.mrb[15].mxu1 }
 0x116   : > { %v1675_v54 = vadd.f32 %v1674_v52, %v1673_v50  ;;  %v2155_v55 = vadd.f32 %v1746_v53, %v1745_v51 }
 0x11a   : > { %v1676_v56 = vpop.f32.mrb[16].mxu0  ;;  %v1790_v57 = vpop.f32.mrb[16].mxu1 }
 0x11b   : > { %v1052_v59 = vadd.f32 %v1790_v57, %v1660_v24  ;;  %v1677_v60 = vpop.f32.mrb[17].mxu0  ;;  %v1043_v61 = vpop.f32.mrb[17].mxu1 }
 0x11c   : > { %v2163_v62 = vadd.f32 %v1677_v60, %v1676_v56  ;;  %v1044_v63 = vadd.f32 %v1654_v12, %v1043_v61  ;;  %v1679_v0 = vpop.f32.mrb[18].mxu0  ;;  %v1791_v1 = vpop.f32.mrb[18].mxu1 }
 0x11d   : > { %v1278_v2 = vadd.f32 %v2160_v58, %v1052_v59  ;;  %v1055_v3 = vadd.f32 %v1791_v1, %v1663_v30  ;;  %v1680_v4 = vpop.f32.mrb[19].mxu0  ;;  %v1046_v5 = vpop.f32.mrb[19].mxu1 }
 0x11e   : > { %v1276_v6 = vadd.f32 %v2160_v58, %v1044_v63  ;;  %v2167_v7 = vadd.f32 %v1680_v4, %v1679_v0  ;;  %v1047_v8 = vadd.f32 %v1657_v18, %v1046_v5 }
 0x11f   : > { %vm1310_vm0 = vcmp.ge.f32.partialorder %v1278_v2, 0.0  ;;  %v1342_v9 = vmul.f32 0.2, %v1278_v2  ;;  %v1279_v10 = vadd.f32 %v2160_v58, %v1055_v3 }
 0x120   : > { %vm1308_vm1 = vcmp.ge.f32.partialorder %v1276_v6, 0.0  ;;  %v1340_v11 = vmul.f32 0.2, %v1276_v6  ;;  %v1277_v12 = vadd.f32 %v2160_v58, %v1047_v8 }
 0x121   : > { %v1374_v14 = vsel %vm1310_vm0, %v1278_v2, %v1342_v9  ;;  %vm1311_vm2 = vcmp.ge.f32.partialorder %v1279_v10, 0.0  ;;  %v1343_v15 = vmul.f32 0.2, %v1279_v10 }
 0x122   : > { %1406 = vst [vmem:[%s2172_s28 + $0x10] sm:$0xff] %v1374_v14  ;;  %v1372_v16 = vsel %vm1308_vm1, %v1276_v6, %v1340_v11  ;;  %vm1309_vm3 = vcmp.ge.f32.partialorder %v1277_v12, 0.0  ;;  %v1341_v17 = vmul.f32 0.2, %v1277_v12  ;;  %v1682_v18 = vpop.f32.mrb[20].mxu0  ;;  %v1794_v20 = vpop.f32.mrb[20].mxu1 }
 0x123   : > { %1404 = vst [vmem:[%s2172_s28] sm:$0xff] %v1372_v16  ;;  %v1375_v21 = vsel %vm1311_vm2, %v1279_v10, %v1343_v15  ;;  %v1068_v22 = vadd.f32 %v1794_v20, %v1672_v48  ;;  %v1683_v23 = vpop.f32.mrb[21].mxu0  ;;  %v1059_v24 = vpop.f32.mrb[21].mxu1 }
 0x124   : > { %1407 = vst [vmem:[%s2172_s28 + $0x18] sm:$0xff] %v1375_v21  ;;  %v1373_v26 = vsel %vm1309_vm3, %v1277_v12, %v1341_v17  ;;  %v1684_v27 = vadd.f32 %v1683_v23, %v1682_v18  ;;  %v1060_v28 = vadd.f32 %v1666_v36, %v1059_v24  ;;  %v1685_v29 = vpop.f32.mrb[22].mxu0  ;;  %v1795_v30 = vpop.f32.mrb[22].mxu1 }
 0x125   : > { %1405 = vst [vmem:[%s2172_s28 + $0x8] sm:$0xff] %v1373_v26  ;;  %v1282_v32 = vadd.f32 %v2160_v58, %v1068_v22  ;;  %v1071_v33 = vadd.f32 %v1795_v30, %v1675_v54  ;;  %v1686_v34 = vpop.f32.mrb[23].mxu0  ;;  %v1062_v35 = vpop.f32.mrb[23].mxu1 }
 0x126   : > { %v1280_v38 = vadd.f32 %v2160_v58, %v1060_v28  ;;  %v1687_v39 = vadd.f32 %v1686_v34, %v1685_v29  ;;  %v1063_v40 = vadd.f32 %v2149_v42, %v1062_v35 }
 0x127   : > { %vm1314_vm4 = vcmp.ge.f32.partialorder %v1282_v32, 0.0  ;;  %v1346_v41 = vmul.f32 0.2, %v1282_v32  ;;  %v1283_v44 = vadd.f32 %v2160_v58, %v1071_v33 }
 0x128   : > { %vm1312_vm5 = vcmp.ge.f32.partialorder %v1280_v38, 0.0  ;;  %v1344_v36 = vmul.f32 0.2, %v1280_v38  ;;  %v1281_v45 = vadd.f32 %v2160_v58, %v1063_v40 }
 0x129   : > { %v1378_v46 = vsel %vm1314_vm4, %v1282_v32, %v1346_v41  ;;  %vm1315_vm6 = vcmp.ge.f32.partialorder %v1283_v44, 0.0  ;;  %v1347_v47 = vmul.f32 0.2, %v1283_v44 }
 0x12a   : > { %1410 = vst [vmem:[%s2172_s28 + $0x30] sm:$0xff] %v1378_v46  ;;  %v1376_v48 = vsel %vm1312_vm5, %v1280_v38, %v1344_v36  ;;  %vm1313_vm7 = vcmp.ge.f32.partialorder %v1281_v45, 0.0  ;;  %v1345_v50 = vmul.f32 0.2, %v1281_v45  ;;  %v1688_v51 = vpop.f32.mrb[24].mxu0  ;;  %v1798_v42 = vpop.f32.mrb[24].mxu1 }
 0x12b   : > { %1408 = vst [vmem:[%s2172_s28 + $0x20] sm:$0xff] %v1376_v48  ;;  %v1379_v52 = vsel %vm1315_vm6, %v1283_v44, %v1347_v47  ;;  %v1084_v53 = vadd.f32 %v1798_v42, %v1684_v27  ;;  %v1689_v54 = vpop.f32.mrb[25].mxu0  ;;  %v1075_v56 = vpop.f32.mrb[25].mxu1 }
 0x12c   : > { %1411 = vst [vmem:[%s2172_s28 + $0x38] sm:$0xff] %v1379_v52  ;;  %v1377_v57 = vsel %vm1313_vm7, %v1281_v45, %v1345_v50  ;;  %v1690_v59 = vadd.f32 %v1689_v54, %v1688_v51  ;;  %v1076_v60 = vadd.f32 %v2163_v62, %v1075_v56  ;;  %v1691_v61 = vpop.f32.mrb[26].mxu0  ;;  %v1799_v63 = vpop.f32.mrb[26].mxu1 }
 0x12d   : > { %1409 = vst [vmem:[%s2172_s28 + $0x28] sm:$0xff] %v1377_v57  ;;  %v1286_v0 = vadd.f32 %v2160_v58, %v1084_v53  ;;  %v1087_v1 = vadd.f32 %v1799_v63, %v1687_v39  ;;  %v1692_v2 = vpop.f32.mrb[27].mxu0  ;;  %v1078_v3 = vpop.f32.mrb[27].mxu1 }
 0x12e   : > { %v1284_v4 = vadd.f32 %v2160_v58, %v1076_v60  ;;  %v1693_v5 = vadd.f32 %v1692_v2, %v1691_v61  ;;  %v1079_v6 = vadd.f32 %v2167_v7, %v1078_v3 }
 0x12f   : > { %vm1318_vm8 = vcmp.ge.f32.partialorder %v1286_v0, 0.0  ;;  %v1350_v8 = vmul.f32 0.2, %v1286_v0  ;;  %v1287_v9 = vadd.f32 %v2160_v58, %v1087_v1 }
 0x130   : > { %vm1316_vm9 = vcmp.ge.f32.partialorder %v1284_v4, 0.0  ;;  %v1348_v62 = vmul.f32 0.2, %v1284_v4  ;;  %v1285_v10 = vadd.f32 %v2160_v58, %v1079_v6 }
 0x131   : > { %v1382_v11 = vsel %vm1318_vm8, %v1286_v0, %v1350_v8  ;;  %vm1319_vm10 = vcmp.ge.f32.partialorder %v1287_v9, 0.0  ;;  %v1351_v12 = vmul.f32 0.2, %v1287_v9 }
 0x132   : > { %1414 = vst [vmem:[%s2172_s28 + $0x50] sm:$0xff] %v1382_v11  ;;  %v1380_v14 = vsel %vm1316_vm9, %v1284_v4, %v1348_v62  ;;  %vm1317_vm11 = vcmp.ge.f32.partialorder %v1285_v10, 0.0  ;;  %v1349_v15 = vmul.f32 0.2, %v1285_v10  ;;  %v1694_v16 = vpop.f32.mrb[28].mxu0  ;;  %v1802_v7 = vpop.f32.mrb[28].mxu1 }
 0x133   : > { %1412 = vst [vmem:[%s2172_s28 + $0x40] sm:$0xff] %v1380_v14  ;;  %v1383_v17 = vsel %vm1319_vm10, %v1287_v9, %v1351_v12  ;;  %v1695_v18 = vpop.f32.mrb[29].mxu0  ;;  %v1091_v20 = vpop.f32.mrb[29].mxu1 }
 0x134   : > { %1415 = vst [vmem:[%s2172_s28 + $0x58] sm:$0xff] %v1383_v17  ;;  %v1381_v21 = vsel %vm1317_vm11, %v1285_v10, %v1349_v15  ;;  %v1696_v22 = vadd.f32 %v1695_v18, %v1694_v16  ;;  %v1092_v23 = vadd.f32 %v1690_v59, %v1091_v20  ;;  %v1697_v24 = vpop.f32.mrb[30].mxu0  ;;  %v1803_v26 = vpop.f32.mrb[30].mxu1 }
 0x135   : > { %1413 = vst [vmem:[%s2172_s28 + $0x48] sm:$0xff] %v1381_v21  ;;  %v1698_v27 = vpop.f32.mrb[31].mxu0  ;;  %v1094_v28 = vpop.f32.mrb[31].mxu1 }
 0x136   : > { %v1100_v29 = vadd.f32 %v1802_v7, %v1696_v22  ;;  %v1288_v30 = vadd.f32 %v2160_v58, %v1092_v23  ;;  %v1699_v32 = vadd.f32 %v1698_v27, %v1697_v24  ;;  %v1095_v33 = vadd.f32 %v1693_v5, %v1094_v28 }
 0x138   : > { %v1290_v34 = vadd.f32 %v2160_v58, %v1100_v29  ;;  %vm1320_vm12 = vcmp.ge.f32.partialorder %v1288_v30, 0.0  ;;  %v1352_v35 = vmul.f32 0.2, %v1288_v30  ;;  %v1103_v38 = vadd.f32 %v1803_v26, %v1699_v32 }
 0x139   : > { %v1289_v39 = vadd.f32 %v2160_v58, %v1095_v33 }
 0x13a   : > { %vm1322_vm13 = vcmp.ge.f32.partialorder %v1290_v34, 0.0  ;;  %v1354_v40 = vmul.f32 0.2, %v1290_v34  ;;  %v1384_v41 = vsel %vm1320_vm12, %v1288_v30, %v1352_v35  ;;  %v1291_v44 = vadd.f32 %v2160_v58, %v1103_v38  ;;  %v1700_v36 = vpop.f32.mrb[32].mxu0  ;;  %v1806_v45 = vpop.f32.mrb[32].mxu1 }
 0x13b   : > { %1416 = vst [vmem:[%s2172_s28 + $0x60] sm:$0xff] %v1384_v41  ;;  %vm1321_vm14 = vcmp.ge.f32.partialorder %v1289_v39, 0.0  ;;  %v1353_v46 = vmul.f32 0.2, %v1289_v39  ;;  %v1701_v47 = vpop.f32.mrb[33].mxu0  ;;  %v1107_v48 = vpop.f32.mrb[33].mxu1 }
 0x13c   : > { %v1386_v50 = vsel %vm1322_vm13, %v1290_v34, %v1354_v40  ;;  %vm1323_vm15 = vcmp.ge.f32.partialorder %v1291_v44, 0.0  ;;  %v1355_v51 = vmul.f32 0.2, %v1291_v44  ;;  %v1702_v42 = vadd.f32 %v1701_v47, %v1700_v36  ;;  %v1703_v52 = vpop.f32.mrb[34].mxu0  ;;  %v1807_v53 = vpop.f32.mrb[34].mxu1 }
 0x13d   : > { %1418 = vst [vmem:[%s2172_s28 + $0x70] sm:$0xff] %v1386_v50  ;;  %v1385_v54 = vsel %vm1321_vm14, %v1289_v39, %v1353_v46  ;;  %v1704_v56 = vpop.f32.mrb[35].mxu0  ;;  %v1110_v57 = vpop.f32.mrb[35].mxu1 }
 0x13e   : > { %v1387_v59 = vsel %vm1323_vm15, %v1291_v44, %v1355_v51  ;;  %1417 = vst [vmem:[%s2172_s28 + $0x68] sm:$0xff] %v1385_v54  ;;  %v1108_v60 = vadd.f32 %v1702_v42, %v1107_v48  ;;  %v1705_v61 = vadd.f32 %v1704_v56, %v1703_v52 }
 0x13f   : > { %1419 = vst [vmem:[%s2172_s28 + $0x78] sm:$0xff] %v1387_v59 }
 0x140   : > { %v1292_v63 = vadd.f32 %v2160_v58, %v1108_v60  ;;  %v1111_v0 = vadd.f32 %v1705_v61, %v1110_v57 }
 0x142   : > { %vm1324_vm0 = vcmp.ge.f32.partialorder %v1292_v63, 0.0  ;;  %v1356_v1 = vmul.f32 0.2, %v1292_v63  ;;  %v1293_v2 = vadd.f32 %v2160_v58, %v1111_v0  ;;  %v1706_v3 = vpop.f32.mrb[36].mxu0  ;;  %v2209_v4 = vpop.f32.mrb[36].mxu1 }
 0x143   : > { %v1707_v5 = vpop.f32.mrb[37].mxu0  ;;  %v1123_v6 = vpop.f32.mrb[37].mxu1 }
 0x144   : > { %v1388_v8 = vsel %vm1324_vm0, %v1292_v63, %v1356_v1  ;;  %vm1325_vm1 = vcmp.ge.f32.partialorder %v1293_v2, 0.0  ;;  %v1357_v9 = vmul.f32 0.2, %v1293_v2  ;;  %v1708_v62 = vadd.f32 %v1707_v5, %v1706_v3  ;;  %v1709_v10 = vpop.f32.mrb[38].mxu0  ;;  %v2211_v11 = vpop.f32.mrb[38].mxu1 }
 0x145   : > { %1420 = vst [vmem:[%s2172_s28 + $0x80] sm:$0xff] %v1388_v8  ;;  %v1710_v12 = vpop.f32.mrb[39].mxu0  ;;  %v1126_v14 = vpop.f32.mrb[39].mxu1 }
 0x146   : > { %v1389_v15 = vsel %vm1325_vm1, %v1293_v2, %v1357_v9  ;;  %v1116_v16 = vadd.f32 %v1806_v45, %v1708_v62  ;;  %v1711_v7 = vadd.f32 %v1710_v12, %v1709_v10 }
 0x147   : > { %1421 = vst [vmem:[%s2172_s28 + $0x88] sm:$0xff] %v1389_v15 }
 0x148   : > { %v1294_v17 = vadd.f32 %v2160_v58, %v1116_v16  ;;  %v1119_v18 = vadd.f32 %v1807_v53, %v1711_v7 }
 0x14a   : > { %vm1326_vm2 = vcmp.ge.f32.partialorder %v1294_v17, 0.0  ;;  %v1358_v20 = vmul.f32 0.2, %v1294_v17  ;;  %v1295_v21 = vadd.f32 %v2160_v58, %v1119_v18  ;;  %v1712_v22 = vpop.f32.mrb[40].mxu0  ;;  %v1814_v23 = vpop.f32.mrb[40].mxu1 }
 0x14b   : > { %v1148_v24 = vadd.f32 %v1814_v23, %v2143_v25  ;;  %v1713_v26 = vpop.f32.mrb[41].mxu0  ;;  %v1139_v27 = vpop.f32.mrb[41].mxu1 }
 0x14c   : > { %v1390_v28 = vsel %vm1326_vm2, %v1294_v17, %v1358_v20  ;;  %vm1327_vm3 = vcmp.ge.f32.partialorder %v1295_v21, 0.0  ;;  %v1359_v29 = vmul.f32 0.2, %v1295_v21  ;;  %v1714_v30 = vadd.f32 %v1713_v26, %v1712_v22  ;;  %v1715_v32 = vpop.f32.mrb[42].mxu0  ;;  %v1815_v33 = vpop.f32.mrb[42].mxu1 }
 0x14d   : > { %1422 = vst [vmem:[%s2172_s28 + $0x90] sm:$0xff] %v1390_v28  ;;  %v1302_v34 = vadd.f32 %v2160_v58, %v1148_v24  ;;  %v1140_v35 = vadd.f32 %v2139_v13, %v1139_v27  ;;  %v1151_v38 = vadd.f32 %v1815_v33, %v2145_v31  ;;  %v1716_v39 = vpop.f32.mrb[43].mxu0  ;;  %v1142_v40 = vpop.f32.mrb[43].mxu1 }
 0x14e   : > { %v1391_v41 = vsel %vm1327_vm3, %v1295_v21, %v1359_v29  ;;  %v1124_v25 = vadd.f32 %v1714_v30, %v1123_v6  ;;  %v1717_v44 = vadd.f32 %v1716_v39, %v1715_v32  ;;  %v1143_v36 = vadd.f32 %v2141_v19, %v1142_v40 }
 0x14f   : > { %1423 = vst [vmem:[%s2172_s28 + $0x98] sm:$0xff] %v1391_v41  ;;  %vm1334_vm4 = vcmp.ge.f32.partialorder %v1302_v34, 0.0  ;;  %v1366_v45 = vmul.f32 0.2, %v1302_v34  ;;  %v1300_v46 = vadd.f32 %v2160_v58, %v1140_v35  ;;  %v1303_v47 = vadd.f32 %v2160_v58, %v1151_v38 }
 0x150   : > { %v1296_v48 = vadd.f32 %v2160_v58, %v1124_v25  ;;  %v1127_v13 = vadd.f32 %v1717_v44, %v1126_v14  ;;  %v1301_v31 = vadd.f32 %v2160_v58, %v1143_v36 }
 0x151   : > { %v1398_v50 = vsel %vm1334_vm4, %v1302_v34, %v1366_v45  ;;  %vm1332_vm5 = vcmp.ge.f32.partialorder %v1300_v46, 0.0  ;;  %v1364_v51 = vmul.f32 0.2, %v1300_v46  ;;  %vm1335_vm6 = vcmp.ge.f32.partialorder %v1303_v47, 0.0 }
 0x152   : > { %1430 = vst [vmem:[%s2172_s28 + $0xd0] sm:$0xff] %v1398_v50  ;;  %vm1328_vm7 = vcmp.ge.f32.partialorder %v1296_v48, 0.0  ;;  %v1360_v19 = vmul.f32 0.2, %v1296_v48  ;;  %v1367_v42 = vmul.f32 0.2, %v1303_v47  ;;  %v1297_v52 = vadd.f32 %v2160_v58, %v1127_v13 }
 0x153   : > { %v1718_v53 = vpop.f32.mrb[44].mxu0  ;;  %v1396_v54 = vsel %vm1332_vm5, %v1300_v46, %v1364_v51  ;;  %vm1333_vm8 = vcmp.ge.f32.partialorder %v1301_v31, 0.0  ;;  %v1365_v56 = vmul.f32 0.2, %v1301_v31  ;;  %v1818_v57 = vpop.f32.mrb[44].mxu1 }
 0x154   : > { %v1719_v59 = vpop.f32.mrb[45].mxu0  ;;  %v1392_v60 = vsel %vm1328_vm7, %v1296_v48, %v1360_v19  ;;  %1428 = vst [vmem:[%s2172_s28 + $0xc0] sm:$0xff] %v1396_v54  ;;  %v1399_v61 = vsel %vm1335_vm6, %v1303_v47, %v1367_v42  ;;  %vm1329_vm9 = vcmp.ge.f32.partialorder %v1297_v52, 0.0  ;;  %v1361_v63 = vmul.f32 0.2, %v1297_v52  ;;  %v1155_v0 = vpop.f32.mrb[45].mxu1 }
 0x155   : > { %v1721_v1 = vpop.f32.mrb[46].mxu0  ;;  %1424 = vst [vmem:[%s2172_s28 + $0xa0] sm:$0xff] %v1392_v60  ;;  %1431 = vst [vmem:[%s2172_s28 + $0xd8] sm:$0xff] %v1399_v61  ;;  %v1397_v2 = vsel %vm1333_vm8, %v1301_v31, %v1365_v56  ;;  %v1164_v3 = vadd.f32 %v1818_v57, %v2153_v49  ;;  %v1720_v5 = vadd.f32 %v1719_v59, %v1718_v53  ;;  %v1819_v8 = vpop.f32.mrb[46].mxu1 }
 0x156   : > { %v1156_v6 = vadd.f32 %v2147_v37, %v1155_v0  ;;  %v1722_v9 = vpop.f32.mrb[47].mxu0  ;;  %v1393_v62 = vsel %vm1329_vm9, %v1297_v52, %v1361_v63  ;;  %1429 = vst [vmem:[%s2172_s28 + $0xc8] sm:$0xff] %v1397_v2  ;;  %v1167_v10 = vadd.f32 %v1819_v8, %v2155_v55  ;;  %v1158_v14 = vpop.f32.mrb[47].mxu1 }
 0x157   : > { %v1723_v12 = vadd.f32 %v1722_v9, %v1721_v1  ;;  %1425 = vst [vmem:[%s2172_s28 + $0xa8] sm:$0xff] %v1393_v62  ;;  %v1306_v15 = vadd.f32 %v2160_v58, %v1164_v3  ;;  %v1132_v16 = vadd.f32 %v2209_v4, %v1720_v5  ;;  %v1159_v49 = vadd.f32 %v2151_v43, %v1158_v14 }
 0x158   : > { %v1304_v7 = vadd.f32 %v2160_v58, %v1156_v6  ;;  %v1307_v37 = vadd.f32 %v2160_v58, %v1167_v10 }
 0x159   : > { %v1135_v17 = vadd.f32 %v2211_v11, %v1723_v12  ;;  %vm1338_vm10 = vcmp.ge.f32.partialorder %v1306_v15, 0.0  ;;  %v1370_v18 = vmul.f32 0.2, %v1306_v15  ;;  %v1298_v55 = vadd.f32 %v2160_v58, %v1132_v16 }
 0x15a   : > { %vm1336_vm11 = vcmp.ge.f32.partialorder %v1304_v7, 0.0  ;;  %v1368_v20 = vmul.f32 0.2, %v1304_v7  ;;  %vm1339_vm12 = vcmp.ge.f32.partialorder %v1307_v37, 0.0  ;;  %v1371_v21 = vmul.f32 0.2, %v1307_v37 }
 0x15b   : > { %v1299_v4 = vadd.f32 %v2160_v58, %v1135_v17  ;;  %v1402_v22 = vsel %vm1338_vm10, %v1306_v15, %v1370_v18  ;;  %vm1330_vm13 = vcmp.ge.f32.partialorder %v1298_v55, 0.0  ;;  %v1362_v43 = vmul.f32 0.2, %v1298_v55 }
 0x15c   : > { %v1305_v11 = vadd.f32 %v2160_v58, %v1159_v49  ;;  %1434 = vst [vmem:[%s2172_s28 + $0xf0] sm:$0xff] %v1402_v22  ;;  %v1400_v23 = vsel %vm1336_vm11, %v1304_v7, %v1368_v20  ;;  %v1403_v24 = vsel %vm1339_vm12, %v1307_v37, %v1371_v21 }
 0x15d   : > { %vm1331_vm14 = vcmp.ge.f32.partialorder %v1299_v4, 0.0  ;;  %v1363_v26 = vmul.f32 0.2, %v1299_v4  ;;  %v1394_v27 = vsel %vm1330_vm13, %v1298_v55, %v1362_v43  ;;  %1432 = vst [vmem:[%s2172_s28 + $0xe0] sm:$0xff] %v1400_v23  ;;  %1435 = vst [vmem:[%s2172_s28 + $0xf8] sm:$0xff] %v1403_v24 }
 0x15e   : > { %vm1337_vm15 = vcmp.ge.f32.partialorder %v1305_v11, 0.0  ;;  %v1369_v28 = vmul.f32 0.2, %v1305_v11  ;;  %1426 = vst [vmem:[%s2172_s28 + $0xb0] sm:$0xff] %v1394_v27 }
 0x15f   : > { %v1395_v29 = vsel %vm1331_vm14, %v1299_v4, %v1363_v26 }
 0x160   : > { %1427 = vst [vmem:[%s2172_s28 + $0xb8] sm:$0xff] %v1395_v29  ;;  %v1401_v30 = vsel %vm1337_vm15, %v1305_v11, %v1369_v28 }
 0x161   : > { %1433 = vst [vmem:[%s2172_s28 + $0xe8] sm:$0xff] %v1401_v30 }
 0x162 PF: > { %s13_s14 = sadd.s32 1, %s1971_s14   ;;  %s2266_s12 = smov %s1967_s13 }
 0x163   : > { %p10_p5 = scmp.ge.s32.totalorder %s13_s14, 4   ;;  %s2267_s13 = smov %s2269_s15 }
 0x165   :  { %12 = sbr.rel (!%p10_p5) target bundleno = 2 (0x2), region = 76 }

// kernel: _lambda_.19
= control target key start
LH: loop header
LB: loop body
LE: loop exit
PB: predicated region body
PF: predicated region fallthrough
CT: control target
= control target key end

     0   :  { %s1897_s12 = smov 0   ;;  %s1899_s13 = smov 0   ;;  %s2151_s0 = inlined_call_operand.vmem [shape: bf16[512,384], index: 0, kind: input, shape index: {}]   ;;  %s2152_s1 = inlined_call_operand.vmem [shape: bf16[384,128], index: 1, kind: input, shape index: {}]   ;;  %s2153_s2 = inlined_call_operand.vmem [shape: f32[1,128], index: 2, kind: input, shape index: {}]   ;;  %s2154_s3 = inlined_call_operand.vmem [shape: f32[512,128], index: 3, kind: output, shape index: {}]  }
   0x1   :  { %s1901_s14 = smov 0  }
   0x2 LB: > { %s32_s15 = sadd.s32 1, %s1871_s13  ;;  %p1460_p0 = scmp.ge.s32.totalorder %s1875_s14, 1  ;;  %s1875_s14 = sphi %s1901_s14, %s13_s14   ;;  %s1871_s13 = sphi %s1899_s13, %s2156_s13   ;;  %s1867_s12 = sphi %s1897_s12, %s2155_s12  }
   0x3   : > { %p34_p1 = scmp.ge.s32.totalorder %s32_s15, 2  ;;  %p191_p2 = scmp.lt.s32.totalorder %s1875_s14, 3 }
   0x5   : > { %s2158_s15 = smov (%p34_p1, %s32_s15), 0  ;;  %p192_p3 = pnand %p1460_p0, %p191_p2 }
   0x6   : > { %v1765_v0 = vld [vmem:[%s2152_s1 + $0x40] sm:$0xff] (!%p192_p3)   ;;  %s1461_s18 = sshll.u32 (!%p192_p3), %s1867_s12, 5  ;;  %v1767_v2 = vld [vmem:[%s2152_s1 + $0x48] sm:$0xff] (!%p192_p3)   ;;  %v1769_v4 = vld [vmem:[%s2152_s1 + $0x50] sm:$0xff] (!%p192_p3)  }
   0x7   : > { %195 = sbr.rel (%p192_p3) target bundleno = 349 (0x15d), region = 32  ;;  %v1766_v1 = vld [vmem:[%s2152_s1] sm:$0xff] (!%p192_p3)   ;;  %1540 = vmatprep.subr.bf16.mxu0 (!%p192_p3), %v1765_v0  ;;  %1724 = vmatprep.subr.bf16.mxu1 (!%p192_p3), %v1765_v0  ;;  %p236_p4 = scmp.lt.s32.totalorder (!%p192_p3), %s1461_s18, 63  ;;  %v1768_v3 = vld [vmem:[%s2152_s1 + $0x8] sm:$0xff] (!%p192_p3)   ;;  %v1770_v5 = vld [vmem:[%s2152_s1 + $0x10] sm:$0xff] (!%p192_p3)  }
   0x8   : > { %1541 = vmatpush3.bf16.msra.mxu0 (!%p192_p3), %v1766_v1  ;;  %1732 = vmatpush3.bf16.msra.mxu1 (!%p192_p3), %v1766_v1  ;;  %v1771_v6 = vld [vmem:[%s2152_s1 + $0x58] sm:$0xff] (!%p192_p3)   ;;  %v1773_v8 = vld [vmem:[%s2152_s1 + $0x60] sm:$0xff] (!%p192_p3)   ;;  %v1775_v10 = vld [vmem:[%s2152_s1 + $0x68] sm:$0xff] (!%p192_p3)  }
   0x9   : > { %1542 = vmatprep.subr.bf16.mxu0 (!%p192_p3), %v1767_v2  ;;  %1725 = vmatprep.subr.bf16.mxu1 (!%p192_p3), %v1767_v2  ;;  %v1772_v7 = vld [vmem:[%s2152_s1 + $0x18] sm:$0xff] (!%p192_p3)   ;;  %v1774_v9 = vld [vmem:[%s2152_s1 + $0x20] sm:$0xff] (!%p192_p3)   ;;  %v1776_v13 = vld [vmem:[%s2152_s1 + $0x28] sm:$0xff] (!%p192_p3)  }
   0xa   : > { %v1777_v14 = vld [vmem:[%s2152_s1 + $0x70] sm:$0xff] (!%p192_p3)   ;;  %v1779_v16 = vld [vmem:[%s2152_s1 + $0x78] sm:$0xff] (!%p192_p3)   ;;  %v1787_v18 = vld [vmem:[%s2152_s1 + $0x80] sm:$0xff] (!%p192_p3)  }
   0xb   : > { %v1778_v15 = vld [vmem:[%s2152_s1 + $0x30] sm:$0xff] (!%p192_p3)   ;;  %v1780_v17 = vld [vmem:[%s2152_s1 + $0x38] sm:$0xff] (!%p192_p3)   ;;  %v1788_v22 = vld [vmem:[%s2152_s1 + $0x88] sm:$0xff] (!%p192_p3)  }
   0xc   : > { %1543 = vmatpush3.bf16.msra.mxu0 (!%p192_p3), %v1768_v3  ;;  %1733 = vmatpush3.bf16.msra.mxu1 (!%p192_p3), %v1768_v3  ;;  %v1795_v25 = vld [vmem:[%s2152_s1 + $0x90] sm:$0xff] (!%p192_p3)   ;;  %v1796_v27 = vld [vmem:[%s2152_s1 + $0x98] sm:$0xff] (!%p192_p3)   ;;  %v1803_v30 = vld [vmem:[%s2152_s1 + $0xa0] sm:$0xff] (!%p192_p3)  }
   0xd   : > { %1544 = vmatprep.subr.bf16.mxu0 (!%p192_p3), %v1769_v4  ;;  %1726 = vmatprep.subr.bf16.mxu1 (!%p192_p3), %v1769_v4  ;;  %v1804_v33 = vld [vmem:[%s2152_s1 + $0xa8] sm:$0xff] (!%p192_p3)   ;;  %v1811_v36 = vld [vmem:[%s2152_s1 + $0xb0] sm:$0xff] (!%p192_p3)   ;;  %v1812_v40 = vld [vmem:[%s2152_s1 + $0xb8] sm:$0xff] (!%p192_p3)  }
   0xe   : > { %s2160_s18 = smov (!%p236_p4, %s1461_s18), 63 }
   0xf   : > { %s1740_s4 = smul.u32 12, %s2160_s18 }
  0x10   : > { %1545 = vmatpush3.bf16.msra.mxu0 %v1770_v5  ;;  %1734 = vmatpush3.bf16.msra.mxu1 %v1770_v5 }
  0x11   : > { %1546 = vmatprep.subr.bf16.mxu0 %v1771_v6  ;;  %1727 = vmatprep.subr.bf16.mxu1 %v1771_v6  ;;  %s1948_s11 = scalar_lea.vmem %s2151_s0, %s1740_s4 }
  0x12   : > { %v1783_v11 = vld [vmem:[%s1948_s11 + $0x4] ss:$12 sps:$4 sm:$0xff]   ;;  %v1781_v19 = vld [vmem:[%s1948_s11] ss:$12 sps:$4 sm:$0xff]   ;;  %v1789_v21 = vld [vmem:[%s1948_s11 + $0x1c] ss:$12 sps:$4 sm:$0xff]  }
  0x13   : > { %v1786_v12 = vld [vmem:[%s1948_s11 + $0x124] ss:$12 sps:$4 sm:$0xff]   ;;  %880 = vmatprep.mubr.bf16.mxu0 %v1783_v11  ;;  %v1784_v20 = vld [vmem:[%s1948_s11 + $0x120] ss:$12 sps:$4 sm:$0xff]   ;;  %v1791_v23 = vld [vmem:[%s1948_s11 + $0x13c] ss:$12 sps:$4 sm:$0xff]  }
  0x14   : > { %1547 = vmatpush3.bf16.msra.mxu0 %v1772_v7  ;;  %1735 = vmatpush3.bf16.msra.mxu1 %v1772_v7  ;;  %v1793_v24 = vld [vmem:[%s1948_s11 + $0x18] ss:$12 sps:$4 sm:$0xff]   ;;  %v1797_v28 = vld [vmem:[%s1948_s11 + $0x34] ss:$12 sps:$4 sm:$0xff]   ;;  %v1801_v31 = vld [vmem:[%s1948_s11 + $0x30] ss:$12 sps:$4 sm:$0xff]  }
  0x15   : > { %1548 = vmatprep.subr.bf16.mxu0 %v1773_v8  ;;  %1728 = vmatprep.subr.bf16.mxu1 %v1773_v8  ;;  %v1794_v26 = vld [vmem:[%s1948_s11 + $0x138] ss:$12 sps:$4 sm:$0xff]   ;;  %v1799_v29 = vld [vmem:[%s1948_s11 + $0x154] ss:$12 sps:$4 sm:$0xff]   ;;  %v1802_v32 = vld [vmem:[%s1948_s11 + $0x150] ss:$12 sps:$4 sm:$0xff]  }
  0x16   : > { %976 = vmatprep.mubr.bf16.mxu1 %v1786_v12  ;;  %v1805_v34 = vld [vmem:[%s1948_s11 + $0x4c] ss:$12 sps:$4 sm:$0xff]   ;;  %v1809_v37 = vld [vmem:[%s1948_s11 + $0x48] ss:$12 sps:$4 sm:$0xff]   ;;  %v1813_v39 = vld [vmem:[%s1948_s11 + $0x64] ss:$12 sps:$4 sm:$0xff]  }
  0x17   : > { %v1807_v35 = vld [vmem:[%s1948_s11 + $0x16c] ss:$12 sps:$4 sm:$0xff]   ;;  %v1810_v38 = vld [vmem:[%s1948_s11 + $0x168] ss:$12 sps:$4 sm:$0xff]   ;;  %v1822_v47 = vld [vmem:[%s1948_s11 + $0x50] ss:$12 sps:$4 sm:$0xff]  }
  0x18   : > { %1549 = vmatpush3.bf16.msra.mxu0 %v1774_v9  ;;  %1736 = vmatpush3.bf16.msra.mxu1 %v1774_v9  ;;  %v1815_v41 = vld [vmem:[%s1948_s11 + $0x8] ss:$12 sps:$4 sm:$0xff]   ;;  %v1816_v42 = vld [vmem:[%s1948_s11 + $0x60] ss:$12 sps:$4 sm:$0xff]   ;;  %v1820_v45 = vld [vmem:[%s1948_s11 + $0x38] ss:$12 sps:$4 sm:$0xff]  }
  0x19   : > { %1550 = vmatprep.subr.bf16.mxu0 %v1775_v10  ;;  %1729 = vmatprep.subr.bf16.mxu1 %v1775_v10  ;;  %v1817_v43 = vld [vmem:[%s1948_s11 + $0x20] ss:$12 sps:$4 sm:$0xff]   ;;  %v1818_v44 = vld [vmem:[%s1948_s11 + $0x7c] ss:$12 sps:$4 sm:$0xff]   ;;  %v1821_v46 = vld [vmem:[%s1948_s11 + $0x78] ss:$12 sps:$4 sm:$0xff]  }
  0x1a   : > { %v1823_v48 = vld [vmem:[%s1948_s11 + $0x94] ss:$12 sps:$4 sm:$0xff]   ;;  %v1826_v50 = vld [vmem:[%s1948_s11 + $0x90] ss:$12 sps:$4 sm:$0xff]   ;;  %v1828_v52 = vld [vmem:[%s1948_s11 + $0xac] ss:$12 sps:$4 sm:$0xff]  }
  0x1b   : > { %v1825_v49 = vld [vmem:[%s1948_s11 + $0x68] ss:$12 sps:$4 sm:$0xff]   ;;  %v1827_v51 = vld [vmem:[%s1948_s11 + $0x80] ss:$12 sps:$4 sm:$0xff]   ;;  %v1830_v53 = vld [vmem:[%s1948_s11 + $0x98] ss:$12 sps:$4 sm:$0xff]  }
  0x1c   : > { %1551 = vmatpush3.bf16.msra.mxu0 %v1776_v13  ;;  %1737 = vmatpush3.bf16.msra.mxu1 %v1776_v13  ;;  %v1831_v54 = vld [vmem:[%s1948_s11 + $0xa8] ss:$12 sps:$4 sm:$0xff]   ;;  %v1832_v55 = vld [vmem:[%s1948_s11 + $0xb0] ss:$12 sps:$4 sm:$0xff]   ;;  %v1836_v58 = vld [vmem:[%s1948_s11 + $0xc0] ss:$12 sps:$4 sm:$0xff]  }
  0x1d   : > { %1552 = vmatprep.subr.bf16.mxu0 %v1777_v14  ;;  %1730 = vmatprep.subr.bf16.mxu1 %v1777_v14  ;;  %v1833_v56 = vld [vmem:[%s1948_s11 + $0xc4] ss:$12 sps:$4 sm:$0xff]   ;;  %v1835_v57 = vld [vmem:[%s1948_s11 + $0xc8] ss:$12 sps:$4 sm:$0xff]   ;;  %v1837_v59 = vld [vmem:[%s1948_s11 + $0xe0] ss:$12 sps:$4 sm:$0xff]  }
  0x1e   : > { %v1838_v60 = vld [vmem:[%s1948_s11 + $0xdc] ss:$12 sps:$4 sm:$0xff]   ;;  %v1840_v61 = vld [vmem:[%s1948_s11 + $0xf8] ss:$12 sps:$4 sm:$0xff]   ;;  %v1843_v0 = vld [vmem:[%s1948_s11 + $0xf4] ss:$12 sps:$4 sm:$0xff]  }
  0x1f   : > { %v1841_v62 = vld [vmem:[%s1948_s11 + $0xd8] ss:$12 sps:$4 sm:$0xff]   ;;  %v1842_v63 = vld [vmem:[%s1948_s11 + $0x110] ss:$12 sps:$4 sm:$0xff]   ;;  %v1845_v1 = vld [vmem:[%s1948_s11 + $0x128] ss:$12 sps:$4 sm:$0xff]  }
  0x20   : > { %1553 = vmatpush3.bf16.msra.mxu0 %v1778_v15  ;;  %1738 = vmatpush3.bf16.msra.mxu1 %v1778_v15  ;;  %v1846_v2 = vld [vmem:[%s1948_s11 + $0xf0] ss:$12 sps:$4 sm:$0xff]   ;;  %v1847_v3 = vld [vmem:[%s1948_s11 + $0x140] ss:$12 sps:$4 sm:$0xff]   ;;  %v1850_v5 = vld [vmem:[%s1948_s11 + $0x158] ss:$12 sps:$4 sm:$0xff]  }
  0x21   : > { %1554 = vmatprep.subr.bf16.mxu0 %v1779_v16  ;;  %1731 = vmatprep.subr.bf16.mxu1 %v1779_v16  ;;  %v1848_v4 = vld [vmem:[%s1948_s11 + $0x10c] ss:$12 sps:$4 sm:$0xff]   ;;  %v1851_v6 = vld [vmem:[%s1948_s11 + $0x108] ss:$12 sps:$4 sm:$0xff]   ;;  %v1852_v7 = vld [vmem:[%s1948_s11 + $0x170] ss:$12 sps:$4 sm:$0xff]  }
  0x22   : > { %s1464_s11 = sshll.u32 %s2160_s18, 3 }
  0x23   : > { %s2068_s28 = scalar_lea.vmem %s2154_s3, %s1464_s11 }
  0x24   : > { %1555 = vmatpush3.bf16.msra.mxu0 %v1780_v17  ;;  %1739 = vmatpush3.bf16.msra.mxu1 %v1780_v17 }
  0x25   : > { %1676 = vmatprep.subr.bf16.mxu1 %v1787_v18 }
  0x27   : > { %881 = vmatmul.mubr.bf16.vlgmr.msra.gmra.mrb[0].mxu0 %v1781_v19  ;;  %977 = vmatmul.mubr.bf16.vlgmr.msra.gmra.mrb[0].mxu1 %v1784_v20 }
  0x28   : > { %1677 = vmatpush3.bf16.msra.mxu1 %v1787_v18  ;;  %888 = vmatprep.mubr.bf16.mxu0 %v1789_v21 }
  0x29   : > { %1678 = vmatprep.subr.bf16.mxu1 %v1788_v22  ;;  %984 = vmatprep.mubr.bf16.mxu1 %v1791_v23 }
  0x2c   : > { %1679 = vmatpush3.bf16.msra.mxu1 %v1788_v22 }
  0x2d   : > { %1680 = vmatprep.subr.bf16.mxu1 %v1795_v25 }
  0x2f   : > { %889 = vmatmul.mubr.bf16.gmra.mrb[4].mxu0 %v1793_v24  ;;  %985 = vmatmul.mubr.bf16.gmra.mrb[4].mxu1 %v1794_v26 }
  0x30   : > { %1681 = vmatpush3.bf16.msra.mxu1 %v1795_v25  ;;  %896 = vmatprep.mubr.bf16.mxu0 %v1797_v28 }
  0x31   : > { %1682 = vmatprep.subr.bf16.mxu1 %v1796_v27  ;;  %992 = vmatprep.mubr.bf16.mxu1 %v1799_v29 }
  0x34   : > { %1683 = vmatpush3.bf16.msra.mxu1 %v1796_v27 }
  0x35   : > { %1684 = vmatprep.subr.bf16.mxu1 %v1803_v30 }
  0x37   : > { %897 = vmatmul.mubr.bf16.gmra.mrb[8].mxu0 %v1801_v31  ;;  %993 = vmatmul.mubr.bf16.gmra.mrb[8].mxu1 %v1802_v32 }
  0x38   : > { %1685 = vmatpush3.bf16.msra.mxu1 %v1803_v30  ;;  %904 = vmatprep.mubr.bf16.mxu0 %v1805_v34 }
  0x39   : > { %1686 = vmatprep.subr.bf16.mxu1 %v1804_v33  ;;  %1000 = vmatprep.mubr.bf16.mxu1 %v1807_v35 }
  0x3c   : > { %1687 = vmatpush3.bf16.msra.mxu1 %v1804_v33 }
  0x3d   : > { %1688 = vmatprep.subr.bf16.mxu1 %v1811_v36 }
  0x3f   : > { %905 = vmatmul.mubr.bf16.gmra.mrb[12].mxu0 %v1809_v37  ;;  %1001 = vmatmul.mubr.bf16.gmra.mrb[12].mxu1 %v1810_v38 }
  0x40   : > { %1689 = vmatpush3.bf16.msra.mxu1 %v1811_v36  ;;  %912 = vmatprep.mubr.bf16.mxu0 %v1813_v39 }
  0x41   : > { %1690 = vmatprep.subr.bf16.mxu1 %v1812_v40  ;;  %1692 = vmatprep.mubr.bf16.mxu1 %v1815_v41 }
  0x44   : > { %1691 = vmatpush3.bf16.msra.mxu1 %v1812_v40 }
  0x47   : > { %913 = vmatmul.mubr.bf16.gmra.mrb[16].mxu0 %v1816_v42  ;;  %1693 = vmatmul.mubr.bf16.vlgmr.msra.gmra.mrb[16].mxu1 %v1817_v43 }
  0x48   : > { %920 = vmatprep.mubr.bf16.mxu0 %v1818_v44  ;;  %1696 = vmatprep.mubr.bf16.mxu1 %v1820_v45 }
  0x4f   : > { %921 = vmatmul.mubr.bf16.gmra.mrb[20].mxu0 %v1821_v46  ;;  %1697 = vmatmul.mubr.bf16.gmra.mrb[20].mxu1 %v1822_v47 }
  0x50   : > { %928 = vmatprep.mubr.bf16.mxu0 %v1823_v48  ;;  %1700 = vmatprep.mubr.bf16.mxu1 %v1825_v49 }
  0x57   : > { %929 = vmatmul.mubr.bf16.gmra.mrb[24].mxu0 %v1826_v50  ;;  %1701 = vmatmul.mubr.bf16.gmra.mrb[24].mxu1 %v1827_v51 }
  0x58   : > { %936 = vmatprep.mubr.bf16.mxu0 %v1828_v52  ;;  %1704 = vmatprep.mubr.bf16.mxu1 %v1830_v53 }
  0x5f   : > { %937 = vmatmul.mubr.bf16.gmra.mrb[28].mxu0 %v1831_v54  ;;  %1705 = vmatmul.mubr.bf16.gmra.mrb[28].mxu1 %v1832_v55 }
  0x60   : > { %944 = vmatprep.mubr.bf16.mxu0 %v1833_v56  ;;  %1708 = vmatprep.mubr.bf16.mxu1 %v1835_v57 }
  0x67   : > { %945 = vmatmul.mubr.bf16.gmra.mrb[32].mxu0 %v1836_v58  ;;  %1709 = vmatmul.mubr.bf16.gmra.mrb[32].mxu1 %v1837_v59  ;;  %v2063_v58 = vld [vmem:[%s2153_s2] ss:$0 sm:$0xff] }
  0x68   : > { %952 = vmatprep.mubr.bf16.mxu0 %v1838_v60  ;;  %1712 = vmatprep.mubr.bf16.mxu1 %v1840_v61 }
  0x6f   : > { %953 = vmatmul.mubr.bf16.gmra.mrb[36].mxu0 %v1841_v62  ;;  %1713 = vmatmul.mubr.bf16.gmra.mrb[36].mxu1 %v1842_v63 }
  0x70   : > { %960 = vmatprep.mubr.bf16.mxu0 %v1843_v0  ;;  %1716 = vmatprep.mubr.bf16.mxu1 %v1845_v1 }
  0x77   : > { %961 = vmatmul.mubr.bf16.gmra.mrb[40].mxu0 %v1846_v2  ;;  %1717 = vmatmul.mubr.bf16.gmra.mrb[40].mxu1 %v1847_v3 }
  0x78   : > { %968 = vmatprep.mubr.bf16.mxu0 %v1848_v4  ;;  %1720 = vmatprep.mubr.bf16.mxu1 %v1850_v5 }
  0x7f   : > { %969 = vmatmul.mubr.bf16.gmra.mrb[44].mxu0 %v1851_v6  ;;  %1721 = vmatmul.mubr.bf16.gmra.mrb[44].mxu1 %v1852_v7 }
  0xfa   : > { %v1556_v8 = vpop.f32.mrb[0].mxu0  ;;  %v1628_v9 = vpop.f32.mrb[0].mxu1 }
  0xfb   : > { %v1557_v10 = vpop.f32.mrb[1].mxu0  ;;  %v1629_v11 = vpop.f32.mrb[1].mxu1 }
  0xfc   : > { %v1558_v12 = vadd.f32 %v1557_v10, %v1556_v8  ;;  %v2043_v13 = vadd.f32 %v1629_v11, %v1628_v9  ;;  %v1559_v14 = vpop.f32.mrb[2].mxu0  ;;  %v1631_v15 = vpop.f32.mrb[2].mxu1 }
  0xfd   : > { %v1560_v16 = vpop.f32.mrb[3].mxu0  ;;  %v1632_v17 = vpop.f32.mrb[3].mxu1 }
  0xfe   : > { %v1561_v18 = vadd.f32 %v1560_v16, %v1559_v14  ;;  %v2045_v19 = vadd.f32 %v1632_v17, %v1631_v15 }
 0x102   : > { %v1562_v20 = vpop.f32.mrb[4].mxu0  ;;  %v1634_v21 = vpop.f32.mrb[4].mxu1 }
 0x103   : > { %v1563_v22 = vpop.f32.mrb[5].mxu0  ;;  %v1635_v23 = vpop.f32.mrb[5].mxu1 }
 0x104   : > { %v1564_v24 = vadd.f32 %v1563_v22, %v1562_v20  ;;  %v2047_v25 = vadd.f32 %v1635_v23, %v1634_v21  ;;  %v1565_v26 = vpop.f32.mrb[6].mxu0  ;;  %v1637_v27 = vpop.f32.mrb[6].mxu1 }
 0x105   : > { %v1566_v28 = vpop.f32.mrb[7].mxu0  ;;  %v1638_v29 = vpop.f32.mrb[7].mxu1 }
 0x106   : > { %v1567_v30 = vadd.f32 %v1566_v28, %v1565_v26  ;;  %v2049_v31 = vadd.f32 %v1638_v29, %v1637_v27 }
 0x10a   : > { %v1568_v32 = vpop.f32.mrb[8].mxu0  ;;  %v1640_v33 = vpop.f32.mrb[8].mxu1 }
 0x10b   : > { %v1569_v34 = vpop.f32.mrb[9].mxu0  ;;  %v1641_v35 = vpop.f32.mrb[9].mxu1 }
 0x10c   : > { %v1570_v36 = vadd.f32 %v1569_v34, %v1568_v32  ;;  %v2051_v37 = vadd.f32 %v1641_v35, %v1640_v33  ;;  %v1571_v38 = vpop.f32.mrb[10].mxu0  ;;  %v1643_v39 = vpop.f32.mrb[10].mxu1 }
 0x10d   : > { %v1572_v40 = vpop.f32.mrb[11].mxu0  ;;  %v1644_v41 = vpop.f32.mrb[11].mxu1 }
 0x10e   : > { %v1573_v42 = vadd.f32 %v1572_v40, %v1571_v38  ;;  %v2053_v43 = vadd.f32 %v1644_v41, %v1643_v39 }
 0x112   : > { %v1574_v44 = vpop.f32.mrb[12].mxu0  ;;  %v1646_v45 = vpop.f32.mrb[12].mxu1 }
 0x113   : > { %v1575_v46 = vpop.f32.mrb[13].mxu0  ;;  %v1647_v47 = vpop.f32.mrb[13].mxu1 }
 0x114   : > { %v1576_v48 = vadd.f32 %v1575_v46, %v1574_v44  ;;  %v2055_v49 = vadd.f32 %v1647_v47, %v1646_v45  ;;  %v1577_v50 = vpop.f32.mrb[14].mxu0  ;;  %v1649_v51 = vpop.f32.mrb[14].mxu1 }
 0x115   : > { %v1578_v52 = vpop.f32.mrb[15].mxu0  ;;  %v1650_v53 = vpop.f32.mrb[15].mxu1 }
 0x116   : > { %v1579_v54 = vadd.f32 %v1578_v52, %v1577_v50  ;;  %v2057_v55 = vadd.f32 %v1650_v53, %v1649_v51 }
 0x11a   : > { %v1580_v56 = vpop.f32.mrb[16].mxu0  ;;  %v1694_v57 = vpop.f32.mrb[16].mxu1 }
 0x11b   : > { %v1052_v59 = vadd.f32 %v1694_v57, %v1564_v24  ;;  %v1581_v60 = vpop.f32.mrb[17].mxu0  ;;  %v1043_v61 = vpop.f32.mrb[17].mxu1 }
 0x11c   : > { %v1582_v62 = vadd.f32 %v1581_v60, %v1580_v56  ;;  %v1044_v63 = vadd.f32 %v1558_v12, %v1043_v61  ;;  %v1583_v0 = vpop.f32.mrb[18].mxu0  ;;  %v1695_v1 = vpop.f32.mrb[18].mxu1 }
 0x11d   : > { %v1278_v2 = vadd.f32 %v2063_v58, %v1052_v59  ;;  %v1055_v3 = vadd.f32 %v1695_v1, %v1567_v30  ;;  %v1584_v4 = vpop.f32.mrb[19].mxu0  ;;  %v1046_v5 = vpop.f32.mrb[19].mxu1 }
 0x11e   : > { %v1276_v6 = vadd.f32 %v2063_v58, %v1044_v63  ;;  %v1585_v7 = vadd.f32 %v1584_v4, %v1583_v0  ;;  %v1047_v8 = vadd.f32 %v1561_v18, %v1046_v5 }
 0x11f   : > { %1310 = vst [vmem:[%s2068_s28 + $0x10] sm:$0xff] %v1278_v2  ;;  %v1279_v9 = vadd.f32 %v2063_v58, %v1055_v3 }
 0x120   : > { %1308 = vst [vmem:[%s2068_s28] sm:$0xff] %v1276_v6  ;;  %v1277_v10 = vadd.f32 %v2063_v58, %v1047_v8 }
 0x121   : > { %1311 = vst [vmem:[%s2068_s28 + $0x18] sm:$0xff] %v1279_v9 }
 0x122   : > { %1309 = vst [vmem:[%s2068_s28 + $0x8] sm:$0xff] %v1277_v10  ;;  %v1586_v11 = vpop.f32.mrb[20].mxu0  ;;  %v1698_v12 = vpop.f32.mrb[20].mxu1 }
 0x123   : > { %v1068_v14 = vadd.f32 %v1698_v12, %v1576_v48  ;;  %v1587_v15 = vpop.f32.mrb[21].mxu0  ;;  %v1059_v16 = vpop.f32.mrb[21].mxu1 }
 0x124   : > { %v1588_v17 = vadd.f32 %v1587_v15, %v1586_v11  ;;  %v1060_v20 = vadd.f32 %v1570_v36, %v1059_v16  ;;  %v1589_v18 = vpop.f32.mrb[22].mxu0  ;;  %v1699_v21 = vpop.f32.mrb[22].mxu1 }
 0x125   : > { %v1282_v22 = vadd.f32 %v2063_v58, %v1068_v14  ;;  %v1071_v23 = vadd.f32 %v1699_v21, %v1579_v54  ;;  %v1590_v24 = vpop.f32.mrb[23].mxu0  ;;  %v1062_v26 = vpop.f32.mrb[23].mxu1 }
 0x126   : > { %v1280_v27 = vadd.f32 %v2063_v58, %v1060_v20  ;;  %v1591_v28 = vadd.f32 %v1590_v24, %v1589_v18  ;;  %v1063_v29 = vadd.f32 %v1573_v42, %v1062_v26 }
 0x127   : > { %1314 = vst [vmem:[%s2068_s28 + $0x30] sm:$0xff] %v1282_v22  ;;  %v1283_v30 = vadd.f32 %v2063_v58, %v1071_v23 }
 0x128   : > { %1312 = vst [vmem:[%s2068_s28 + $0x20] sm:$0xff] %v1280_v27  ;;  %v1281_v32 = vadd.f32 %v2063_v58, %v1063_v29 }
 0x129   : > { %1315 = vst [vmem:[%s2068_s28 + $0x38] sm:$0xff] %v1283_v30 }
 0x12a   : > { %1313 = vst [vmem:[%s2068_s28 + $0x28] sm:$0xff] %v1281_v32  ;;  %v1592_v33 = vpop.f32.mrb[24].mxu0  ;;  %v1702_v34 = vpop.f32.mrb[24].mxu1 }
 0x12b   : > { %v1084_v35 = vadd.f32 %v1702_v34, %v1588_v17  ;;  %v1593_v36 = vpop.f32.mrb[25].mxu0  ;;  %v1075_v38 = vpop.f32.mrb[25].mxu1 }
 0x12c   : > { %v1594_v39 = vadd.f32 %v1593_v36, %v1592_v33  ;;  %v1076_v40 = vadd.f32 %v1582_v62, %v1075_v38  ;;  %v1595_v41 = vpop.f32.mrb[26].mxu0  ;;  %v1703_v42 = vpop.f32.mrb[26].mxu1 }
 0x12d   : > { %v1286_v44 = vadd.f32 %v2063_v58, %v1084_v35  ;;  %v1087_v45 = vadd.f32 %v1703_v42, %v1591_v28  ;;  %v1596_v46 = vpop.f32.mrb[27].mxu0  ;;  %v1078_v47 = vpop.f32.mrb[27].mxu1 }
 0x12e   : > { %v1284_v48 = vadd.f32 %v2063_v58, %v1076_v40  ;;  %v1597_v50 = vadd.f32 %v1596_v46, %v1595_v41  ;;  %v1079_v51 = vadd.f32 %v1585_v7, %v1078_v47 }
 0x12f   : > { %1318 = vst [vmem:[%s2068_s28 + $0x50] sm:$0xff] %v1286_v44  ;;  %v1287_v52 = vadd.f32 %v2063_v58, %v1087_v45 }
 0x130   : > { %1316 = vst [vmem:[%s2068_s28 + $0x40] sm:$0xff] %v1284_v48  ;;  %v1285_v53 = vadd.f32 %v2063_v58, %v1079_v51 }
 0x131   : > { %1319 = vst [vmem:[%s2068_s28 + $0x58] sm:$0xff] %v1287_v52 }
 0x132   : > { %1317 = vst [vmem:[%s2068_s28 + $0x48] sm:$0xff] %v1285_v53  ;;  %v1598_v54 = vpop.f32.mrb[28].mxu0  ;;  %v1706_v56 = vpop.f32.mrb[28].mxu1 }
 0x133   : > { %v1599_v57 = vpop.f32.mrb[29].mxu0  ;;  %v1091_v59 = vpop.f32.mrb[29].mxu1 }
 0x134   : > { %v1600_v60 = vadd.f32 %v1599_v57, %v1598_v54  ;;  %v1092_v61 = vadd.f32 %v1594_v39, %v1091_v59  ;;  %v1601_v62 = vpop.f32.mrb[30].mxu0  ;;  %v1707_v63 = vpop.f32.mrb[30].mxu1 }
 0x135   : > { %v1602_v0 = vpop.f32.mrb[31].mxu0  ;;  %v1094_v1 = vpop.f32.mrb[31].mxu1 }
 0x136   : > { %v1100_v2 = vadd.f32 %v1706_v56, %v1600_v60  ;;  %v1288_v3 = vadd.f32 %v2063_v58, %v1092_v61  ;;  %v1603_v4 = vadd.f32 %v1602_v0, %v1601_v62  ;;  %v1095_v5 = vadd.f32 %v1597_v50, %v1094_v1 }
 0x138   : > { %v1290_v6 = vadd.f32 %v2063_v58, %v1100_v2  ;;  %1320 = vst [vmem:[%s2068_s28 + $0x60] sm:$0xff] %v1288_v3  ;;  %v1103_v7 = vadd.f32 %v1707_v63, %v1603_v4  ;;  %v1289_v8 = vadd.f32 %v2063_v58, %v1095_v5 }
 0x13a   : > { %1322 = vst [vmem:[%s2068_s28 + $0x70] sm:$0xff] %v1290_v6  ;;  %v1291_v9 = vadd.f32 %v2063_v58, %v1103_v7  ;;  %1321 = vst [vmem:[%s2068_s28 + $0x68] sm:$0xff] %v1289_v8  ;;  %v1604_v10 = vpop.f32.mrb[32].mxu0  ;;  %v1710_v11 = vpop.f32.mrb[32].mxu1 }
 0x13b   : > { %v1605_v12 = vpop.f32.mrb[33].mxu0  ;;  %v1107_v14 = vpop.f32.mrb[33].mxu1 }
 0x13c   : > { %1323 = vst [vmem:[%s2068_s28 + $0x78] sm:$0xff] %v1291_v9  ;;  %v1606_v15 = vadd.f32 %v1605_v12, %v1604_v10  ;;  %v1607_v16 = vpop.f32.mrb[34].mxu0  ;;  %v1711_v17 = vpop.f32.mrb[34].mxu1 }
 0x13d   : > { %v1608_v20 = vpop.f32.mrb[35].mxu0  ;;  %v1110_v18 = vpop.f32.mrb[35].mxu1 }
 0x13e   : > { %v1108_v21 = vadd.f32 %v1606_v15, %v1107_v14  ;;  %v1609_v22 = vadd.f32 %v1608_v20, %v1607_v16 }
 0x140   : > { %v1292_v23 = vadd.f32 %v2063_v58, %v1108_v21  ;;  %v1111_v24 = vadd.f32 %v1609_v22, %v1110_v18 }
 0x142   : > { %1324 = vst [vmem:[%s2068_s28 + $0x80] sm:$0xff] %v1292_v23  ;;  %v1293_v26 = vadd.f32 %v2063_v58, %v1111_v24  ;;  %v1610_v27 = vpop.f32.mrb[36].mxu0  ;;  %v1714_v28 = vpop.f32.mrb[36].mxu1 }
 0x143   : > { %v1611_v29 = vpop.f32.mrb[37].mxu0  ;;  %v1123_v30 = vpop.f32.mrb[37].mxu1 }
 0x144   : > { %1325 = vst [vmem:[%s2068_s28 + $0x88] sm:$0xff] %v1293_v26  ;;  %v1612_v32 = vadd.f32 %v1611_v29, %v1610_v27  ;;  %v1613_v33 = vpop.f32.mrb[38].mxu0  ;;  %v1715_v34 = vpop.f32.mrb[38].mxu1 }
 0x145   : > { %v1614_v35 = vpop.f32.mrb[39].mxu0  ;;  %v1126_v36 = vpop.f32.mrb[39].mxu1 }
 0x146   : > { %v1116_v38 = vadd.f32 %v1710_v11, %v1612_v32  ;;  %v1615_v39 = vadd.f32 %v1614_v35, %v1613_v33 }
 0x148   : > { %v1294_v40 = vadd.f32 %v2063_v58, %v1116_v38  ;;  %v1119_v41 = vadd.f32 %v1711_v17, %v1615_v39 }
 0x14a   : > { %1326 = vst [vmem:[%s2068_s28 + $0x90] sm:$0xff] %v1294_v40  ;;  %v1295_v42 = vadd.f32 %v2063_v58, %v1119_v41  ;;  %v1616_v44 = vpop.f32.mrb[40].mxu0  ;;  %v1718_v45 = vpop.f32.mrb[40].mxu1 }
 0x14b   : > { %v1148_v46 = vadd.f32 %v1718_v45, %v2047_v25  ;;  %v1617_v47 = vpop.f32.mrb[41].mxu0  ;;  %v1139_v48 = vpop.f32.mrb[41].mxu1 }
 0x14c   : > { %1327 = vst [vmem:[%s2068_s28 + $0x98] sm:$0xff] %v1295_v42  ;;  %v1618_v50 = vadd.f32 %v1617_v47, %v1616_v44  ;;  %v1140_v51 = vadd.f32 %v2043_v13, %v1139_v48  ;;  %v1619_v52 = vpop.f32.mrb[42].mxu0  ;;  %v1719_v53 = vpop.f32.mrb[42].mxu1 }
 0x14d   : > { %v1302_v54 = vadd.f32 %v2063_v58, %v1148_v46  ;;  %v1151_v56 = vadd.f32 %v1719_v53, %v2049_v31  ;;  %v1620_v57 = vpop.f32.mrb[43].mxu0  ;;  %v1142_v59 = vpop.f32.mrb[43].mxu1 }
 0x14e   : > { %v1124_v25 = vadd.f32 %v1618_v50, %v1123_v30  ;;  %v1300_v60 = vadd.f32 %v2063_v58, %v1140_v51  ;;  %v1621_v61 = vadd.f32 %v1620_v57, %v1619_v52  ;;  %v1143_v62 = vadd.f32 %v2045_v19, %v1142_v59 }
 0x14f   : > { %1334 = vst [vmem:[%s2068_s28 + $0xd0] sm:$0xff] %v1302_v54  ;;  %v1303_v13 = vadd.f32 %v2063_v58, %v1151_v56 }
 0x150   : > { %v1296_v63 = vadd.f32 %v2063_v58, %v1124_v25  ;;  %1332 = vst [vmem:[%s2068_s28 + $0xc0] sm:$0xff] %v1300_v60  ;;  %v1127_v0 = vadd.f32 %v1621_v61, %v1126_v36  ;;  %v1301_v1 = vadd.f32 %v2063_v58, %v1143_v62 }
 0x151   : > { %1335 = vst [vmem:[%s2068_s28 + $0xd8] sm:$0xff] %v1303_v13 }
 0x152   : > { %1328 = vst [vmem:[%s2068_s28 + $0xa0] sm:$0xff] %v1296_v63  ;;  %v1297_v31 = vadd.f32 %v2063_v58, %v1127_v0  ;;  %1333 = vst [vmem:[%s2068_s28 + $0xc8] sm:$0xff] %v1301_v1  ;;  %v1622_v2 = vpop.f32.mrb[44].mxu0  ;;  %v1722_v3 = vpop.f32.mrb[44].mxu1 }
 0x153   : > { %v1164_v4 = vadd.f32 %v1722_v3, %v2055_v49  ;;  %v1623_v19 = vpop.f32.mrb[45].mxu0  ;;  %v1155_v5 = vpop.f32.mrb[45].mxu1 }
 0x154   : > { %1329 = vst [vmem:[%s2068_s28 + $0xa8] sm:$0xff] %v1297_v31  ;;  %v1624_v6 = vadd.f32 %v1623_v19, %v1622_v2  ;;  %v1156_v7 = vadd.f32 %v2051_v37, %v1155_v5  ;;  %v1625_v8 = vpop.f32.mrb[46].mxu0  ;;  %v1723_v9 = vpop.f32.mrb[46].mxu1 }
 0x155   : > { %v1306_v10 = vadd.f32 %v2063_v58, %v1164_v4  ;;  %v1167_v11 = vadd.f32 %v1723_v9, %v2057_v55  ;;  %v1626_v12 = vpop.f32.mrb[47].mxu0  ;;  %v1158_v49 = vpop.f32.mrb[47].mxu1 }
 0x156   : > { %v1132_v14 = vadd.f32 %v1714_v28, %v1624_v6  ;;  %v1304_v15 = vadd.f32 %v2063_v58, %v1156_v7  ;;  %v1627_v16 = vadd.f32 %v1626_v12, %v1625_v8  ;;  %v1159_v17 = vadd.f32 %v2053_v43, %v1158_v49 }
 0x157   : > { %1338 = vst [vmem:[%s2068_s28 + $0xf0] sm:$0xff] %v1306_v10  ;;  %v1307_v37 = vadd.f32 %v2063_v58, %v1167_v11 }
 0x158   : > { %v1298_v20 = vadd.f32 %v2063_v58, %v1132_v14  ;;  %1336 = vst [vmem:[%s2068_s28 + $0xe0] sm:$0xff] %v1304_v15  ;;  %v1135_v18 = vadd.f32 %v1715_v34, %v1627_v16  ;;  %v1305_v21 = vadd.f32 %v2063_v58, %v1159_v17 }
 0x159   : > { %1339 = vst [vmem:[%s2068_s28 + $0xf8] sm:$0xff] %v1307_v37 }
 0x15a   : > { %1330 = vst [vmem:[%s2068_s28 + $0xb0] sm:$0xff] %v1298_v20  ;;  %v1299_v55 = vadd.f32 %v2063_v58, %v1135_v18  ;;  %1337 = vst [vmem:[%s2068_s28 + $0xe8] sm:$0xff] %v1305_v21 }
 0x15c   : > { %1331 = vst [vmem:[%s2068_s28 + $0xb8] sm:$0xff] %v1299_v55 }
 0x15d PF: > { %s13_s14 = sadd.s32 1, %s1875_s14   ;;  %s2155_s12 = smov %s1871_s13 }
 0x15e   : > { %p10_p5 = scmp.ge.s32.totalorder %s13_s14, 4   ;;  %s2156_s13 = smov %s2158_s15 }
 0x160   :  { %12 = sbr.rel (!%p10_p5) target bundleno = 2 (0x2), region = 76 }

</bundles_post_ra>
